<compile_context>
chip_gen: v5e
topology: v5e:2x2
jax: 0.10.0
libtpu: 0.0.40
codegen_flags: <defaults>
</compile_context>

<pallas_src>
import math

import jax
import jax.numpy as jnp
from jax import lax
from jax.experimental import pallas as pl
from jax.experimental.pallas import tpu as pltpu


# Set to jnp.bfloat16 on v6e/v7x to hit MXU peak (accumulation stays f32 via
# preferred_element_type).  f32 default keeps bit-accuracy vs the reference.
MATMUL_DTYPE = jnp.float32


def _round_up(x, m):
    return ((x + m - 1) // m) * m


def _pick_rows_tile(n_rows, max_tile=512):
    """Largest divisor of n_rows that is a multiple of 8 and <= max_tile."""
    best = 8
    for d in range(8, min(n_rows, max_tile) + 1, 8):
        if n_rows % d == 0:
            best = d
    return best


def _gelu_exact(x):
    return 0.5 * x * (1.0 + lax.erf(x * (1.0 / math.sqrt(2.0))))


# ----------------------------------------------------------------------------
# (1) Row-tiled matmul + bias (used for the hoisted LSTM input projection).
# ----------------------------------------------------------------------------
def _matmul_bias_kernel(x_ref, w_ref, b_ref, o_ref):
    x = x_ref[...].astype(w_ref.dtype)
    o_ref[...] = (jnp.dot(x, w_ref[...], preferred_element_type=jnp.float32)
                  + b_ref[...]).astype(o_ref.dtype)


def _matmul_bias(x_flat, w, b, rows_tile):
    n, k = x_flat.shape
    m = w.shape[1]
    return pl.pallas_call(
        _matmul_bias_kernel,
        out_shape=jax.ShapeDtypeStruct((n, m), jnp.float32),
        grid_spec=pltpu.PrefetchScalarGridSpec(
            num_scalar_prefetch=0,
            grid=(n // rows_tile,),
            in_specs=[
                pl.BlockSpec((rows_tile, k), lambda i: (i, 0)),
                pl.BlockSpec((k, m), lambda i: (0, 0)),
                pl.BlockSpec((1, m), lambda i: (0, 0)),
            ],
            out_specs=pl.BlockSpec((rows_tile, m), lambda i: (i, 0)),
        ),
        compiler_params=pltpu.CompilerParams(
            dimension_semantics=("parallel",)),
    )(x_flat, w, b)


# ----------------------------------------------------------------------------
# (2) LSTM recurrence: grid over T-blocks, fori_loop over timesteps inside.
#     h / c state live in VMEM scratch and persist across grid steps.
# ----------------------------------------------------------------------------
def _lstm_recurrence_kernel(gx_ref, whh_ref, hout_ref, h_sc, c_sc):
    tb = pl.program_id(0)

    @pl.when(tb == 0)
    def _init():
        h_sc[...] = jnp.zeros_like(h_sc)
        c_sc[...] = jnp.zeros_like(c_sc)

    whh = whh_ref[...]                      # (hid_pad, 4*hid_pad), VMEM-resident
    hp = h_sc.shape[-1]
    t_blk = gx_ref.shape[0]

    def body(t, carry):
        h = h_sc[...]
        gates = gx_ref[t] + jnp.dot(h.astype(whh.dtype), whh,
                                    preferred_element_type=jnp.float32)
        # hid_pad is a multiple of 128 -> each gate slice is lane-aligned.
        i_g = jax.nn.sigmoid(gates[:, 0 * hp:1 * hp])
        f_g = jax.nn.sigmoid(gates[:, 1 * hp:2 * hp])
        g_g = jnp.tanh(gates[:, 2 * hp:3 * hp])
        o_g = jax.nn.sigmoid(gates[:, 3 * hp:4 * hp])

        c_new = f_g * c_sc[...] + i_g * g_g
        h_new = o_g * jnp.tanh(c_new)

        c_sc[...] = c_new
        h_sc[...] = h_new
        hout_ref[t] = h_new
        return carry

    lax.fori_loop(0, t_blk, body, 0, unroll=t_blk <= 16)


def _lstm_recurrence(gates_x, w_hh_p, t_blk):
    t_pad, b_pad, g = gates_x.shape
    hid_pad = g // 4
    return pl.pallas_call(
        _lstm_recurrence_kernel,
        out_shape=jax.ShapeDtypeStruct((t_pad, b_pad, hid_pad), jnp.float32),
        grid_spec=pltpu.PrefetchScalarGridSpec(
            num_scalar_prefetch=0,
            grid=(t_pad // t_blk,),
            in_specs=[
                pl.BlockSpec((t_blk, b_pad, g), lambda tb: (tb, 0, 0)),
                pl.BlockSpec((hid_pad, g), lambda tb: (0, 0)),
            ],
            out_specs=pl.BlockSpec((t_blk, b_pad, hid_pad), lambda tb: (tb, 0, 0)),
            scratch_shapes=[
                pltpu.VMEM((b_pad, hid_pad), jnp.float32),   # h state
                pltpu.VMEM((b_pad, hid_pad), jnp.float32),   # c state
            ],
        ),
        compiler_params=pltpu.CompilerParams(
            dimension_semantics=("arbitrary",)),     # time axis is sequential
    )(gates_x, w_hh_p)


# ----------------------------------------------------------------------------
# (3) Fused 3-head FeedForward: one concatenated first-layer matmul + GELU,
#     three lane-aligned second-layer matmuls, single lane-dense output.
#     Row-tiled over T*B with "parallel" semantics.
# ----------------------------------------------------------------------------
def _ff3_kernel(h_ref, w1_ref, b1_ref, w2_ref, b2_ref, o_ref):
    h = h_ref[...].astype(w1_ref.dtype)                       # (TN, hid_pad)
    z = jnp.dot(h, w1_ref[...], preferred_element_type=jnp.float32) + b1_ref[...]
    z = _gelu_exact(z)                                        # (TN, 3*h_pad) f32

    hp = w2_ref.shape[-1]
    zc = z.astype(w2_ref.dtype)
    outs = [jnp.dot(zc[:, k * hp:(k + 1) * hp], w2_ref[k],
                    preferred_element_type=jnp.float32)
            for k in range(3)]
    o_ref[...] = (jnp.concatenate(outs, axis=-1) + b2_ref[...]).astype(o_ref.dtype)


def _ff3(h_flat, w1_cat, b1_cat, w2_stack, b2_cat, rows_tile):
    n, hid_pad = h_flat.shape
    h3 = w1_cat.shape[1]
    h_pad = h3 // 3
    return pl.pallas_call(
        _ff3_kernel,
        out_shape=jax.ShapeDtypeStruct((n, h3), jnp.float32),
        grid_spec=pltpu.PrefetchScalarGridSpec(
            num_scalar_prefetch=0,
            grid=(n // rows_tile,),
            in_specs=[
                pl.BlockSpec((rows_tile, hid_pad), lambda i: (i, 0)),
                pl.BlockSpec((hid_pad, h3), lambda i: (0, 0)),
                pl.BlockSpec((1, h3), lambda i: (0, 0)),
                pl.BlockSpec((3, h_pad, h_pad), lambda i: (0, 0, 0)),
                pl.BlockSpec((1, h3), lambda i: (0, 0)),
            ],
            out_specs=pl.BlockSpec((rows_tile, h3), lambda i: (i, 0)),
        ),
        compiler_params=pltpu.CompilerParams(
            dimension_semantics=("parallel",)),
    )(h_flat, w1_cat, b1_cat, w2_stack, b2_cat)


# ----------------------------------------------------------------------------
# Parameter packing (pad hidden / H to 128-lane multiples, PyTorch layouts in).
# Zero-padded hidden units stay exactly 0 through the LSTM recurrence
# (gate pre-activation 0 -> g = tanh(0) = 0, c_pad stays 0, h_pad stays 0).
# ----------------------------------------------------------------------------
def _pack_lstm_params(w_ih, w_hh, b_ih, b_hh, hid, hid_pad, dtype):
    hin = w_ih.shape[1]
    pad = hid_pad - hid

    def pad_gate_rows(w, in_dim):
        w4 = w.reshape(4, hid, in_dim)
        w4 = jnp.pad(w4, ((0, 0), (0, pad), (0, 0)))
        return w4.reshape(4 * hid_pad, in_dim)

    w_ih_p = pad_gate_rows(w_ih, hin).T.astype(dtype)                   # (hin, 4*hid_pad)
    w_hh_p = jnp.pad(pad_gate_rows(w_hh, hid),
                     ((0, 0), (0, pad))).T.astype(dtype)                # (hid_pad, 4*hid_pad)
    b = (b_ih + b_hh).reshape(4, hid)
    b = jnp.pad(b, ((0, 0), (0, pad))).reshape(1, 4 * hid_pad).astype(jnp.float32)
    return w_ih_p, w_hh_p, b


def _pack_ff_params(ff, hid, hid_pad, h, h_pad, dtype):
    w1s, b1s, w2s, b2s = [], [], [], []
    for name in ("p", "q", "u"):
        prm = ff[name]
        w1s.append(jnp.pad(prm["w1"].T, ((0, hid_pad - hid), (0, h_pad - h))))
        b1s.append(jnp.pad(prm["b1"], (0, h_pad - h)))
        w2s.append(jnp.pad(prm["w2"].T, ((0, h_pad - h), (0, h_pad - h))))
        b2s.append(jnp.pad(prm["b2"], (0, h_pad - h)))
    w1_cat = jnp.concatenate(w1s, axis=1).astype(dtype)                  # (hid_pad, 3*h_pad)
    b1_cat = jnp.concatenate(b1s).reshape(1, 3 * h_pad).astype(jnp.float32)
    w2_stack = jnp.stack(w2s).astype(dtype)                              # (3, h_pad, h_pad)
    b2_cat = jnp.concatenate(b2s).reshape(1, 3 * h_pad).astype(jnp.float32)
    return w1_cat, b1_cat, w2_stack, b2_cat


# ----------------------------------------------------------------------------
# Full Recurrent_Block forward (batch_first in/out like the PyTorch module).
# ----------------------------------------------------------------------------
def recurrent_block_forward(x_bth, params):
    B, T, hin = x_bth.shape
    w_hh = params["lstm"]["w_hh"]
    hid = w_hh.shape[1]
    h_out = params["ff"]["p"]["w2"].shape[0]

    hid_pad = _round_up(hid, 128)
    h_pad = _round_up(h_out, 128)
    b_pad = _round_up(max(B, 8), 8)
    t_blk = T if T <= 64 else 64
    t_pad = _round_up(T, t_blk)

    # TODO(synk): dropout treated as identity (eval-mode semantics).
    x_tb = jnp.transpose(x_bth.astype(jnp.float32), (1, 0, 2))           # (T, B, hin)
    x_tb = jnp.pad(x_tb, ((0, t_pad - T), (0, b_pad - B), (0, 0)))
    n_rows = t_pad * b_pad
    x_flat = x_tb.reshape(n_rows, hin)

    w_ih_p, w_hh_p, lstm_bias = _pack_lstm_params(
        params["lstm"]["w_ih"], w_hh,
        params["lstm"]["b_ih"], params["lstm"]["b_hh"],
        hid, hid_pad, MATMUL_DTYPE)
    w1_cat, b1_cat, w2_stack, b2_cat = _pack_ff_params(
        params["ff"], hid, hid_pad, h_out, h_pad, MATMUL_DTYPE)

    rows_tile = _pick_rows_tile(n_rows)

    # (1) hoisted input projection: one big MXU matmul over all timesteps.
    gates_x = _matmul_bias(x_flat, w_ih_p, lstm_bias, rows_tile)          # (N, 4*hid_pad)
    gates_x = gates_x.reshape(t_pad, b_pad, 4 * hid_pad)

    # (2) sequential recurrence, t_blk steps per grid iteration.
    h_seq = _lstm_recurrence(gates_x, w_hh_p, t_blk)                      # (t_pad, b_pad, hid_pad)

    # (3) fused 3-head feed-forward on the flattened hidden sequence.
    h_flat = h_seq.reshape(n_rows, hid_pad)
    pqu = _ff3(h_flat, w1_cat, b1_cat, w2_stack, b2_cat, rows_tile)       # (N, 3*h_pad)

    pqu = pqu.reshape(t_pad, b_pad, 3 * h_pad)
    pqu = jnp.transpose(pqu, (1, 0, 2))[:B, :T]                           # (B, T, 3*h_pad)
    p = pqu[..., 0:h_out]
    q = pqu[..., h_pad:h_pad + h_out]
    u = pqu[..., 2 * h_pad:2 * h_pad + h_out]
    return p, q, u


# ----------------------------------------------------------------------------
# Pure-JAX reference (for a correctness sanity check).
# ----------------------------------------------------------------------------
def reference_forward(x_bth, params):
    w_ih = params["lstm"]["w_ih"]
    w_hh = params["lstm"]["w_hh"]
    b = params["lstm"]["b_ih"] + params["lstm"]["b_hh"]
    hid = w_hh.shape[1]
    B, T, _ = x_bth.shape

    def step(carry, x_t):
        h, c = carry
        gates = x_t @ w_ih.T + h @ w_hh.T + b
        i = jax.nn.sigmoid(gates[:, 0 * hid:1 * hid])
        f = jax.nn.sigmoid(gates[:, 1 * hid:2 * hid])
        g = jnp.tanh(gates[:, 2 * hid:3 * hid])
        o = jax.nn.sigmoid(gates[:, 3 * hid:4 * hid])
        c = f * c + i * g
        h = o * jnp.tanh(c)
        return (h, c), h

    x_tbh = jnp.transpose(x_bth, (1, 0, 2))
    init = (jnp.zeros((B, hid), jnp.float32), jnp.zeros((B, hid), jnp.float32))
    _, h_seq = lax.scan(step, init, x_tbh)
    h_bth = jnp.transpose(h_seq, (1, 0, 2))

    def ff(h, prm):
        z = _gelu_exact(h @ prm["w1"].T + prm["b1"])
        return z @ prm["w2"].T + prm["b2"]

    return (ff(h_bth, params["ff"]["p"]),
            ff(h_bth, params["ff"]["q"]),
            ff(h_bth, params["ff"]["u"]))


# ----------------------------------------------------------------------------
def init_params(key, H, hidden):
    keys = jax.random.split(key, 16)
    s = 0.1

    def rnd(k, shape):
        return (s * jax.random.normal(k, shape)).astype(jnp.float32)

    params = {
        "lstm": {
            "w_ih": rnd(keys[0], (4 * hidden, H)),
            "w_hh": rnd(keys[1], (4 * hidden, hidden)),
            "b_ih": rnd(keys[2], (4 * hidden,)),
            "b_hh": rnd(keys[3], (4 * hidden,)),
        },
        "ff": {},
    }
    for idx, name in enumerate(("p", "q", "u")):
        base = 4 + 4 * idx
        params["ff"][name] = {
            "w1": rnd(keys[base + 0], (H, hidden)),
            "b1": rnd(keys[base + 1], (H,)),
            "w2": rnd(keys[base + 2], (H, H)),
            "b2": rnd(keys[base + 3], (H,)),
        }
    return params


if __name__ == "__main__":
    B, T = 2, 8
    H = 32            # args.H (LSTM input size, FF output size)
    hidden = 32       # args.lstm_hidden_size

    key = jax.random.PRNGKey(0)
    k_x, k_p = jax.random.split(key)
    x = jax.random.normal(k_x, (B, T, H), dtype=jnp.float32)
    params = init_params(k_p, H, hidden)

    fwd = jax.jit(recurrent_block_forward)
    p, q, u = fwd(x, params)
    jax.block_until_ready((p, q, u))

    p_ref, q_ref, u_ref = reference_forward(x, params)
    for a, b_ in ((p, p_ref), (q, q_ref), (u, u_ref)):
        assert a.shape == (B, T, H)
        assert jnp.max(jnp.abs(a - b_)) < 1e-4

    print("KERNEL_OK")
</pallas_src>

<mosaic_0001>
module attributes {stable_mosaic.version = 11 : i64} {
  func.func @_lstm_recurrence_kernel(%arg0: i32, %arg1: memref<8x8x512xf32, #tpu.memory_space<vmem>>, %arg2: memref<128x512xf32, #tpu.memory_space<vmem>>, %arg3: memref<8x8x128xf32, #tpu.memory_space<vmem>>, %arg4: memref<8x128xf32, #tpu.memory_space<vmem>>, %arg5: memref<8x128xf32, #tpu.memory_space<vmem>>) attributes {dimension_semantics = [#tpu.dimension_semantics<arbitrary>], iteration_bounds = array<i64: 1>, scalar_prefetch = 0 : i64, scratch_operands = 2 : i64, tpu.core_type = #tpu.core_type<tc>, window_params = [{transform_indices = @transform_0, window_bounds = array<i64: 8, 8, 512>}, {pipeline_mode = #tpu.pipeline_mode<synchronous>, transform_indices = @transform_1, window_bounds = array<i64: 128, 512>}, {transform_indices = @transform_2, window_bounds = array<i64: 8, 8, 128>}]} {
    %c0_i32 = arith.constant 0 : i32
    %0 = arith.cmpi eq, %arg0, %c0_i32 : i32
    %1 = arith.extui %0 : i1 to i32
    %c0_i32_0 = arith.constant 0 : i32
    %2 = arith.cmpi ne, %1, %c0_i32_0 : i32
    scf.if %2 {
      %cst_130 = arith.constant 0.000000e+00 : f32
      %308 = vector.broadcast %cst_130 : f32 to vector<8x128xf32>
      %c0_131 = arith.constant 0 : index
      %c0_132 = arith.constant 0 : index
      %309 = vector.load %arg4[%c0_131, %c0_132] : memref<8x128xf32, #tpu.memory_space<vmem>>, vector<8x128xf32>
      tpu.vector_store %arg4[%c0_131, %c0_132], %308 {strides = array<i32>} : memref<8x128xf32, #tpu.memory_space<vmem>>, vector<8x128xf32>,
      %cst_133 = arith.constant 0.000000e+00 : f32
      %310 = vector.broadcast %cst_133 : f32 to vector<8x128xf32>
      %c0_134 = arith.constant 0 : index
      %c0_135 = arith.constant 0 : index
      %311 = vector.load %arg5[%c0_134, %c0_135] : memref<8x128xf32, #tpu.memory_space<vmem>>, vector<8x128xf32>
      tpu.vector_store %arg5[%c0_134, %c0_135], %310 {strides = array<i32>} : memref<8x128xf32, #tpu.memory_space<vmem>>, vector<8x128xf32>,
    } else {
    }
    %c0 = arith.constant 0 : index
    %c0_1 = arith.constant 0 : index
    %3 = vector.load %arg2[%c0, %c0_1] : memref<128x512xf32, #tpu.memory_space<vmem>>, vector<128x512xf32>
    %c0_i32_2 = arith.constant 0 : i32
    %c0_3 = arith.constant 0 : index
    %c0_4 = arith.constant 0 : index
    %4 = vector.load %arg4[%c0_3, %c0_4] : memref<8x128xf32, #tpu.memory_space<vmem>>, vector<8x128xf32>
    %5 = arith.index_cast %c0_i32_2 : i32 to index
    %c0_5 = arith.constant 0 : index
    %c0_6 = arith.constant 0 : index
    %6 = vector.load %arg1[%5, %c0_5, %c0_6] : memref<8x8x512xf32, #tpu.memory_space<vmem>>, vector<1x8x512xf32>
    %7 = vector.shape_cast %6 : vector<1x8x512xf32> to vector<8x512xf32>
    %cst = arith.constant dense<0.000000e+00> : vector<8x512xf32>
    %8 = tpu.matmul %4, %3, %cst {dimension_numbers = #tpu.dot_dimension_numbers<[1], [0], [0], [1], [0, 0, 1, 1], [], []>} : vector<8x128xf32>, vector<128x512xf32>, vector<8x512xf32> -> vector<8x512xf32>
    %9 = arith.addf %7, %8 : vector<8x512xf32>
    %10 = vector.extract_strided_slice %9 {offsets = [0, 0], sizes = [8, 128], strides = [1, 1]} : vector<8x512xf32> to vector<8x128xf32>
    %11 = arith.negf %10 : vector<8x128xf32>
    %12 = math.exp %11 : vector<8x128xf32>
    %cst_7 = arith.constant 1.000000e+00 : f32
    %13 = vector.broadcast %cst_7 : f32 to vector<8x128xf32>
    %14 = arith.addf %13, %12 : vector<8x128xf32>
    %15 = arith.divf %13, %14 : vector<8x128xf32>
    %16 = vector.extract_strided_slice %9 {offsets = [0, 128], sizes = [8, 128], strides = [1, 1]} : vector<8x512xf32> to vector<8x128xf32>
    %17 = arith.negf %16 : vector<8x128xf32>
    %18 = math.exp %17 : vector<8x128xf32>
    %cst_8 = arith.constant 1.000000e+00 : f32
    %19 = vector.broadcast %cst_8 : f32 to vector<8x128xf32>
    %20 = arith.addf %19, %18 : vector<8x128xf32>
    %21 = arith.divf %19, %20 : vector<8x128xf32>
    %22 = vector.extract_strided_slice %9 {offsets = [0, 256], sizes = [8, 128], strides = [1, 1]} : vector<8x512xf32> to vector<8x128xf32>
    %23 = math.tanh %22 : vector<8x128xf32>
    %24 = vector.extract_strided_slice %9 {offsets = [0, 384], sizes = [8, 128], strides = [1, 1]} : vector<8x512xf32> to vector<8x128xf32>
    %25 = arith.negf %24 : vector<8x128xf32>
    %26 = math.exp %25 : vector<8x128xf32>
    %cst_9 = arith.constant 1.000000e+00 : f32
    %27 = vector.broadcast %cst_9 : f32 to vector<8x128xf32>
    %28 = arith.addf %27, %26 : vector<8x128xf32>
    %29 = arith.divf %27, %28 : vector<8x128xf32>
    %c0_10 = arith.constant 0 : index
    %c0_11 = arith.constant 0 : index
    %30 = vector.load %arg5[%c0_10, %c0_11] : memref<8x128xf32, #tpu.memory_space<vmem>>, vector<8x128xf32>
    %31 = arith.mulf %21, %30 : vector<8x128xf32>
    %32 = arith.mulf %15, %23 : vector<8x128xf32>
    %33 = arith.addf %31, %32 : vector<8x128xf32>
    %34 = math.tanh %33 : vector<8x128xf32>
    %35 = arith.mulf %29, %34 : vector<8x128xf32>
    %c0_12 = arith.constant 0 : index
    %c0_13 = arith.constant 0 : index
    %36 = vector.load %arg5[%c0_12, %c0_13] : memref<8x128xf32, #tpu.memory_space<vmem>>, vector<8x128xf32>
    tpu.vector_store %arg5[%c0_12, %c0_13], %33 {strides = array<i32>} : memref<8x128xf32, #tpu.memory_space<vmem>>, vector<8x128xf32>,
    %c0_14 = arith.constant 0 : index
    %c0_15 = arith.constant 0 : index
    %37 = vector.load %arg4[%c0_14, %c0_15] : memref<8x128xf32, #tpu.memory_space<vmem>>, vector<8x128xf32>
    tpu.vector_store %arg4[%c0_14, %c0_15], %35 {strides = array<i32>} : memref<8x128xf32, #tpu.memory_space<vmem>>, vector<8x128xf32>,
    %38 = arith.index_cast %c0_i32_2 : i32 to index
    %c0_16 = arith.constant 0 : index
    %c0_17 = arith.constant 0 : index
    %39 = vector.load %arg3[%38, %c0_16, %c0_17] : memref<8x8x128xf32, #tpu.memory_space<vmem>>, vector<1x8x128xf32>
    %40 = vector.shape_cast %39 : vector<1x8x128xf32> to vector<8x128xf32>
    %41 = vector.shape_cast %35 : vector<8x128xf32> to vector<1x8x128xf32>
    tpu.vector_store %arg3[%38, %c0_16, %c0_17], %41 {strides = array<i32>} : memref<8x8x128xf32, #tpu.memory_space<vmem>>, vector<1x8x128xf32>,
    %c1_i32 = arith.constant 1 : i32
    %c0_18 = arith.constant 0 : index
    %c0_19 = arith.constant 0 : index
    %42 = vector.load %arg4[%c0_18, %c0_19] : memref<8x128xf32, #tpu.memory_space<vmem>>, vector<8x128xf32>
    %43 = arith.index_cast %c1_i32 : i32 to index
    %c0_20 = arith.constant 0 : index
    %c0_21 = arith.constant 0 : index
    %44 = vector.load %arg1[%43, %c0_20, %c0_21] : memref<8x8x512xf32, #tpu.memory_space<vmem>>, vector<1x8x512xf32>
    %45 = vector.shape_cast %44 : vector<1x8x512xf32> to vector<8x512xf32>
    %cst_22 = arith.constant dense<0.000000e+00> : vector<8x512xf32>
    %46 = tpu.matmul %42, %3, %cst_22 {dimension_numbers = #tpu.dot_dimension_numbers<[1], [0], [0], [1], [0, 0, 1, 1], [], []>} : vector<8x128xf32>, vector<128x512xf32>, vector<8x512xf32> -> vector<8x512xf32>
    %47 = arith.addf %45, %46 : vector<8x512xf32>
    %48 = vector.extract_strided_slice %47 {offsets = [0, 0], sizes = [8, 128], strides = [1, 1]} : vector<8x512xf32> to vector<8x128xf32>
    %49 = arith.negf %48 : vector<8x128xf32>
    %50 = math.exp %49 : vector<8x128xf32>
    %cst_23 = arith.constant 1.000000e+00 : f32
    %51 = vector.broadcast %cst_23 : f32 to vector<8x128xf32>
    %52 = arith.addf %51, %50 : vector<8x128xf32>
    %53 = arith.divf %51, %52 : vector<8x128xf32>
    %54 = vector.extract_strided_slice %47 {offsets = [0, 128], sizes = [8, 128], strides = [1, 1]} : vector<8x512xf32> to vector<8x128xf32>
    %55 = arith.negf %54 : vector<8x128xf32>
    %56 = math.exp %55 : vector<8x128xf32>
    %cst_24 = arith.constant 1.000000e+00 : f32
    %57 = vector.broadcast %cst_24 : f32 to vector<8x128xf32>
    %58 = arith.addf %57, %56 : vector<8x128xf32>
    %59 = arith.divf %57, %58 : vector<8x128xf32>
    %60 = vector.extract_strided_slice %47 {offsets = [0, 256], sizes = [8, 128], strides = [1, 1]} : vector<8x512xf32> to vector<8x128xf32>
    %61 = math.tanh %60 : vector<8x128xf32>
    %62 = vector.extract_strided_slice %47 {offsets = [0, 384], sizes = [8, 128], strides = [1, 1]} : vector<8x512xf32> to vector<8x128xf32>
    %63 = arith.negf %62 : vector<8x128xf32>
    %64 = math.exp %63 : vector<8x128xf32>
    %cst_25 = arith.constant 1.000000e+00 : f32
    %65 = vector.broadcast %cst_25 : f32 to vector<8x128xf32>
    %66 = arith.addf %65, %64 : vector<8x128xf32>
    %67 = arith.divf %65, %66 : vector<8x128xf32>
    %c0_26 = arith.constant 0 : index
    %c0_27 = arith.constant 0 : index
    %68 = vector.load %arg5[%c0_26, %c0_27] : memref<8x128xf32, #tpu.memory_space<vmem>>, vector<8x128xf32>
    %69 = arith.mulf %59, %68 : vector<8x128xf32>
    %70 = arith.mulf %53, %61 : vector<8x128xf32>
    %71 = arith.addf %69, %70 : vector<8x128xf32>
    %72 = math.tanh %71 : vector<8x128xf32>
    %73 = arith.mulf %67, %72 : vector<8x128xf32>
    %c0_28 = arith.constant 0 : index
    %c0_29 = arith.constant 0 : index
    %74 = vector.load %arg5[%c0_28, %c0_29] : memref<8x128xf32, #tpu.memory_space<vmem>>, vector<8x128xf32>
    tpu.vector_store %arg5[%c0_28, %c0_29], %71 {strides = array<i32>} : memref<8x128xf32, #tpu.memory_space<vmem>>, vector<8x128xf32>,
    %c0_30 = arith.constant 0 : index
    %c0_31 = arith.constant 0 : index
    %75 = vector.load %arg4[%c0_30, %c0_31] : memref<8x128xf32, #tpu.memory_space<vmem>>, vector<8x128xf32>
    tpu.vector_store %arg4[%c0_30, %c0_31], %73 {strides = array<i32>} : memref<8x128xf32, #tpu.memory_space<vmem>>, vector<8x128xf32>,
    %76 = arith.index_cast %c1_i32 : i32 to index
    %c0_32 = arith.constant 0 : index
    %c0_33 = arith.constant 0 : index
    %77 = vector.load %arg3[%76, %c0_32, %c0_33] : memref<8x8x128xf32, #tpu.memory_space<vmem>>, vector<1x8x128xf32>
    %78 = vector.shape_cast %77 : vector<1x8x128xf32> to vector<8x128xf32>
    %79 = vector.shape_cast %73 : vector<8x128xf32> to vector<1x8x128xf32>
    tpu.vector_store %arg3[%76, %c0_32, %c0_33], %79 {strides = array<i32>} : memref<8x8x128xf32, #tpu.memory_space<vmem>>, vector<1x8x128xf32>,
    %c2_i32 = arith.constant 2 : i32
    %c0_34 = arith.constant 0 : index
    %c0_35 = arith.constant 0 : index
    %80 = vector.load %arg4[%c0_34, %c0_35] : memref<8x128xf32, #tpu.memory_space<vmem>>, vector<8x128xf32>
    %81 = arith.index_cast %c2_i32 : i32 to index
    %c0_36 = arith.constant 0 : index
    %c0_37 = arith.constant 0 : index
    %82 = vector.load %arg1[%81, %c0_36, %c0_37] : memref<8x8x512xf32, #tpu.memory_space<vmem>>, vector<1x8x512xf32>
    %83 = vector.shape_cast %82 : vector<1x8x512xf32> to vector<8x512xf32>
    %cst_38 = arith.constant dense<0.000000e+00> : vector<8x512xf32>
    %84 = tpu.matmul %80, %3, %cst_38 {dimension_numbers = #tpu.dot_dimension_numbers<[1], [0], [0], [1], [0, 0, 1, 1], [], []>} : vector<8x128xf32>, vector<128x512xf32>, vector<8x512xf32> -> vector<8x512xf32>
    %85 = arith.addf %83, %84 : vector<8x512xf32>
    %86 = vector.extract_strided_slice %85 {offsets = [0, 0], sizes = [8, 128], strides = [1, 1]} : vector<8x512xf32> to vector<8x128xf32>
    %87 = arith.negf %86 : vector<8x128xf32>
    %88 = math.exp %87 : vector<8x128xf32>
    %cst_39 = arith.constant 1.000000e+00 : f32
    %89 = vector.broadcast %cst_39 : f32 to vector<8x128xf32>
    %90 = arith.addf %89, %88 : vector<8x128xf32>
    %91 = arith.divf %89, %90 : vector<8x128xf32>
    %92 = vector.extract_strided_slice %85 {offsets = [0, 128], sizes = [8, 128], strides = [1, 1]} : vector<8x512xf32> to vector<8x128xf32>
    %93 = arith.negf %92 : vector<8x128xf32>
    %94 = math.exp %93 : vector<8x128xf32>
    %cst_40 = arith.constant 1.000000e+00 : f32
    %95 = vector.broadcast %cst_40 : f32 to vector<8x128xf32>
    %96 = arith.addf %95, %94 : vector<8x128xf32>
    %97 = arith.divf %95, %96 : vector<8x128xf32>
    %98 = vector.extract_strided_slice %85 {offsets = [0, 256], sizes = [8, 128], strides = [1, 1]} : vector<8x512xf32> to vector<8x128xf32>
    %99 = math.tanh %98 : vector<8x128xf32>
    %100 = vector.extract_strided_slice %85 {offsets = [0, 384], sizes = [8, 128], strides = [1, 1]} : vector<8x512xf32> to vector<8x128xf32>
    %101 = arith.negf %100 : vector<8x128xf32>
    %102 = math.exp %101 : vector<8x128xf32>
    %cst_41 = arith.constant 1.000000e+00 : f32
    %103 = vector.broadcast %cst_41 : f32 to vector<8x128xf32>
    %104 = arith.addf %103, %102 : vector<8x128xf32>
    %105 = arith.divf %103, %104 : vector<8x128xf32>
    %c0_42 = arith.constant 0 : index
    %c0_43 = arith.constant 0 : index
    %106 = vector.load %arg5[%c0_42, %c0_43] : memref<8x128xf32, #tpu.memory_space<vmem>>, vector<8x128xf32>
    %107 = arith.mulf %97, %106 : vector<8x128xf32>
    %108 = arith.mulf %91, %99 : vector<8x128xf32>
    %109 = arith.addf %107, %108 : vector<8x128xf32>
    %110 = math.tanh %109 : vector<8x128xf32>
    %111 = arith.mulf %105, %110 : vector<8x128xf32>
    %c0_44 = arith.constant 0 : index
    %c0_45 = arith.constant 0 : index
    %112 = vector.load %arg5[%c0_44, %c0_45] : memref<8x128xf32, #tpu.memory_space<vmem>>, vector<8x128xf32>
    tpu.vector_store %arg5[%c0_44, %c0_45], %109 {strides = array<i32>} : memref<8x128xf32, #tpu.memory_space<vmem>>, vector<8x128xf32>,
    %c0_46 = arith.constant 0 : index
    %c0_47 = arith.constant 0 : index
    %113 = vector.load %arg4[%c0_46, %c0_47] : memref<8x128xf32, #tpu.memory_space<vmem>>, vector<8x128xf32>
    tpu.vector_store %arg4[%c0_46, %c0_47], %111 {strides = array<i32>} : memref<8x128xf32, #tpu.memory_space<vmem>>, vector<8x128xf32>,
    %114 = arith.index_cast %c2_i32 : i32 to index
    %c0_48 = arith.constant 0 : index
    %c0_49 = arith.constant 0 : index
    %115 = vector.load %arg3[%114, %c0_48, %c0_49] : memref<8x8x128xf32, #tpu.memory_space<vmem>>, vector<1x8x128xf32>
    %116 = vector.shape_cast %115 : vector<1x8x128xf32> to vector<8x128xf32>
    %117 = vector.shape_cast %111 : vector<8x128xf32> to vector<1x8x128xf32>
    tpu.vector_store %arg3[%114, %c0_48, %c0_49], %117 {strides = array<i32>} : memref<8x8x128xf32, #tpu.memory_space<vmem>>, vector<1x8x128xf32>,
    %c3_i32 = arith.constant 3 : i32
    %c0_50 = arith.constant 0 : index
    %c0_51 = arith.constant 0 : index
    %118 = vector.load %arg4[%c0_50, %c0_51] : memref<8x128xf32, #tpu.memory_space<vmem>>, vector<8x128xf32>
    %119 = arith.index_cast %c3_i32 : i32 to index
    %c0_52 = arith.constant 0 : index
    %c0_53 = arith.constant 0 : index
    %120 = vector.load %arg1[%119, %c0_52, %c0_53] : memref<8x8x512xf32, #tpu.memory_space<vmem>>, vector<1x8x512xf32>
    %121 = vector.shape_cast %120 : vector<1x8x512xf32> to vector<8x512xf32>
    %cst_54 = arith.constant dense<0.000000e+00> : vector<8x512xf32>
    %122 = tpu.matmul %118, %3, %cst_54 {dimension_numbers = #tpu.dot_dimension_numbers<[1], [0], [0], [1], [0, 0, 1, 1], [], []>} : vector<8x128xf32>, vector<128x512xf32>, vector<8x512xf32> -> vector<8x512xf32>
    %123 = arith.addf %121, %122 : vector<8x512xf32>
    %124 = vector.extract_strided_slice %123 {offsets = [0, 0], sizes = [8, 128], strides = [1, 1]} : vector<8x512xf32> to vector<8x128xf32>
    %125 = arith.negf %124 : vector<8x128xf32>
    %126 = math.exp %125 : vector<8x128xf32>
    %cst_55 = arith.constant 1.000000e+00 : f32
    %127 = vector.broadcast %cst_55 : f32 to vector<8x128xf32>
    %128 = arith.addf %127, %126 : vector<8x128xf32>
    %129 = arith.divf %127, %128 : vector<8x128xf32>
    %130 = vector.extract_strided_slice %123 {offsets = [0, 128], sizes = [8, 128], strides = [1, 1]} : vector<8x512xf32> to vector<8x128xf32>
    %131 = arith.negf %130 : vector<8x128xf32>
    %132 = math.exp %131 : vector<8x128xf32>
    %cst_56 = arith.constant 1.000000e+00 : f32
    %133 = vector.broadcast %cst_56 : f32 to vector<8x128xf32>
    %134 = arith.addf %133, %132 : vector<8x128xf32>
    %135 = arith.divf %133, %134 : vector<8x128xf32>
    %136 = vector.extract_strided_slice %123 {offsets = [0, 256], sizes = [8, 128], strides = [1, 1]} : vector<8x512xf32> to vector<8x128xf32>
    %137 = math.tanh %136 : vector<8x128xf32>
    %138 = vector.extract_strided_slice %123 {offsets = [0, 384], sizes = [8, 128], strides = [1, 1]} : vector<8x512xf32> to vector<8x128xf32>
    %139 = arith.negf %138 : vector<8x128xf32>
    %140 = math.exp %139 : vector<8x128xf32>
    %cst_57 = arith.constant 1.000000e+00 : f32
    %141 = vector.broadcast %cst_57 : f32 to vector<8x128xf32>
    %142 = arith.addf %141, %140 : vector<8x128xf32>
    %143 = arith.divf %141, %142 : vector<8x128xf32>
    %c0_58 = arith.constant 0 : index
    %c0_59 = arith.constant 0 : index
    %144 = vector.load %arg5[%c0_58, %c0_59] : memref<8x128xf32, #tpu.memory_space<vmem>>, vector<8x128xf32>
    %145 = arith.mulf %135, %144 : vector<8x128xf32>
    %146 = arith.mulf %129, %137 : vector<8x128xf32>
    %147 = arith.addf %145, %146 : vector<8x128xf32>
    %148 = math.tanh %147 : vector<8x128xf32>
    %149 = arith.mulf %143, %148 : vector<8x128xf32>
    %c0_60 = arith.constant 0 : index
    %c0_61 = arith.constant 0 : index
    %150 = vector.load %arg5[%c0_60, %c0_61] : memref<8x128xf32, #tpu.memory_space<vmem>>, vector<8x128xf32>
    tpu.vector_store %arg5[%c0_60, %c0_61], %147 {strides = array<i32>} : memref<8x128xf32, #tpu.memory_space<vmem>>, vector<8x128xf32>,
    %c0_62 = arith.constant 0 : index
    %c0_63 = arith.constant 0 : index
    %151 = vector.load %arg4[%c0_62, %c0_63] : memref<8x128xf32, #tpu.memory_space<vmem>>, vector<8x128xf32>
    tpu.vector_store %arg4[%c0_62, %c0_63], %149 {strides = array<i32>} : memref<8x128xf32, #tpu.memory_space<vmem>>, vector<8x128xf32>,
    %152 = arith.index_cast %c3_i32 : i32 to index
    %c0_64 = arith.constant 0 : index
    %c0_65 = arith.constant 0 : index
    %153 = vector.load %arg3[%152, %c0_64, %c0_65] : memref<8x8x128xf32, #tpu.memory_space<vmem>>, vector<1x8x128xf32>
    %154 = vector.shape_cast %153 : vector<1x8x128xf32> to vector<8x128xf32>
    %155 = vector.shape_cast %149 : vector<8x128xf32> to vector<1x8x128xf32>
    tpu.vector_store %arg3[%152, %c0_64, %c0_65], %155 {strides = array<i32>} : memref<8x8x128xf32, #tpu.memory_space<vmem>>, vector<1x8x128xf32>,
    %c4_i32 = arith.constant 4 : i32
    %c0_66 = arith.constant 0 : index
    %c0_67 = arith.constant 0 : index
    %156 = vector.load %arg4[%c0_66, %c0_67] : memref<8x128xf32, #tpu.memory_space<vmem>>, vector<8x128xf32>
    %157 = arith.index_cast %c4_i32 : i32 to index
    %c0_68 = arith.constant 0 : index
    %c0_69 = arith.constant 0 : index
    %158 = vector.load %arg1[%157, %c0_68, %c0_69] : memref<8x8x512xf32, #tpu.memory_space<vmem>>, vector<1x8x512xf32>
    %159 = vector.shape_cast %158 : vector<1x8x512xf32> to vector<8x512xf32>
    %cst_70 = arith.constant dense<0.000000e+00> : vector<8x512xf32>
    %160 = tpu.matmul %156, %3, %cst_70 {dimension_numbers = #tpu.dot_dimension_numbers<[1], [0], [0], [1], [0, 0, 1, 1], [], []>} : vector<8x128xf32>, vector<128x512xf32>, vector<8x512xf32> -> vector<8x512xf32>
    %161 = arith.addf %159, %160 : vector<8x512xf32>
    %162 = vector.extract_strided_slice %161 {offsets = [0, 0], sizes = [8, 128], strides = [1, 1]} : vector<8x512xf32> to vector<8x128xf32>
    %163 = arith.negf %162 : vector<8x128xf32>
    %164 = math.exp %163 : vector<8x128xf32>
    %cst_71 = arith.constant 1.000000e+00 : f32
    %165 = vector.broadcast %cst_71 : f32 to vector<8x128xf32>
    %166 = arith.addf %165, %164 : vector<8x128xf32>
    %167 = arith.divf %165, %166 : vector<8x128xf32>
    %168 = vector.extract_strided_slice %161 {offsets = [0, 128], sizes = [8, 128], strides = [1, 1]} : vector<8x512xf32> to vector<8x128xf32>
    %169 = arith.negf %168 : vector<8x128xf32>
    %170 = math.exp %169 : vector<8x128xf32>
    %cst_72 = arith.constant 1.000000e+00 : f32
    %171 = vector.broadcast %cst_72 : f32 to vector<8x128xf32>
    %172 = arith.addf %171, %170 : vector<8x128xf32>
    %173 = arith.divf %171, %172 : vector<8x128xf32>
    %174 = vector.extract_strided_slice %161 {offsets = [0, 256], sizes = [8, 128], strides = [1, 1]} : vector<8x512xf32> to vector<8x128xf32>
    %175 = math.tanh %174 : vector<8x128xf32>
    %176 = vector.extract_strided_slice %161 {offsets = [0, 384], sizes = [8, 128], strides = [1, 1]} : vector<8x512xf32> to vector<8x128xf32>
    %177 = arith.negf %176 : vector<8x128xf32>
    %178 = math.exp %177 : vector<8x128xf32>
    %cst_73 = arith.constant 1.000000e+00 : f32
    %179 = vector.broadcast %cst_73 : f32 to vector<8x128xf32>
    %180 = arith.addf %179, %178 : vector<8x128xf32>
    %181 = arith.divf %179, %180 : vector<8x128xf32>
    %c0_74 = arith.constant 0 : index
    %c0_75 = arith.constant 0 : index
    %182 = vector.load %arg5[%c0_74, %c0_75] : memref<8x128xf32, #tpu.memory_space<vmem>>, vector<8x128xf32>
    %183 = arith.mulf %173, %182 : vector<8x128xf32>
    %184 = arith.mulf %167, %175 : vector<8x128xf32>
    %185 = arith.addf %183, %184 : vector<8x128xf32>
    %186 = math.tanh %185 : vector<8x128xf32>
    %187 = arith.mulf %181, %186 : vector<8x128xf32>
    %c0_76 = arith.constant 0 : index
    %c0_77 = arith.constant 0 : index
    %188 = vector.load %arg5[%c0_76, %c0_77] : memref<8x128xf32, #tpu.memory_space<vmem>>, vector<8x128xf32>
    tpu.vector_store %arg5[%c0_76, %c0_77], %185 {strides = array<i32>} : memref<8x128xf32, #tpu.memory_space<vmem>>, vector<8x128xf32>,
    %c0_78 = arith.constant 0 : index
    %c0_79 = arith.constant 0 : index
    %189 = vector.load %arg4[%c0_78, %c0_79] : memref<8x128xf32, #tpu.memory_space<vmem>>, vector<8x128xf32>
    tpu.vector_store %arg4[%c0_78, %c0_79], %187 {strides = array<i32>} : memref<8x128xf32, #tpu.memory_space<vmem>>, vector<8x128xf32>,
    %190 = arith.index_cast %c4_i32 : i32 to index
    %c0_80 = arith.constant 0 : index
    %c0_81 = arith.constant 0 : index
    %191 = vector.load %arg3[%190, %c0_80, %c0_81] : memref<8x8x128xf32, #tpu.memory_space<vmem>>, vector<1x8x128xf32>
    %192 = vector.shape_cast %191 : vector<1x8x128xf32> to vector<8x128xf32>
    %193 = vector.shape_cast %187 : vector<8x128xf32> to vector<1x8x128xf32>
    tpu.vector_store %arg3[%190, %c0_80, %c0_81], %193 {strides = array<i32>} : memref<8x8x128xf32, #tpu.memory_space<vmem>>, vector<1x8x128xf32>,
    %c5_i32 = arith.constant 5 : i32
    %c0_82 = arith.constant 0 : index
    %c0_83 = arith.constant 0 : index
    %194 = vector.load %arg4[%c0_82, %c0_83] : memref<8x128xf32, #tpu.memory_space<vmem>>, vector<8x128xf32>
    %195 = arith.index_cast %c5_i32 : i32 to index
    %c0_84 = arith.constant 0 : index
    %c0_85 = arith.constant 0 : index
    %196 = vector.load %arg1[%195, %c0_84, %c0_85] : memref<8x8x512xf32, #tpu.memory_space<vmem>>, vector<1x8x512xf32>
    %197 = vector.shape_cast %196 : vector<1x8x512xf32> to vector<8x512xf32>
    %cst_86 = arith.constant dense<0.000000e+00> : vector<8x512xf32>
    %198 = tpu.matmul %194, %3, %cst_86 {dimension_numbers = #tpu.dot_dimension_numbers<[1], [0], [0], [1], [0, 0, 1, 1], [], []>} : vector<8x128xf32>, vector<128x512xf32>, vector<8x512xf32> -> vector<8x512xf32>
    %199 = arith.addf %197, %198 : vector<8x512xf32>
    %200 = vector.extract_strided_slice %199 {offsets = [0, 0], sizes = [8, 128], strides = [1, 1]} : vector<8x512xf32> to vector<8x128xf32>
    %201 = arith.negf %200 : vector<8x128xf32>
    %202 = math.exp %201 : vector<8x128xf32>
    %cst_87 = arith.constant 1.000000e+00 : f32
    %203 = vector.broadcast %cst_87 : f32 to vector<8x128xf32>
    %204 = arith.addf %203, %202 : vector<8x128xf32>
    %205 = arith.divf %203, %204 : vector<8x128xf32>
    %206 = vector.extract_strided_slice %199 {offsets = [0, 128], sizes = [8, 128], strides = [1, 1]} : vector<8x512xf32> to vector<8x128xf32>
    %207 = arith.negf %206 : vector<8x128xf32>
    %208 = math.exp %207 : vector<8x128xf32>
    %cst_88 = arith.constant 1.000000e+00 : f32
    %209 = vector.broadcast %cst_88 : f32 to vector<8x128xf32>
    %210 = arith.addf %209, %208 : vector<8x128xf32>
    %211 = arith.divf %209, %210 : vector<8x128xf32>
    %212 = vector.extract_strided_slice %199 {offsets = [0, 256], sizes = [8, 128], strides = [1, 1]} : vector<8x512xf32> to vector<8x128xf32>
    %213 = math.tanh %212 : vector<8x128xf32>
    %214 = vector.extract_strided_slice %199 {offsets = [0, 384], sizes = [8, 128], strides = [1, 1]} : vector<8x512xf32> to vector<8x128xf32>
    %215 = arith.negf %214 : vector<8x128xf32>
    %216 = math.exp %215 : vector<8x128xf32>
    %cst_89 = arith.constant 1.000000e+00 : f32
    %217 = vector.broadcast %cst_89 : f32 to vector<8x128xf32>
    %218 = arith.addf %217, %216 : vector<8x128xf32>
    %219 = arith.divf %217, %218 : vector<8x128xf32>
    %c0_90 = arith.constant 0 : index
    %c0_91 = arith.constant 0 : index
    %220 = vector.load %arg5[%c0_90, %c0_91] : memref<8x128xf32, #tpu.memory_space<vmem>>, vector<8x128xf32>
    %221 = arith.mulf %211, %220 : vector<8x128xf32>
    %222 = arith.mulf %205, %213 : vector<8x128xf32>
    %223 = arith.addf %221, %222 : vector<8x128xf32>
    %224 = math.tanh %223 : vector<8x128xf32>
    %225 = arith.mulf %219, %224 : vector<8x128xf32>
    %c0_92 = arith.constant 0 : index
    %c0_93 = arith.constant 0 : index
    %226 = vector.load %arg5[%c0_92, %c0_93] : memref<8x128xf32, #tpu.memory_space<vmem>>, vector<8x128xf32>
    tpu.vector_store %arg5[%c0_92, %c0_93], %223 {strides = array<i32>} : memref<8x128xf32, #tpu.memory_space<vmem>>, vector<8x128xf32>,
    %c0_94 = arith.constant 0 : index
    %c0_95 = arith.constant 0 : index
    %227 = vector.load %arg4[%c0_94, %c0_95] : memref<8x128xf32, #tpu.memory_space<vmem>>, vector<8x128xf32>
    tpu.vector_store %arg4[%c0_94, %c0_95], %225 {strides = array<i32>} : memref<8x128xf32, #tpu.memory_space<vmem>>, vector<8x128xf32>,
    %228 = arith.index_cast %c5_i32 : i32 to index
    %c0_96 = arith.constant 0 : index
    %c0_97 = arith.constant 0 : index
    %229 = vector.load %arg3[%228, %c0_96, %c0_97] : memref<8x8x128xf32, #tpu.memory_space<vmem>>, vector<1x8x128xf32>
    %230 = vector.shape_cast %229 : vector<1x8x128xf32> to vector<8x128xf32>
    %231 = vector.shape_cast %225 : vector<8x128xf32> to vector<1x8x128xf32>
    tpu.vector_store %arg3[%228, %c0_96, %c0_97], %231 {strides = array<i32>} : memref<8x8x128xf32, #tpu.memory_space<vmem>>, vector<1x8x128xf32>,
    %c6_i32 = arith.constant 6 : i32
    %c0_98 = arith.constant 0 : index
    %c0_99 = arith.constant 0 : index
    %232 = vector.load %arg4[%c0_98, %c0_99] : memref<8x128xf32, #tpu.memory_space<vmem>>, vector<8x128xf32>
    %233 = arith.index_cast %c6_i32 : i32 to index
    %c0_100 = arith.constant 0 : index
    %c0_101 = arith.constant 0 : index
    %234 = vector.load %arg1[%233, %c0_100, %c0_101] : memref<8x8x512xf32, #tpu.memory_space<vmem>>, vector<1x8x512xf32>
    %235 = vector.shape_cast %234 : vector<1x8x512xf32> to vector<8x512xf32>
    %cst_102 = arith.constant dense<0.000000e+00> : vector<8x512xf32>
    %236 = tpu.matmul %232, %3, %cst_102 {dimension_numbers = #tpu.dot_dimension_numbers<[1], [0], [0], [1], [0, 0, 1, 1], [], []>} : vector<8x128xf32>, vector<128x512xf32>, vector<8x512xf32> -> vector<8x512xf32>
    %237 = arith.addf %235, %236 : vector<8x512xf32>
    %238 = vector.extract_strided_slice %237 {offsets = [0, 0], sizes = [8, 128], strides = [1, 1]} : vector<8x512xf32> to vector<8x128xf32>
    %239 = arith.negf %238 : vector<8x128xf32>
    %240 = math.exp %239 : vector<8x128xf32>
    %cst_103 = arith.constant 1.000000e+00 : f32
    %241 = vector.broadcast %cst_103 : f32 to vector<8x128xf32>
    %242 = arith.addf %241, %240 : vector<8x128xf32>
    %243 = arith.divf %241, %242 : vector<8x128xf32>
    %244 = vector.extract_strided_slice %237 {offsets = [0, 128], sizes = [8, 128], strides = [1, 1]} : vector<8x512xf32> to vector<8x128xf32>
    %245 = arith.negf %244 : vector<8x128xf32>
    %246 = math.exp %245 : vector<8x128xf32>
    %cst_104 = arith.constant 1.000000e+00 : f32
    %247 = vector.broadcast %cst_104 : f32 to vector<8x128xf32>
    %248 = arith.addf %247, %246 : vector<8x128xf32>
    %249 = arith.divf %247, %248 : vector<8x128xf32>
    %250 = vector.extract_strided_slice %237 {offsets = [0, 256], sizes = [8, 128], strides = [1, 1]} : vector<8x512xf32> to vector<8x128xf32>
    %251 = math.tanh %250 : vector<8x128xf32>
    %252 = vector.extract_strided_slice %237 {offsets = [0, 384], sizes = [8, 128], strides = [1, 1]} : vector<8x512xf32> to vector<8x128xf32>
    %253 = arith.negf %252 : vector<8x128xf32>
    %254 = math.exp %253 : vector<8x128xf32>
    %cst_105 = arith.constant 1.000000e+00 : f32
    %255 = vector.broadcast %cst_105 : f32 to vector<8x128xf32>
    %256 = arith.addf %255, %254 : vector<8x128xf32>
    %257 = arith.divf %255, %256 : vector<8x128xf32>
    %c0_106 = arith.constant 0 : index
    %c0_107 = arith.constant 0 : index
    %258 = vector.load %arg5[%c0_106, %c0_107] : memref<8x128xf32, #tpu.memory_space<vmem>>, vector<8x128xf32>
    %259 = arith.mulf %249, %258 : vector<8x128xf32>
    %260 = arith.mulf %243, %251 : vector<8x128xf32>
    %261 = arith.addf %259, %260 : vector<8x128xf32>
    %262 = math.tanh %261 : vector<8x128xf32>
    %263 = arith.mulf %257, %262 : vector<8x128xf32>
    %c0_108 = arith.constant 0 : index
    %c0_109 = arith.constant 0 : index
    %264 = vector.load %arg5[%c0_108, %c0_109] : memref<8x128xf32, #tpu.memory_space<vmem>>, vector<8x128xf32>
    tpu.vector_store %arg5[%c0_108, %c0_109], %261 {strides = array<i32>} : memref<8x128xf32, #tpu.memory_space<vmem>>, vector<8x128xf32>,
    %c0_110 = arith.constant 0 : index
    %c0_111 = arith.constant 0 : index
    %265 = vector.load %arg4[%c0_110, %c0_111] : memref<8x128xf32, #tpu.memory_space<vmem>>, vector<8x128xf32>
    tpu.vector_store %arg4[%c0_110, %c0_111], %263 {strides = array<i32>} : memref<8x128xf32, #tpu.memory_space<vmem>>, vector<8x128xf32>,
    %266 = arith.index_cast %c6_i32 : i32 to index
    %c0_112 = arith.constant 0 : index
    %c0_113 = arith.constant 0 : index
    %267 = vector.load %arg3[%266, %c0_112, %c0_113] : memref<8x8x128xf32, #tpu.memory_space<vmem>>, vector<1x8x128xf32>
    %268 = vector.shape_cast %267 : vector<1x8x128xf32> to vector<8x128xf32>
    %269 = vector.shape_cast %263 : vector<8x128xf32> to vector<1x8x128xf32>
    tpu.vector_store %arg3[%266, %c0_112, %c0_113], %269 {strides = array<i32>} : memref<8x8x128xf32, #tpu.memory_space<vmem>>, vector<1x8x128xf32>,
    %c7_i32 = arith.constant 7 : i32
    %c0_114 = arith.constant 0 : index
    %c0_115 = arith.constant 0 : index
    %270 = vector.load %arg4[%c0_114, %c0_115] : memref<8x128xf32, #tpu.memory_space<vmem>>, vector<8x128xf32>
    %271 = arith.index_cast %c7_i32 : i32 to index
    %c0_116 = arith.constant 0 : index
    %c0_117 = arith.constant 0 : index
    %272 = vector.load %arg1[%271, %c0_116, %c0_117] : memref<8x8x512xf32, #tpu.memory_space<vmem>>, vector<1x8x512xf32>
    %273 = vector.shape_cast %272 : vector<1x8x512xf32> to vector<8x512xf32>
    %cst_118 = arith.constant dense<0.000000e+00> : vector<8x512xf32>
    %274 = tpu.matmul %270, %3, %cst_118 {dimension_numbers = #tpu.dot_dimension_numbers<[1], [0], [0], [1], [0, 0, 1, 1], [], []>} : vector<8x128xf32>, vector<128x512xf32>, vector<8x512xf32> -> vector<8x512xf32>
    %275 = arith.addf %273, %274 : vector<8x512xf32>
    %276 = vector.extract_strided_slice %275 {offsets = [0, 0], sizes = [8, 128], strides = [1, 1]} : vector<8x512xf32> to vector<8x128xf32>
    %277 = arith.negf %276 : vector<8x128xf32>
    %278 = math.exp %277 : vector<8x128xf32>
    %cst_119 = arith.constant 1.000000e+00 : f32
    %279 = vector.broadcast %cst_119 : f32 to vector<8x128xf32>
    %280 = arith.addf %279, %278 : vector<8x128xf32>
    %281 = arith.divf %279, %280 : vector<8x128xf32>
    %282 = vector.extract_strided_slice %275 {offsets = [0, 128], sizes = [8, 128], strides = [1, 1]} : vector<8x512xf32> to vector<8x128xf32>
    %283 = arith.negf %282 : vector<8x128xf32>
    %284 = math.exp %283 : vector<8x128xf32>
    %cst_120 = arith.constant 1.000000e+00 : f32
    %285 = vector.broadcast %cst_120 : f32 to vector<8x128xf32>
    %286 = arith.addf %285, %284 : vector<8x128xf32>
    %287 = arith.divf %285, %286 : vector<8x128xf32>
    %288 = vector.extract_strided_slice %275 {offsets = [0, 256], sizes = [8, 128], strides = [1, 1]} : vector<8x512xf32> to vector<8x128xf32>
    %289 = math.tanh %288 : vector<8x128xf32>
    %290 = vector.extract_strided_slice %275 {offsets = [0, 384], sizes = [8, 128], strides = [1, 1]} : vector<8x512xf32> to vector<8x128xf32>
    %291 = arith.negf %290 : vector<8x128xf32>
    %292 = math.exp %291 : vector<8x128xf32>
    %cst_121 = arith.constant 1.000000e+00 : f32
    %293 = vector.broadcast %cst_121 : f32 to vector<8x128xf32>
    %294 = arith.addf %293, %292 : vector<8x128xf32>
    %295 = arith.divf %293, %294 : vector<8x128xf32>
    %c0_122 = arith.constant 0 : index
    %c0_123 = arith.constant 0 : index
    %296 = vector.load %arg5[%c0_122, %c0_123] : memref<8x128xf32, #tpu.memory_space<vmem>>, vector<8x128xf32>
    %297 = arith.mulf %287, %296 : vector<8x128xf32>
    %298 = arith.mulf %281, %289 : vector<8x128xf32>
    %299 = arith.addf %297, %298 : vector<8x128xf32>
    %300 = math.tanh %299 : vector<8x128xf32>
    %301 = arith.mulf %295, %300 : vector<8x128xf32>
    %c0_124 = arith.constant 0 : index
    %c0_125 = arith.constant 0 : index
    %302 = vector.load %arg5[%c0_124, %c0_125] : memref<8x128xf32, #tpu.memory_space<vmem>>, vector<8x128xf32>
    tpu.vector_store %arg5[%c0_124, %c0_125], %299 {strides = array<i32>} : memref<8x128xf32, #tpu.memory_space<vmem>>, vector<8x128xf32>,
    %c0_126 = arith.constant 0 : index
    %c0_127 = arith.constant 0 : index
    %303 = vector.load %arg4[%c0_126, %c0_127] : memref<8x128xf32, #tpu.memory_space<vmem>>, vector<8x128xf32>
    tpu.vector_store %arg4[%c0_126, %c0_127], %301 {strides = array<i32>} : memref<8x128xf32, #tpu.memory_space<vmem>>, vector<8x128xf32>,
    %304 = arith.index_cast %c7_i32 : i32 to index
    %c0_128 = arith.constant 0 : index
    %c0_129 = arith.constant 0 : index
    %305 = vector.load %arg3[%304, %c0_128, %c0_129] : memref<8x8x128xf32, #tpu.memory_space<vmem>>, vector<1x8x128xf32>
    %306 = vector.shape_cast %305 : vector<1x8x128xf32> to vector<8x128xf32>
    %307 = vector.shape_cast %301 : vector<8x128xf32> to vector<1x8x128xf32>
    tpu.vector_store %arg3[%304, %c0_128, %c0_129], %307 {strides = array<i32>} : memref<8x8x128xf32, #tpu.memory_space<vmem>>, vector<1x8x128xf32>,
    %c8_i32 = arith.constant 8 : i32
    return
  }
  func.func @transform_0(%arg0: i32) -> (i32, i32, i32) {
    %c0_i32 = arith.constant 0 : i32
    %c0_i32_0 = arith.constant 0 : i32
    %c0_i32_1 = arith.constant 0 : i32
    return %arg0, %c0_i32, %c0_i32_0 : i32, i32, i32
  }
  func.func @transform_1(%arg0: i32) -> (i32, i32) {
    %c0_i32 = arith.constant 0 : i32
    %c0_i32_0 = arith.constant 0 : i32
    %c0_i32_1 = arith.constant 0 : i32
    return %c0_i32, %c0_i32_0 : i32, i32
  }
  func.func @transform_2(%arg0: i32) -> (i32, i32, i32) {
    %c0_i32 = arith.constant 0 : i32
    %c0_i32_0 = arith.constant 0 : i32
    %c0_i32_1 = arith.constant 0 : i32
    return %arg0, %c0_i32, %c0_i32_0 : i32, i32, i32
  }
}

module attributes {stable_mosaic.version = 11 : i64} {
  func.func @_matmul_bias_kernel(%arg0: i32, %arg1: memref<64x32xf32, #tpu.memory_space<vmem>>, %arg2: memref<32x512xf32, #tpu.memory_space<vmem>>, %arg3: memref<1x512xf32, #tpu.memory_space<vmem>>, %arg4: memref<64x512xf32, #tpu.memory_space<vmem>>) attributes {dimension_semantics = [#tpu.dimension_semantics<parallel>], iteration_bounds = array<i64: 1>, scalar_prefetch = 0 : i64, scratch_operands = 0 : i64, tpu.core_type = #tpu.core_type<tc>, window_params = [{transform_indices = @transform_0, window_bounds = array<i64: 64, 32>}, {pipeline_mode = #tpu.pipeline_mode<synchronous>, transform_indices = @transform_1, window_bounds = array<i64: 32, 512>}, {pipeline_mode = #tpu.pipeline_mode<synchronous>, transform_indices = @transform_2, window_bounds = array<i64: 1, 512>}, {transform_indices = @transform_3, window_bounds = array<i64: 64, 512>}]} {
    %c0 = arith.constant 0 : index
    %c0_0 = arith.constant 0 : index
    %0 = vector.load %arg1[%c0, %c0_0] : memref<64x32xf32, #tpu.memory_space<vmem>>, vector<64x32xf32>
    %c0_1 = arith.constant 0 : index
    %c0_2 = arith.constant 0 : index
    %1 = vector.load %arg2[%c0_1, %c0_2] : memref<32x512xf32, #tpu.memory_space<vmem>>, vector<32x512xf32>
    %cst = arith.constant dense<0.000000e+00> : vector<64x512xf32>
    %2 = tpu.matmul %0, %1, %cst {dimension_numbers = #tpu.dot_dimension_numbers<[1], [0], [0], [1], [0, 0, 1, 1], [], []>} : vector<64x32xf32>, vector<32x512xf32>, vector<64x512xf32> -> vector<64x512xf32>
    %c0_3 = arith.constant 0 : index
    %c0_4 = arith.constant 0 : index
    %3 = vector.load %arg3[%c0_3, %c0_4] : memref<1x512xf32, #tpu.memory_space<vmem>>, vector<1x512xf32>
    %4 = vector.broadcast %3 : vector<1x512xf32> to vector<64x512xf32>
    %5 = arith.addf %2, %4 : vector<64x512xf32>
    %c0_5 = arith.constant 0 : index
    %c0_6 = arith.constant 0 : index
    %6 = vector.load %arg4[%c0_5, %c0_6] : memref<64x512xf32, #tpu.memory_space<vmem>>, vector<64x512xf32>
    tpu.vector_store %arg4[%c0_5, %c0_6], %5 {strides = array<i32>} : memref<64x512xf32, #tpu.memory_space<vmem>>, vector<64x512xf32>,
    return
  }
  func.func @transform_0(%arg0: i32) -> (i32, i32) {
    %c0_i32 = arith.constant 0 : i32
    %c0_i32_0 = arith.constant 0 : i32
    return %arg0, %c0_i32 : i32, i32
  }
  func.func @transform_1(%arg0: i32) -> (i32, i32) {
    %c0_i32 = arith.constant 0 : i32
    %c0_i32_0 = arith.constant 0 : i32
    %c0_i32_1 = arith.constant 0 : i32
    return %c0_i32, %c0_i32_0 : i32, i32
  }
  func.func @transform_2(%arg0: i32) -> (i32, i32) {
    %c0_i32 = arith.constant 0 : i32
    %c0_i32_0 = arith.constant 0 : i32
    %c0_i32_1 = arith.constant 0 : i32
    return %c0_i32, %c0_i32_0 : i32, i32
  }
  func.func @transform_3(%arg0: i32) -> (i32, i32) {
    %c0_i32 = arith.constant 0 : i32
    %c0_i32_0 = arith.constant 0 : i32
    return %arg0, %c0_i32 : i32, i32
  }
}

module attributes {stable_mosaic.version = 11 : i64} {
  func.func @_ff3_kernel(%arg0: i32, %arg1: memref<64x128xf32, #tpu.memory_space<vmem>>, %arg2: memref<128x384xf32, #tpu.memory_space<vmem>>, %arg3: memref<1x384xf32, #tpu.memory_space<vmem>>, %arg4: memref<3x128x128xf32, #tpu.memory_space<vmem>>, %arg5: memref<1x384xf32, #tpu.memory_space<vmem>>, %arg6: memref<64x384xf32, #tpu.memory_space<vmem>>) attributes {dimension_semantics = [#tpu.dimension_semantics<parallel>], iteration_bounds = array<i64: 1>, scalar_prefetch = 0 : i64, scratch_operands = 0 : i64, tpu.core_type = #tpu.core_type<tc>, window_params = [{transform_indices = @transform_0, window_bounds = array<i64: 64, 128>}, {pipeline_mode = #tpu.pipeline_mode<synchronous>, transform_indices = @transform_1, window_bounds = array<i64: 128, 384>}, {pipeline_mode = #tpu.pipeline_mode<synchronous>, transform_indices = @transform_2, window_bounds = array<i64: 1, 384>}, {pipeline_mode = #tpu.pipeline_mode<synchronous>, transform_indices = @transform_3, window_bounds = array<i64: 3, 128, 128>}, {pipeline_mode = #tpu.pipeline_mode<synchronous>, transform_indices = @transform_4, window_bounds = array<i64: 1, 384>}, {transform_indices = @transform_5, window_bounds = array<i64: 64, 384>}]} {
    %c0 = arith.constant 0 : index
    %c0_0 = arith.constant 0 : index
    %0 = vector.load %arg1[%c0, %c0_0] : memref<64x128xf32, #tpu.memory_space<vmem>>, vector<64x128xf32>
    %c0_1 = arith.constant 0 : index
    %c0_2 = arith.constant 0 : index
    %1 = vector.load %arg2[%c0_1, %c0_2] : memref<128x384xf32, #tpu.memory_space<vmem>>, vector<128x384xf32>
    %cst = arith.constant dense<0.000000e+00> : vector<64x384xf32>
    %2 = tpu.matmul %0, %1, %cst {dimension_numbers = #tpu.dot_dimension_numbers<[1], [0], [0], [1], [0, 0, 1, 1], [], []>} : vector<64x128xf32>, vector<128x384xf32>, vector<64x384xf32> -> vector<64x384xf32>
    %c0_3 = arith.constant 0 : index
    %c0_4 = arith.constant 0 : index
    %3 = vector.load %arg3[%c0_3, %c0_4] : memref<1x384xf32, #tpu.memory_space<vmem>>, vector<1x384xf32>
    %4 = vector.broadcast %3 : vector<1x384xf32> to vector<64x384xf32>
    %5 = arith.addf %2, %4 : vector<64x384xf32>
    %cst_5 = arith.constant 5.000000e-01 : f32
    %6 = vector.broadcast %cst_5 : f32 to vector<64x384xf32>
    %7 = arith.mulf %6, %5 : vector<64x384xf32>
    %cst_6 = arith.constant 0.707106769 : f32
    %8 = vector.broadcast %cst_6 : f32 to vector<64x384xf32>
    %9 = arith.mulf %5, %8 : vector<64x384xf32>
    %10 = math.erf %9 : vector<64x384xf32>
    %cst_7 = arith.constant 1.000000e+00 : f32
    %11 = vector.broadcast %cst_7 : f32 to vector<64x384xf32>
    %12 = arith.addf %11, %10 : vector<64x384xf32>
    %13 = arith.mulf %7, %12 : vector<64x384xf32>
    %14 = vector.extract_strided_slice %13 {offsets = [0, 0], sizes = [64, 128], strides = [1, 1]} : vector<64x384xf32> to vector<64x128xf32>
    %c0_8 = arith.constant 0 : index
    %c0_9 = arith.constant 0 : index
    %c0_10 = arith.constant 0 : index
    %15 = vector.load %arg4[%c0_8, %c0_9, %c0_10] : memref<3x128x128xf32, #tpu.memory_space<vmem>>, vector<1x128x128xf32>
    %16 = vector.shape_cast %15 : vector<1x128x128xf32> to vector<128x128xf32>
    %cst_11 = arith.constant dense<0.000000e+00> : vector<64x128xf32>
    %17 = tpu.matmul %14, %16, %cst_11 {dimension_numbers = #tpu.dot_dimension_numbers<[1], [0], [0], [1], [0, 0, 1, 1], [], []>} : vector<64x128xf32>, vector<128x128xf32>, vector<64x128xf32> -> vector<64x128xf32>
    %18 = vector.extract_strided_slice %13 {offsets = [0, 128], sizes = [64, 128], strides = [1, 1]} : vector<64x384xf32> to vector<64x128xf32>
    %c1 = arith.constant 1 : index
    %c0_12 = arith.constant 0 : index
    %c0_13 = arith.constant 0 : index
    %19 = vector.load %arg4[%c1, %c0_12, %c0_13] : memref<3x128x128xf32, #tpu.memory_space<vmem>>, vector<1x128x128xf32>
    %20 = vector.shape_cast %19 : vector<1x128x128xf32> to vector<128x128xf32>
    %cst_14 = arith.constant dense<0.000000e+00> : vector<64x128xf32>
    %21 = tpu.matmul %18, %20, %cst_14 {dimension_numbers = #tpu.dot_dimension_numbers<[1], [0], [0], [1], [0, 0, 1, 1], [], []>} : vector<64x128xf32>, vector<128x128xf32>, vector<64x128xf32> -> vector<64x128xf32>
    %22 = vector.extract_strided_slice %13 {offsets = [0, 256], sizes = [64, 128], strides = [1, 1]} : vector<64x384xf32> to vector<64x128xf32>
    %c2 = arith.constant 2 : index
    %c0_15 = arith.constant 0 : index
    %c0_16 = arith.constant 0 : index
    %23 = vector.load %arg4[%c2, %c0_15, %c0_16] : memref<3x128x128xf32, #tpu.memory_space<vmem>>, vector<1x128x128xf32>
    %24 = vector.shape_cast %23 : vector<1x128x128xf32> to vector<128x128xf32>
    %cst_17 = arith.constant dense<0.000000e+00> : vector<64x128xf32>
    %25 = tpu.matmul %22, %24, %cst_17 {dimension_numbers = #tpu.dot_dimension_numbers<[1], [0], [0], [1], [0, 0, 1, 1], [], []>} : vector<64x128xf32>, vector<128x128xf32>, vector<64x128xf32> -> vector<64x128xf32>
    %26 = tpu.concatenate %17, %21, %25 in 1 : vector<64x128xf32>, vector<64x128xf32>, vector<64x128xf32> -> vector<64x384xf32>
    %c0_18 = arith.constant 0 : index
    %c0_19 = arith.constant 0 : index
    %27 = vector.load %arg5[%c0_18, %c0_19] : memref<1x384xf32, #tpu.memory_space<vmem>>, vector<1x384xf32>
    %28 = vector.broadcast %27 : vector<1x384xf32> to vector<64x384xf32>
    %29 = arith.addf %26, %28 : vector<64x384xf32>
    %c0_20 = arith.constant 0 : index
    %c0_21 = arith.constant 0 : index
    %30 = vector.load %arg6[%c0_20, %c0_21] : memref<64x384xf32, #tpu.memory_space<vmem>>, vector<64x384xf32>
    tpu.vector_store %arg6[%c0_20, %c0_21], %29 {strides = array<i32>} : memref<64x384xf32, #tpu.memory_space<vmem>>, vector<64x384xf32>,
    return
  }
  func.func @transform_0(%arg0: i32) -> (i32, i32) {
    %c0_i32 = arith.constant 0 : i32
    %c0_i32_0 = arith.constant 0 : i32
    return %arg0, %c0_i32 : i32, i32
  }
  func.func @transform_1(%arg0: i32) -> (i32, i32) {
    %c0_i32 = arith.constant 0 : i32
    %c0_i32_0 = arith.constant 0 : i32
    %c0_i32_1 = arith.constant 0 : i32
    return %c0_i32, %c0_i32_0 : i32, i32
  }
  func.func @transform_2(%arg0: i32) -> (i32, i32) {
    %c0_i32 = arith.constant 0 : i32
    %c0_i32_0 = arith.constant 0 : i32
    %c0_i32_1 = arith.constant 0 : i32
    return %c0_i32, %c0_i32_0 : i32, i32
  }
  func.func @transform_3(%arg0: i32) -> (i32, i32, i32) {
    %c0_i32 = arith.constant 0 : i32
    %c0_i32_0 = arith.constant 0 : i32
    %c0_i32_1 = arith.constant 0 : i32
    %c0_i32_2 = arith.constant 0 : i32
    return %c0_i32, %c0_i32_0, %c0_i32_1 : i32, i32, i32
  }
  func.func @transform_4(%arg0: i32) -> (i32, i32) {
    %c0_i32 = arith.constant 0 : i32
    %c0_i32_0 = arith.constant 0 : i32
    %c0_i32_1 = arith.constant 0 : i32
    return %c0_i32, %c0_i32_0 : i32, i32
  }
  func.func @transform_5(%arg0: i32) -> (i32, i32) {
    %c0_i32 = arith.constant 0 : i32
    %c0_i32_0 = arith.constant 0 : i32
    return %arg0, %c0_i32 : i32, i32
  }
}

</mosaic_0001>

<bundles_post_ra>
// kernel: recurrent_block_forward.3
= control target key start
LH: loop header
LB: loop body
LE: loop exit
PB: predicated region body
PF: predicated region fallthrough
CT: control target
= control target key end

     0   :  { %vm48_vm0 = vcmask 261120   ;;  %s568_s1 = inlined_call_operand.vmem [shape: f32[32,512], index: 1, kind: input, shape index: {}]   ;;  %s569_s0 = inlined_call_operand.vmem [shape: f32[64,32], index: 0, kind: input, shape index: {}]   ;;  %s570_s2 = inlined_call_operand.vmem [shape: f32[1,512], index: 2, kind: input, shape index: {}]   ;;  %s571_s3 = inlined_call_operand.vmem [shape: f32[64,512], index: 3, kind: output, shape index: {}]  }
   0x1   :  { %v36_v0 = vld [vmem:[%s568_s1 + $0x70] sm:$0xff]  ;;  %v37_v1 = vld [vmem:[%s568_s1 + $0x78] sm:$0xff]  ;;  %v34_v6 = vld [vmem:[%s568_s1 + $0x60] sm:$0xff] }
   0x2   :  { %v32_v2 = vld [vmem:[%s568_s1 + $0x50] sm:$0xff]  ;;  %167 = vmatpush.msra.mxu2 %v36_v0  ;;  %208 = vmatpush.msra.mxu3 %v37_v1  ;;  %v33_v3 = vld [vmem:[%s568_s1 + $0x58] sm:$0xff]  ;;  %v35_v7 = vld [vmem:[%s568_s1 + $0x68] sm:$0xff] }
   0x3   :  { %v28_v4 = vld [vmem:[%s568_s1 + $0x30] sm:$0xff]  ;;  %v29_v5 = vld [vmem:[%s568_s1 + $0x38] sm:$0xff]  ;;  %v30_v8 = vld [vmem:[%s568_s1 + $0x40] sm:$0xff]  ;;  %85 = vmatpush.msra.mxu0 %v34_v6  ;;  %126 = vmatpush.msra.mxu1 %v35_v7 }
   0x4   :  { %168 = vmatpush.msra.mxu2 %v32_v2  ;;  %209 = vmatpush.msra.mxu3 %v33_v3  ;;  %v24_v9 = vld [vmem:[%s568_s1 + $0x10] sm:$0xff]  ;;  %v25_v10 = vld [vmem:[%s568_s1 + $0x18] sm:$0xff]  ;;  %v31_v11 = vld [vmem:[%s568_s1 + $0x48] sm:$0xff] }
   0x5   :  { %v14_v12 = vld [vmem:[%s569_s0] sm:$0xff]  ;;  %86 = vmatpush.msra.mxu0 %v30_v8  ;;  %127 = vmatpush.msra.mxu1 %v31_v11  ;;  %v27_v14 = vld [vmem:[%s568_s1 + $0x28] sm:$0xff]  ;;  %v16_v18 = vld [vmem:[%s569_s0 + $0x10] sm:$0xff] }
   0x6   :  { %169 = vmatpush.msra.mxu2 %v28_v4  ;;  %210 = vmatpush.msra.mxu3 %v29_v5  ;;  %v26_v13 = vld [vmem:[%s568_s1 + $0x20] sm:$0xff]  ;;  %v23_v16 = vld [vmem:[%s568_s1 + $0x8] sm:$0xff]  ;;  %v17_v19 = vld [vmem:[%s569_s0 + $0x18] sm:$0xff] }
   0x7   :  { %v22_v15 = vld [vmem:[%s568_s1] sm:$0xff]  ;;  %87 = vmatpush.msra.mxu0 %v26_v13  ;;  %128 = vmatpush.msra.mxu1 %v27_v14  ;;  %v15_v17 = vld [vmem:[%s569_s0 + $0x8] sm:$0xff]  ;;  %v20_v22 = vld [vmem:[%s569_s0 + $0x30] sm:$0xff] }
   0x8   :  { %170 = vmatpush.msra.mxu2 %v24_v9  ;;  %211 = vmatpush.msra.mxu3 %v25_v10  ;;  %v18_v20 = vld [vmem:[%s569_s0 + $0x20] sm:$0xff]  ;;  %v19_v21 = vld [vmem:[%s569_s0 + $0x28] sm:$0xff]  ;;  %v21_v23 = vld [vmem:[%s569_s0 + $0x38] sm:$0xff] }
   0x9   :  { %289 = vmatmul.msk.f32.vlgmr.msra.gmra.mxu2 %vm48_vm0, %v14_v12  ;;  %297 = vmatmul.msk.f32.vlgmr.msra.gmra.mxu3 %vm48_vm0, %v14_v12  ;;  %v38_v24 = vld [vmem:[%s570_s2] sm:$0xf] }
   0xa   :  { %88 = vmatpush.msra.mxu0 %v22_v15  ;;  %129 = vmatpush.msra.mxu1 %v23_v16  ;;  %v432_v25 = vperm.slane %v38_v24, 0  ;;  %v434_v26 = vperm.slane %v38_v24, 1  ;;  %v436_v27 = vperm.slane %v38_v24, 2  ;;  %v438_v28 = vperm.slane %v38_v24, 3 }
   0xb   :  { %273 = vmatmul.msk.f32.vlgmr.msra.gmra.mxu0 %vm48_vm0, %v14_v12  ;;  %281 = vmatmul.msk.f32.vlgmr.msra.gmra.mxu1 %vm48_vm0, %v14_v12 }
  0x11   :  { %290 = vmatmul.msk.f32.gmra.mxu2 %vm48_vm0, %v15_v17  ;;  %298 = vmatmul.msk.f32.gmra.mxu3 %vm48_vm0, %v15_v17 }
  0x13   :  { %274 = vmatmul.msk.f32.gmra.mxu0 %vm48_vm0, %v15_v17  ;;  %282 = vmatmul.msk.f32.gmra.mxu1 %vm48_vm0, %v15_v17 }
  0x19   :  { %291 = vmatmul.msk.f32.gmra.mxu2 %vm48_vm0, %v16_v18  ;;  %299 = vmatmul.msk.f32.gmra.mxu3 %vm48_vm0, %v16_v18 }
  0x1b   :  { %275 = vmatmul.msk.f32.gmra.mxu0 %vm48_vm0, %v16_v18  ;;  %283 = vmatmul.msk.f32.gmra.mxu1 %vm48_vm0, %v16_v18 }
  0x21   :  { %292 = vmatmul.msk.f32.gmra.mxu2 %vm48_vm0, %v17_v19  ;;  %300 = vmatmul.msk.f32.gmra.mxu3 %vm48_vm0, %v17_v19 }
  0x23   :  { %276 = vmatmul.msk.f32.gmra.mxu0 %vm48_vm0, %v17_v19  ;;  %284 = vmatmul.msk.f32.gmra.mxu1 %vm48_vm0, %v17_v19 }
  0x29   :  { %293 = vmatmul.msk.f32.gmra.mxu2 %vm48_vm0, %v18_v20  ;;  %301 = vmatmul.msk.f32.gmra.mxu3 %vm48_vm0, %v18_v20 }
  0x2b   :  { %277 = vmatmul.msk.f32.gmra.mxu0 %vm48_vm0, %v18_v20  ;;  %285 = vmatmul.msk.f32.gmra.mxu1 %vm48_vm0, %v18_v20 }
  0x31   :  { %294 = vmatmul.msk.f32.gmra.mxu2 %vm48_vm0, %v19_v21  ;;  %302 = vmatmul.msk.f32.gmra.mxu3 %vm48_vm0, %v19_v21 }
  0x33   :  { %278 = vmatmul.msk.f32.gmra.mxu0 %vm48_vm0, %v19_v21  ;;  %286 = vmatmul.msk.f32.gmra.mxu1 %vm48_vm0, %v19_v21 }
  0x39   :  { %295 = vmatmul.msk.f32.gmra.mxu2 %vm48_vm0, %v20_v22  ;;  %303 = vmatmul.msk.f32.gmra.mxu3 %vm48_vm0, %v20_v22 }
  0x3b   :  { %279 = vmatmul.msk.f32.gmra.mxu0 %vm48_vm0, %v20_v22  ;;  %287 = vmatmul.msk.f32.gmra.mxu1 %vm48_vm0, %v20_v22 }
  0x41   :  { %296 = vmatmul.msk.f32.gmra.mxu2 %vm48_vm0, %v21_v23  ;;  %304 = vmatmul.msk.f32.gmra.mxu3 %vm48_vm0, %v21_v23 }
  0x43   :  { %280 = vmatmul.msk.f32.gmra.mxu0 %vm48_vm0, %v21_v23  ;;  %288 = vmatmul.msk.f32.gmra.mxu1 %vm48_vm0, %v21_v23 }
  0x88   :  { %v90_v29 = vpop.f32.mrf.mxu0  ;;  %v131_v30 = vpop.f32.mrf.mxu1 }
  0x89   :  { %v91_v31 = vadd.f32 %v90_v29, %v432_v25  ;;  %v132_v32 = vadd.f32 %v131_v30, %v434_v26 }
  0x8b   :  { %237 = vst [vmem:[%s571_s3] sm:$0xff] %v91_v31 }
  0x8c   :  { %v172_v33 = vpop.f32.mrf.mxu2  ;;  %v213_v34 = vpop.f32.mrf.mxu3  ;;  %238 = vst [vmem:[%s571_s3 + $0x8] sm:$0xff] %v132_v32 }
  0x8d   :  { %v173_v35 = vadd.f32 %v172_v33, %v436_v27  ;;  %v214_v36 = vadd.f32 %v213_v34, %v438_v28 }
  0x8f   :  { %239 = vst [vmem:[%s571_s3 + $0x10] sm:$0xff] %v173_v35 }
  0x90   :  { %240 = vst [vmem:[%s571_s3 + $0x18] sm:$0xff] %v214_v36  ;;  %v93_v37 = vpop.f32.mrf.mxu0  ;;  %v134_v38 = vpop.f32.mrf.mxu1 }
  0x91   :  { %v94_v39 = vadd.f32 %v93_v37, %v432_v25  ;;  %v135_v40 = vadd.f32 %v134_v38, %v434_v26 }
  0x93   :  { %241 = vst [vmem:[%s571_s3 + $0x20] sm:$0xff] %v94_v39 }
  0x94   :  { %v175_v41 = vpop.f32.mrf.mxu2  ;;  %v216_v42 = vpop.f32.mrf.mxu3  ;;  %242 = vst [vmem:[%s571_s3 + $0x28] sm:$0xff] %v135_v40 }
  0x95   :  { %v176_v43 = vadd.f32 %v175_v41, %v436_v27  ;;  %v217_v44 = vadd.f32 %v216_v42, %v438_v28 }
  0x97   :  { %243 = vst [vmem:[%s571_s3 + $0x30] sm:$0xff] %v176_v43 }
  0x98   :  { %244 = vst [vmem:[%s571_s3 + $0x38] sm:$0xff] %v217_v44  ;;  %v96_v45 = vpop.f32.mrf.mxu0  ;;  %v137_v46 = vpop.f32.mrf.mxu1 }
  0x99   :  { %v97_v47 = vadd.f32 %v96_v45, %v432_v25  ;;  %v138_v48 = vadd.f32 %v137_v46, %v434_v26 }
  0x9b   :  { %245 = vst [vmem:[%s571_s3 + $0x40] sm:$0xff] %v97_v47 }
  0x9c   :  { %v178_v49 = vpop.f32.mrf.mxu2  ;;  %v219_v50 = vpop.f32.mrf.mxu3  ;;  %246 = vst [vmem:[%s571_s3 + $0x48] sm:$0xff] %v138_v48 }
  0x9d   :  { %v179_v51 = vadd.f32 %v178_v49, %v436_v27  ;;  %v220_v52 = vadd.f32 %v219_v50, %v438_v28 }
  0x9f   :  { %247 = vst [vmem:[%s571_s3 + $0x50] sm:$0xff] %v179_v51 }
  0xa0   :  { %248 = vst [vmem:[%s571_s3 + $0x58] sm:$0xff] %v220_v52  ;;  %v99_v53 = vpop.f32.mrf.mxu0  ;;  %v140_v54 = vpop.f32.mrf.mxu1 }
  0xa1   :  { %v100_v55 = vadd.f32 %v99_v53, %v432_v25  ;;  %v141_v56 = vadd.f32 %v140_v54, %v434_v26 }
  0xa3   :  { %249 = vst [vmem:[%s571_s3 + $0x60] sm:$0xff] %v100_v55 }
  0xa4   :  { %v181_v57 = vpop.f32.mrf.mxu2  ;;  %v222_v58 = vpop.f32.mrf.mxu3  ;;  %250 = vst [vmem:[%s571_s3 + $0x68] sm:$0xff] %v141_v56 }
  0xa5   :  { %v182_v59 = vadd.f32 %v181_v57, %v436_v27  ;;  %v223_v60 = vadd.f32 %v222_v58, %v438_v28 }
  0xa7   :  { %251 = vst [vmem:[%s571_s3 + $0x70] sm:$0xff] %v182_v59 }
  0xa8   :  { %252 = vst [vmem:[%s571_s3 + $0x78] sm:$0xff] %v223_v60  ;;  %v102_v61 = vpop.f32.mrf.mxu0  ;;  %v143_v62 = vpop.f32.mrf.mxu1 }
  0xa9   :  { %v103_v63 = vadd.f32 %v102_v61, %v432_v25  ;;  %v144_v0 = vadd.f32 %v143_v62, %v434_v26 }
  0xab   :  { %253 = vst [vmem:[%s571_s3 + $0x80] sm:$0xff] %v103_v63 }
  0xac   :  { %v184_v1 = vpop.f32.mrf.mxu2  ;;  %v225_v2 = vpop.f32.mrf.mxu3  ;;  %254 = vst [vmem:[%s571_s3 + $0x88] sm:$0xff] %v144_v0 }
  0xad   :  { %v185_v3 = vadd.f32 %v184_v1, %v436_v27  ;;  %v226_v4 = vadd.f32 %v225_v2, %v438_v28 }
  0xaf   :  { %255 = vst [vmem:[%s571_s3 + $0x90] sm:$0xff] %v185_v3 }
  0xb0   :  { %256 = vst [vmem:[%s571_s3 + $0x98] sm:$0xff] %v226_v4  ;;  %v105_v5 = vpop.f32.mrf.mxu0  ;;  %v146_v6 = vpop.f32.mrf.mxu1 }
  0xb1   :  { %v106_v7 = vadd.f32 %v105_v5, %v432_v25  ;;  %v147_v8 = vadd.f32 %v146_v6, %v434_v26 }
  0xb3   :  { %257 = vst [vmem:[%s571_s3 + $0xa0] sm:$0xff] %v106_v7 }
  0xb4   :  { %v187_v9 = vpop.f32.mrf.mxu2  ;;  %v228_v10 = vpop.f32.mrf.mxu3  ;;  %258 = vst [vmem:[%s571_s3 + $0xa8] sm:$0xff] %v147_v8 }
  0xb5   :  { %v188_v11 = vadd.f32 %v187_v9, %v436_v27  ;;  %v229_v12 = vadd.f32 %v228_v10, %v438_v28 }
  0xb7   :  { %259 = vst [vmem:[%s571_s3 + $0xb0] sm:$0xff] %v188_v11 }
  0xb8   :  { %260 = vst [vmem:[%s571_s3 + $0xb8] sm:$0xff] %v229_v12  ;;  %v108_v13 = vpop.f32.mrf.mxu0  ;;  %v149_v14 = vpop.f32.mrf.mxu1 }
  0xb9   :  { %v109_v15 = vadd.f32 %v108_v13, %v432_v25  ;;  %v150_v16 = vadd.f32 %v149_v14, %v434_v26 }
  0xbb   :  { %261 = vst [vmem:[%s571_s3 + $0xc0] sm:$0xff] %v109_v15 }
  0xbc   :  { %v190_v17 = vpop.f32.mrf.mxu2  ;;  %v231_v18 = vpop.f32.mrf.mxu3  ;;  %262 = vst [vmem:[%s571_s3 + $0xc8] sm:$0xff] %v150_v16 }
  0xbd   :  { %v191_v19 = vadd.f32 %v190_v17, %v436_v27  ;;  %v232_v20 = vadd.f32 %v231_v18, %v438_v28 }
  0xbf   :  { %263 = vst [vmem:[%s571_s3 + $0xd0] sm:$0xff] %v191_v19 }
  0xc0   :  { %264 = vst [vmem:[%s571_s3 + $0xd8] sm:$0xff] %v232_v20  ;;  %v111_v21 = vpop.f32.mrf.mxu0  ;;  %v152_v22 = vpop.f32.mrf.mxu1 }
  0xc1   :  { %v112_v23 = vadd.f32 %v111_v21, %v432_v25  ;;  %v153_v24 = vadd.f32 %v152_v22, %v434_v26 }
  0xc3   :  { %265 = vst [vmem:[%s571_s3 + $0xe0] sm:$0xff] %v112_v23 }
  0xc4   :  { %v193_v29 = vpop.f32.mrf.mxu2  ;;  %v234_v30 = vpop.f32.mrf.mxu3  ;;  %266 = vst [vmem:[%s571_s3 + $0xe8] sm:$0xff] %v153_v24 }
  0xc5   :  { %v194_v31 = vadd.f32 %v193_v29, %v436_v27  ;;  %v235_v32 = vadd.f32 %v234_v30, %v438_v28 }
  0xc7   :  { %267 = vst [vmem:[%s571_s3 + $0xf0] sm:$0xff] %v194_v31 }
  0xc8   :  { %268 = vst [vmem:[%s571_s3 + $0xf8] sm:$0xff] %v235_v32 }

// kernel: recurrent_block_forward.5
= control target key start
LH: loop header
LB: loop body
LE: loop exit
PB: predicated region body
PF: predicated region fallthrough
CT: control target
= control target key end

     0   :  { %s3172_s1 = inlined_call_operand.vmem [shape: f32[128,384], index: 1, kind: input, shape index: {}]   ;;  %s3173_s0 = inlined_call_operand.vmem [shape: f32[64,128], index: 0, kind: input, shape index: {}]   ;;  %s3174_s2 = inlined_call_operand.vmem [shape: f32[1,384], index: 2, kind: input, shape index: {}]   ;;  %s3175_s3 = inlined_call_operand.vmem [shape: f32[3,128,128], index: 3, kind: input, shape index: {}]   ;;  %s3176_s4 = inlined_call_operand.vmem [shape: f32[1,384], index: 4, kind: input, shape index: {}]   ;;  %s3177_s5 = inlined_call_operand.vmem [shape: f32[64,384], index: 5, kind: output, shape index: {}]  }
   0x1   :  { %v73_v0 = vld [vmem:[%s3172_s1 + $0x168] sm:$0xff]  ;;  %v74_v1 = vld [vmem:[%s3172_s1 + $0x170] sm:$0xff]  ;;  %v71_v3 = vld [vmem:[%s3172_s1 + $0x158] sm:$0xff] }
   0x2   :  { %v70_v2 = vld [vmem:[%s3172_s1 + $0x150] sm:$0xff]  ;;  %84 = vmatpush.msra.mxu0 %v73_v0  ;;  %1552 = vmatpush.msra.mxu2 %v73_v0  ;;  %v67_v4 = vld [vmem:[%s3172_s1 + $0x138] sm:$0xff]  ;;  %v68_v5 = vld [vmem:[%s3172_s1 + $0x140] sm:$0xff] }
   0x3   :  { %125 = vmatpush.msra.mxu1 %v74_v1  ;;  %1568 = vmatpush.msra.mxu3 %v74_v1  ;;  %v64_v6 = vld [vmem:[%s3172_s1 + $0x120] sm:$0xff]  ;;  %v65_v7 = vld [vmem:[%s3172_s1 + $0x128] sm:$0xff]  ;;  %v62_v9 = vld [vmem:[%s3172_s1 + $0x110] sm:$0xff] }
   0x4   :  { %85 = vmatpush.msra.mxu0 %v70_v2  ;;  %1553 = vmatpush.msra.mxu2 %v70_v2  ;;  %v61_v8 = vld [vmem:[%s3172_s1 + $0x108] sm:$0xff]  ;;  %v58_v10 = vld [vmem:[%s3172_s1 + $0xf0] sm:$0xff]  ;;  %v59_v11 = vld [vmem:[%s3172_s1 + $0xf8] sm:$0xff] }
   0x5   :  { %126 = vmatpush.msra.mxu1 %v71_v3  ;;  %1569 = vmatpush.msra.mxu3 %v71_v3  ;;  %v55_v12 = vld [vmem:[%s3172_s1 + $0xd8] sm:$0xff]  ;;  %v56_v13 = vld [vmem:[%s3172_s1 + $0xe0] sm:$0xff]  ;;  %v53_v15 = vld [vmem:[%s3172_s1 + $0xc8] sm:$0xff] }
   0x6   :  { %86 = vmatpush.msra.mxu0 %v67_v4  ;;  %1554 = vmatpush.msra.mxu2 %v67_v4  ;;  %v52_v14 = vld [vmem:[%s3172_s1 + $0xc0] sm:$0xff]  ;;  %v49_v16 = vld [vmem:[%s3172_s1 + $0xa8] sm:$0xff]  ;;  %v50_v17 = vld [vmem:[%s3172_s1 + $0xb0] sm:$0xff] }
   0x7   :  { %127 = vmatpush.msra.mxu1 %v68_v5  ;;  %1570 = vmatpush.msra.mxu3 %v68_v5  ;;  %v46_v18 = vld [vmem:[%s3172_s1 + $0x90] sm:$0xff]  ;;  %v47_v19 = vld [vmem:[%s3172_s1 + $0x98] sm:$0xff]  ;;  %v44_v21 = vld [vmem:[%s3172_s1 + $0x80] sm:$0xff] }
   0x8   :  { %87 = vmatpush.msra.mxu0 %v64_v6  ;;  %1555 = vmatpush.msra.mxu2 %v64_v6  ;;  %v43_v20 = vld [vmem:[%s3172_s1 + $0x78] sm:$0xff]  ;;  %v40_v22 = vld [vmem:[%s3172_s1 + $0x60] sm:$0xff]  ;;  %v41_v23 = vld [vmem:[%s3172_s1 + $0x68] sm:$0xff] }
   0x9   :  { %128 = vmatpush.msra.mxu1 %v65_v7  ;;  %1571 = vmatpush.msra.mxu3 %v65_v7  ;;  %v37_v24 = vld [vmem:[%s3172_s1 + $0x48] sm:$0xff]  ;;  %v38_v25 = vld [vmem:[%s3172_s1 + $0x50] sm:$0xff]  ;;  %v35_v27 = vld [vmem:[%s3172_s1 + $0x38] sm:$0xff] }
   0xa   :  { %88 = vmatpush.msra.mxu0 %v61_v8  ;;  %1556 = vmatpush.msra.mxu2 %v61_v8  ;;  %v34_v26 = vld [vmem:[%s3172_s1 + $0x30] sm:$0xff]  ;;  %v31_v28 = vld [vmem:[%s3172_s1 + $0x18] sm:$0xff]  ;;  %v32_v29 = vld [vmem:[%s3172_s1 + $0x20] sm:$0xff] }
   0xb   :  { %129 = vmatpush.msra.mxu1 %v62_v9  ;;  %1572 = vmatpush.msra.mxu3 %v62_v9  ;;  %v28_v30 = vld [vmem:[%s3172_s1] sm:$0xff]  ;;  %v29_v31 = vld [vmem:[%s3172_s1 + $0x8] sm:$0xff]  ;;  %v75_v34 = vld [vmem:[%s3172_s1 + $0x178] sm:$0xff] }
   0xc   :  { %89 = vmatpush.msra.mxu0 %v58_v10  ;;  %1557 = vmatpush.msra.mxu2 %v58_v10  ;;  %v20_v32 = vld [vmem:[%s3173_s0] sm:$0xff]  ;;  %v69_v36 = vld [vmem:[%s3172_s1 + $0x148] sm:$0xff]  ;;  %v66_v37 = vld [vmem:[%s3172_s1 + $0x130] sm:$0xff] }
   0xd   :  { %130 = vmatpush.msra.mxu1 %v59_v11  ;;  %1573 = vmatpush.msra.mxu3 %v59_v11  ;;  %v1764_v33 = vld [vmem:[%s3173_s0 + $0x20] sm:$0xff]  ;;  %v21_v38 = vld [vmem:[%s3173_s0 + $0x8] sm:$0xff]  ;;  %v63_v40 = vld [vmem:[%s3172_s1 + $0x118] sm:$0xff] }
   0xe   :  { %90 = vmatpush.msra.mxu0 %v55_v12  ;;  %1558 = vmatpush.msra.mxu2 %v55_v12  ;;  %v72_v35 = vld [vmem:[%s3172_s1 + $0x160] sm:$0xff]  ;;  %v25_v39 = vld [vmem:[%s3173_s0 + $0x28] sm:$0xff]  ;;  %v54_v43 = vld [vmem:[%s3172_s1 + $0xd0] sm:$0xff] }
   0xf   :  { %131 = vmatpush.msra.mxu1 %v56_v13  ;;  %1574 = vmatpush.msra.mxu3 %v56_v13  ;;  %v60_v41 = vld [vmem:[%s3172_s1 + $0x100] sm:$0xff]  ;;  %v57_v42 = vld [vmem:[%s3172_s1 + $0xe8] sm:$0xff]  ;;  %v22_v44 = vld [vmem:[%s3173_s0 + $0x10] sm:$0xff] }
  0x10   :  { %91 = vmatpush.msra.mxu0 %v52_v14  ;;  %1559 = vmatpush.msra.mxu2 %v52_v14  ;;  %v26_v45 = vld [vmem:[%s3173_s0 + $0x30] sm:$0xff]  ;;  %v51_v46 = vld [vmem:[%s3172_s1 + $0xb8] sm:$0xff]  ;;  %v48_v47 = vld [vmem:[%s3172_s1 + $0xa0] sm:$0xff] }
  0x11   :  { %132 = vmatpush.msra.mxu1 %v53_v15  ;;  %1575 = vmatpush.msra.mxu3 %v53_v15  ;;  %v45_v48 = vld [vmem:[%s3172_s1 + $0x88] sm:$0xff]  ;;  %v42_v49 = vld [vmem:[%s3172_s1 + $0x70] sm:$0xff]  ;;  %v23_v50 = vld [vmem:[%s3173_s0 + $0x18] sm:$0xff] }
  0x12   :  { %92 = vmatpush.msra.mxu0 %v49_v16  ;;  %1560 = vmatpush.msra.mxu2 %v49_v16  ;;  %v27_v51 = vld [vmem:[%s3173_s0 + $0x38] sm:$0xff]  ;;  %v36_v53 = vld [vmem:[%s3172_s1 + $0x40] sm:$0xff]  ;;  %v33_v54 = vld [vmem:[%s3172_s1 + $0x28] sm:$0xff] }
  0x13   :  { %133 = vmatpush.msra.mxu1 %v50_v17  ;;  %1576 = vmatpush.msra.mxu3 %v50_v17  ;;  %v39_v52 = vld [vmem:[%s3172_s1 + $0x58] sm:$0xff]  ;;  %v30_v55 = vld [vmem:[%s3172_s1 + $0x10] sm:$0xff]  ;;  %v1838_v56 = vld [vmem:[%s3174_s2] sm:$0x7] }
  0x14   :  { %93 = vmatpush.msra.mxu0 %v46_v18  ;;  %1561 = vmatpush.msra.mxu2 %v46_v18  ;;  %v1841_v57 = vperm.slane %v1838_v56, 0  ;;  %v1844_v58 = vperm.slane %v1838_v56, 1  ;;  %v1278_v8 = vld [vmem:[%s3175_s3 + $0x78] sm:$0xff] }
  0x15   :  { %134 = vmatpush.msra.mxu1 %v47_v19  ;;  %1577 = vmatpush.msra.mxu3 %v47_v19  ;;  %v1535_v9 = vld [vmem:[%s3175_s3 + $0xf8] sm:$0xff] }
  0x16   :  { %94 = vmatpush.msra.mxu0 %v43_v20  ;;  %1562 = vmatpush.msra.mxu2 %v43_v20 }
  0x17   :  { %135 = vmatpush.msra.mxu1 %v44_v21  ;;  %1578 = vmatpush.msra.mxu3 %v44_v21 }
  0x18   :  { %95 = vmatpush.msra.mxu0 %v40_v22  ;;  %1563 = vmatpush.msra.mxu2 %v40_v22 }
  0x19   :  { %136 = vmatpush.msra.mxu1 %v41_v23  ;;  %1579 = vmatpush.msra.mxu3 %v41_v23 }
  0x1a   :  { %96 = vmatpush.msra.mxu0 %v37_v24  ;;  %1564 = vmatpush.msra.mxu2 %v37_v24 }
  0x1b   :  { %137 = vmatpush.msra.mxu1 %v38_v25  ;;  %1580 = vmatpush.msra.mxu3 %v38_v25 }
  0x1c   :  { %97 = vmatpush.msra.mxu0 %v34_v26  ;;  %1565 = vmatpush.msra.mxu2 %v34_v26 }
  0x1d   :  { %138 = vmatpush.msra.mxu1 %v35_v27  ;;  %1581 = vmatpush.msra.mxu3 %v35_v27 }
  0x1e   :  { %98 = vmatpush.msra.mxu0 %v31_v28  ;;  %1566 = vmatpush.msra.mxu2 %v31_v28 }
  0x1f   :  { %139 = vmatpush.msra.mxu1 %v32_v29  ;;  %1582 = vmatpush.msra.mxu3 %v32_v29 }
  0x20   :  { %99 = vmatpush.msra.mxu0 %v28_v30  ;;  %1567 = vmatpush.msra.mxu2 %v28_v30 }
  0x21   :  { %140 = vmatpush.msra.mxu1 %v29_v31  ;;  %100 = vmatmul.f32.vlgmr.msra.gmra.mxu0 %v20_v32 }
  0x22   :  { %112 = vmatmul.f32.vlgmr.msra.gmra.mxu2 %v1764_v33  ;;  %141 = vmatmul.f32.vlgmr.msra.gmra.mxu1 %v20_v32 }
  0x23   :  { %166 = vmatpush.msrb.mxu2 %v75_v34  ;;  %1583 = vmatpush.msra.mxu3 %v29_v31 }
  0x24   :  { %153 = vmatmul.f32.vlgmr.msra.gmra.mxu3 %v1764_v33  ;;  %1337 = vmatpush.msrb.mxu0 %v1535_v9 }
  0x25   :  { %167 = vmatpush.msrb.mxu2 %v72_v35  ;;  %1279 = vmatpush.msrb.mxu3 %v1278_v8  ;;  %v1273_v8 = vld [vmem:[%s3175_s3 + $0x50] sm:$0xff] }
  0x27   :  { %168 = vmatpush.msrb.mxu2 %v69_v36 }
  0x29   :  { %169 = vmatpush.msrb.mxu2 %v66_v37  ;;  %103 = vmatmul.f32.gmra.mxu0 %v21_v38 }
  0x2a   :  { %115 = vmatmul.f32.gmra.mxu2 %v25_v39  ;;  %144 = vmatmul.f32.gmra.mxu1 %v21_v38 }
  0x2b   :  { %170 = vmatpush.msrb.mxu2 %v63_v40 }
  0x2c   :  { %156 = vmatmul.f32.gmra.mxu3 %v25_v39 }
  0x2d   :  { %171 = vmatpush.msrb.mxu2 %v60_v41 }
  0x2f   :  { %172 = vmatpush.msrb.mxu2 %v57_v42  ;;  %v1276_v42 = vld [vmem:[%s3175_s3 + $0x68] sm:$0xff] }
  0x31   :  { %173 = vmatpush.msrb.mxu2 %v54_v43  ;;  %106 = vmatmul.f32.gmra.mxu0 %v22_v44  ;;  %v1533_v43 = vld [vmem:[%s3175_s3 + $0xe8] sm:$0xff] }
  0x32   :  { %118 = vmatmul.f32.gmra.mxu2 %v26_v45  ;;  %147 = vmatmul.f32.gmra.mxu1 %v22_v44 }
  0x33   :  { %174 = vmatpush.msrb.mxu2 %v51_v46 }
  0x34   :  { %159 = vmatmul.f32.gmra.mxu3 %v26_v45 }
  0x35   :  { %175 = vmatpush.msrb.mxu2 %v48_v47  ;;  %v1532_v47 = vld [vmem:[%s3175_s3 + $0xe0] sm:$0xff] }
  0x37   :  { %176 = vmatpush.msrb.mxu2 %v45_v48 }
  0x39   :  { %177 = vmatpush.msrb.mxu2 %v42_v49  ;;  %109 = vmatmul.f32.gmra.mxu0 %v23_v50 }
  0x3a   :  { %121 = vmatmul.f32.gmra.mxu2 %v27_v51  ;;  %150 = vmatmul.f32.gmra.mxu1 %v23_v50 }
  0x3b   :  { %178 = vmatpush.msrb.mxu2 %v39_v52 }
  0x3c   :  { %162 = vmatmul.f32.gmra.mxu3 %v27_v51 }
  0x3d   :  { %179 = vmatpush.msrb.mxu2 %v36_v53 }
  0x3f   :  { %180 = vmatpush.msrb.mxu2 %v33_v54 }
  0x41   :  { %181 = vmatpush.msrb.mxu2 %v30_v55 }
  0x42   :  { %182 = vmatmul.f32.vlgmr.msrb.gmra.mxu2 %v20_v32  ;;  %v1277_v32 = vld [vmem:[%s3175_s3 + $0x70] sm:$0xff] }
  0x43   :  { %1280 = vmatpush.msrb.mxu3 %v1277_v32 }
  0x45   :  { %1281 = vmatpush.msrb.mxu3 %v1276_v42 }
  0x4a   :  { %185 = vmatmul.f32.gmra.mxu2 %v21_v38 }
  0x52   :  { %188 = vmatmul.f32.gmra.mxu2 %v22_v44  ;;  %v1275_v44 = vld [vmem:[%s3175_s3 + $0x60] sm:$0xff] }
  0x53   :  { %1282 = vmatpush.msrb.mxu3 %v1275_v44  ;;  %v1526_v44 = vld [vmem:[%s3175_s3 + $0xb0] sm:$0xff] }
  0x5a   :  { %191 = vmatmul.f32.gmra.mxu2 %v23_v50 }
  0x62   :  { %194 = vmatmul.f32.gmra.mxu2 %v1764_v33  ;;  %v1534_v33 = vld [vmem:[%s3175_s3 + $0xf0] sm:$0xff] }
  0x63   :  { %1338 = vmatpush.msrb.mxu0 %v1534_v33 }
  0x65   :  { %1339 = vmatpush.msrb.mxu0 %v1533_v43  ;;  %v1269_v43 = vld [vmem:[%s3175_s3 + $0x30] sm:$0xff] }
  0x67   :  { %1340 = vmatpush.msrb.mxu0 %v1532_v47 }
  0x6a   :  { %197 = vmatmul.f32.gmra.mxu2 %v25_v39 }
  0x72   :  { %200 = vmatmul.f32.gmra.mxu2 %v26_v45 }
  0x7a   :  { %203 = vmatmul.f32.gmra.mxu2 %v27_v51 }
  0x9e   :  { %v101_v59 = vpop.f32.mrf.mxu0 }
  0x9f   :  { %v1847_v60 = vadd.f32 %v101_v59, %v1841_v57  ;;  %v142_v61 = vpop.f32.mrf.mxu1 }
  0xa0   :  { %v1850_v62 = vadd.f32 %v142_v61, %v1844_v58  ;;  %v1274_v61 = vld [vmem:[%s3175_s3 + $0x58] sm:$0xff] }
  0xa1   :  { %v1853_v63 = vmul.f32 0.70710677, %v1847_v60  ;;  %1283 = vmatpush.msrb.mxu3 %v1274_v61 }
  0xa2   :  { %v1856_v0 = vmul.f32 0.70710677, %v1850_v62 }
  0xa3   :  { %v255_v1 = vmul.f32 %v1853_v63, %v1853_v63  ;;  %1284 = vmatpush.msrb.mxu3 %v1273_v8 }
  0xa4   :  { %v295_v2 = vmul.f32 %v1856_v0, %v1856_v0 }
  0xa5   :  { %v1862_v3 = vmin.f32 %v255_v1, 16.0  ;;  %v113_v4 = vpop.f32.mrf.mxu2  ;;  %v1531_v1 = vld [vmem:[%s3175_s3 + $0xd8] sm:$0xff] }
  0xa6   :  { %v1864_v5 = vmin.f32 %v295_v2, 16.0  ;;  %v1867_v6 = vadd.f32 %v113_v4, %v1841_v57  ;;  %v104_v7 = vpop.f32.mrf.mxu0  ;;  %1341 = vmatpush.msrb.mxu0 %v1531_v1 }
  0xa7   :  { %v257_v10 = vmul.f32 2.1237322e-06, %v1862_v3  ;;  %v268_v11 = vmul.f32 3.8918573e-05, %v1862_v3  ;;  %v1878_v12 = vadd.f32 %v104_v7, %v1841_v57  ;;  %v145_v35 = vpop.f32.mrf.mxu1  ;;  %v154_v33 = vpop.f32.mrf.mxu3 }
  0xa8   :  { %v297_v13 = vmul.f32 2.1237322e-06, %v1864_v5  ;;  %v308_v14 = vmul.f32 3.8918573e-05, %v1864_v5  ;;  %v1883_v17 = vmul.f32 0.70710677, %v1867_v6  ;;  %v1910_v41 = vadd.f32 %v145_v35, %v1844_v58 }
  0xa9   :  { %v258_v15 = vadd.f32 0.00028619796, %v257_v10  ;;  %v269_v16 = vadd.f32 0.001143296, %v268_v11  ;;  %v1886_v20 = vmul.f32 0.70710677, %v1878_v12  ;;  %v1995_v47 = vadd.f32 %v154_v33, %v1844_v58 }
  0xaa   :  { %v298_v18 = vadd.f32 0.00028619796, %v297_v13  ;;  %v309_v19 = vadd.f32 0.001143296, %v308_v14  ;;  %v735_v22 = vmul.f32 %v1883_v17, %v1883_v17  ;;  %v1932_v54 = vmul.f32 0.70710677, %v1910_v41 }
  0xab   :  { %v270_v21 = vmul.f32 %v269_v16, %v1862_v3  ;;  %v259_v24 = vmul.f32 %v258_v15, %v1862_v3  ;;  %v375_v30 = vmul.f32 %v1886_v20, %v1886_v20  ;;  %v1530_v13 = vld [vmem:[%s3175_s3 + $0xd0] sm:$0xff]  ;;  %v1272_v16 = vld [vmem:[%s3175_s3 + $0x48] sm:$0xff]  ;;  %v2020_v8 = vmul.f32 0.5, %v1867_v6 }
  0xac   :  { %v310_v23 = vmul.f32 %v309_v19, %v1864_v5  ;;  %v299_v27 = vmul.f32 %v298_v18, %v1864_v5  ;;  %v1894_v29 = vmin.f32 %v735_v22, 16.0  ;;  %v415_v11 = vmul.f32 %v1932_v54, %v1932_v54  ;;  %1342 = vmatpush.msrb.mxu0 %v1530_v13  ;;  %v1529_v18 = vld [vmem:[%s3175_s3 + $0xc8] sm:$0xff]  ;;  %1285 = vmatpush.msrb.mxu3 %v1272_v16 }
  0xad   :  { %v271_v25 = vadd.f32 0.014752088, %v270_v21  ;;  %v116_v26 = vpop.f32.mrf.mxu2  ;;  %v260_v36 = vadd.f32 0.0036580483, %v259_v24  ;;  %v1907_v39 = vmin.f32 %v375_v30, 16.0  ;;  %v1271_v24 = vld [vmem:[%s3175_s3 + $0x40] sm:$0xff] }
  0xae   :  { %v311_v28 = vadd.f32 0.014752088, %v310_v23  ;;  %3187 = vst [vmem:[#allocation2_spill] sm:$0xff] %v1894_v29  ;;  %v300_v37 = vadd.f32 0.0036580483, %v299_v27  ;;  %v1942_v7 = vadd.f32 %v116_v26, %v1841_v57  ;;  %v107_v21 = vpop.f32.mrf.mxu0  ;;  %1343 = vmatpush.msrb.mxu0 %v1529_v18  ;;  %1286 = vmatpush.msrb.mxu3 %v1271_v24 }
  0xaf   :  { %v272_v31 = vmul.f32 %v271_v25, %v1862_v3  ;;  %v737_v38 = vmul.f32 2.1237322e-06, %v1894_v29  ;;  %v377_v46 = vmul.f32 2.1237322e-06, %v1907_v39  ;;  %v261_v48 = vmul.f32 %v260_v36, %v1862_v3  ;;  %v1528_v25 = vld [vmem:[%s3175_s3 + $0xc0] sm:$0xff]  ;;  %v148_v42 = vpop.f32.mrf.mxu1  ;;  %3188 = vst [vmem:[#allocation3_spill] sm:$0xff] %v2020_v8 }
  0xb0   :  { %v312_v34 = vmul.f32 %v311_v28, %v1864_v5  ;;  %v301_v50 = vmul.f32 %v300_v37, %v1864_v5  ;;  %v1963_v23 = vmul.f32 0.70710677, %v1942_v7  ;;  %v1972_v28 = vmin.f32 %v415_v11, 16.0  ;;  %1344 = vmatpush.msrb.mxu0 %v1528_v25  ;;  %v1527_v37 = vld [vmem:[%s3175_s3 + $0xb8] sm:$0xff] }
  0xb1   :  { %v273_v40 = vadd.f32 0.112945676, %v272_v31  ;;  %v738_v53 = vadd.f32 0.00028619796, %v737_v38  ;;  %v378_v59 = vadd.f32 0.00028619796, %v377_v46  ;;  %v108_v32 = vadd.f32 %v107_v21, %v1841_v57 }
  0xb2   :  { %v313_v45 = vadd.f32 0.112945676, %v312_v34  ;;  %v262_v2 = vadd.f32 0.05243302, %v261_v48  ;;  %v302_v4 = vadd.f32 0.05243302, %v301_v50  ;;  %1345 = vmatpush.msrb.mxu0 %v1527_v37  ;;  %v2013_v1 = vadd.f32 %v148_v42, %v1844_v58 }
  0xb3   :  { %v274_v52 = vmul.f32 %v273_v40, %v1862_v3  ;;  %v739_v10 = vmul.f32 %v738_v53, %v1894_v29  ;;  %v379_v15 = vmul.f32 %v378_v59, %v1907_v39  ;;  %v1270_v34 = vld [vmem:[%s3175_s3 + $0x38] sm:$0xff]  ;;  %v417_v36 = vmul.f32 2.1237322e-06, %v1972_v28  ;;  %v1525_v53 = vld [vmem:[%s3175_s3 + $0xa8] sm:$0xff] }
  0xb4   :  { %v314_v55 = vmul.f32 %v313_v45, %v1864_v5  ;;  %v263_v19 = vmul.f32 %v262_v2, %v1862_v3  ;;  %v303_v22 = vmul.f32 %v302_v4, %v1864_v5  ;;  %1287 = vmatpush.msrb.mxu3 %v1270_v34  ;;  %v855_v40 = vmul.f32 %v1963_v23, %v1963_v23  ;;  %v1266_v21 = vld [vmem:[%s3175_s3 + $0x18] sm:$0xff] }
  0xb5   :  { %v119_v49 = vpop.f32.mrf.mxu2  ;;  %v275_v9 = vadd.f32 0.4994258, %v274_v52  ;;  %v740_v27 = vadd.f32 0.0036580483, %v739_v10  ;;  %v380_v31 = vadd.f32 0.0036580483, %v379_v15  ;;  %1346 = vmatpush.msrb.mxu0 %v1526_v44 }
  0xb6   :  { %v1928_v51 = vadd.f32 %v119_v49, %v1841_v57  ;;  %v315_v14 = vadd.f32 0.4994258, %v314_v55  ;;  %v264_v35 = vadd.f32 0.18741608, %v263_v19  ;;  %v304_v38 = vadd.f32 0.18741608, %v303_v22  ;;  %1288 = vmatpush.msrb.mxu3 %v1269_v43 }
  0xb7   :  { %v276_v26 = vmul.f32 %v275_v9, %v1862_v3  ;;  %v741_v46 = vmul.f32 %v740_v27, %v1894_v29  ;;  %v381_v49 = vmul.f32 %v380_v31, %v1907_v39  ;;  %v2000_v50 = vmul.f32 0.70710677, %v108_v32  ;;  %v1268_v52 = vld [vmem:[%s3175_s3 + $0x28] sm:$0xff]  ;;  %1347 = vmatpush.msrb.mxu0 %v1525_v53  ;;  %v1523_v22 = vld [vmem:[%s3175_s3 + $0x98] sm:$0xff]  ;;  %v110_v27 = vpop.f32.mrf.mxu0 }
  0xb8   :  { %v316_v30 = vmul.f32 %v315_v14, %v1864_v5  ;;  %v2009_v55 = vmul.f32 0.5, %v1847_v60  ;;  %v265_v59 = vmul.f32 %v264_v35, %v1862_v3  ;;  %v418_v61 = vadd.f32 0.00028619796, %v417_v36  ;;  %1289 = vmatpush.msrb.mxu3 %v1268_v52  ;;  %v1267_v60 = vld [vmem:[%s3175_s3 + $0x20] sm:$0xff]  ;;  %v151_v35 = vpop.f32.mrf.mxu1  ;;  %v1521_v53 = vld [vmem:[%s3175_s3 + $0x88] sm:$0xff] }
  0xb9   :  { %v1991_v45 = vadd.f32 1.0, %v276_v26  ;;  %v2016_v2 = vmul.f32 0.5, %v1850_v62  ;;  %v305_v4 = vmul.f32 %v304_v38, %v1864_v5  ;;  %v2022_v9 = vmin.f32 %v855_v40, 16.0  ;;  %v1524_v3 = vld [vmem:[%s3175_s3 + $0xa0] sm:$0xff] }
  0xba   :  { %v1997_v48 = vadd.f32 1.0, %v316_v30  ;;  %v742_v62 = vadd.f32 0.05243302, %v741_v46  ;;  %v2032_v10 = vmul.f32 0.5, %v1878_v12  ;;  %v2035_v5 = vmul.f32 0.70710677, %v1995_v47  ;;  %1290 = vmatpush.msrb.mxu3 %v1267_v60  ;;  %1348 = vmatpush.msrb.mxu0 %v1524_v3 }
  0xbb   :  { %1584 = vrcp.f32 %v1991_v45  ;;  %v382_v6 = vadd.f32 0.05243302, %v381_v49  ;;  %v495_v11 = vmul.f32 %v2000_v50, %v2000_v50  ;;  %v2041_v13 = vmul.f32 0.70710677, %v1928_v51 }
  0xbc   :  { %3189 = vst [vmem:[#allocation4_spill] sm:$0xff] %v2032_v10  ;;  %1586 = vrcp.f32 %v1997_v48  ;;  %v266_v14 = vadd.f32 1.1283791, %v265_v59  ;;  %v2044_v15 = vmul.f32 0.5, %v1910_v41  ;;  %v419_v12 = vmul.f32 %v418_v61, %v1972_v28  ;;  %1291 = vmatpush.msrb.mxu3 %v1266_v21  ;;  %1349 = vmatpush.msrb.mxu0 %v1523_v22  ;;  %v1520_v22 = vld [vmem:[%s3175_s3 + $0x80] sm:$0xff] }
  0xbd   :  { %v2048_v16 = vmul.f32 0.70710677, %v2013_v1  ;;  %v306_v18 = vadd.f32 1.1283791, %v305_v4  ;;  %v857_v19 = vmul.f32 2.1237322e-06, %v2022_v9  ;;  %v775_v26 = vmul.f32 %v2035_v5, %v2035_v5  ;;  %v122_v21 = vpop.f32.mrf.mxu2 }
  0xbe   :  { %3190 = vst [vmem:[#allocation5_spill] sm:$0xff] %v2044_v15  ;;  %v289_v24 = vand.u32 2147483648, %v1991_v45  ;;  %v2059_v41 = vmul.f32 0.5, %v1942_v7  ;;  %v2061_v25 = vmul.f32 0.5, %v108_v32  ;;  %v743_v30 = vmul.f32 %v742_v62, %v1894_v29  ;;  %v1265_v7 = vld [vmem:[%s3175_s3 + $0x10] sm:$0xff] }
  0xbf   :  { %v383_v31 = vmul.f32 %v382_v6, %v1907_v39  ;;  %v2067_v33 = vmin.f32 %v495_v11, 16.0  ;;  %v975_v34 = vmul.f32 %v2041_v13, %v2041_v13  ;;  %v1522_v32 = vld [vmem:[%s3175_s3 + $0x90] sm:$0xff]  ;;  %v2080_v37 = vmul.f32 %v266_v14, %v1853_v63  ;;  %1292 = vmatpush.msrb.mxu3 %v1265_v7  ;;  %v1264_v63 = vld [vmem:[%s3175_s3 + $0x8] sm:$0xff]  ;;  %v1263_v11 = vld [vmem:[%s3175_s3] sm:$0xff] }
  0xc0   :  { %3191 = vst [vmem:[#allocation6_spill] sm:$0xff] %v2059_v41  ;;  %v420_v40 = vadd.f32 0.0036580483, %v419_v12  ;;  %v535_v42 = vmul.f32 %v2048_v16, %v2048_v16  ;;  %1350 = vmatpush.msrb.mxu0 %v1522_v32  ;;  %v2088_v44 = vmul.f32 %v306_v18, %v1856_v0  ;;  %v858_v46 = vadd.f32 0.00028619796, %v857_v19 }
  0xc1   :  { %3192 = vst [vmem:[#allocation7_spill] sm:$0xff] %v2061_v25  ;;  %v2077_v36 = vpop.eup %1584  ;;  %v497_v49 = vmul.f32 2.1237322e-06, %v2067_v33  ;;  %v2092_v52 = vadd.f32 %v110_v27, %v1841_v57  ;;  %v2100_v59 = vor.u32 1.1754944e-38, %v289_v24  ;;  %v327_v61 = vand.u32 2147483647, %v1997_v48  ;;  %1293 = vmatpush.msrb.mxu3 %v1264_v63 }
  0xc2   :  { %v2085_v43 = vpop.eup %1586  ;;  %v329_v0 = vand.u32 2147483648, %v1997_v48  ;;  %v2105_v4 = vadd.f32 %v151_v35, %v1844_v58  ;;  %1351 = vmatpush.msrb.mxu0 %v1521_v53  ;;  %v279_v60 = vmul.f32 %v2077_v36, %v1991_v45  ;;  %v744_v3 = vadd.f32 0.18741608, %v743_v30 }
  0xc3   :  { %v384_v62 = vadd.f32 0.18741608, %v383_v31  ;;  %v2109_v6 = vmin.f32 %v975_v34, 16.0  ;;  %v319_v14 = vmul.f32 %v2085_v43, %v1997_v48  ;;  %v421_v12 = vmul.f32 %v420_v40, %v1972_v28  ;;  %1294 = vmatpush.msrb.mxu3 %v1263_v11  ;;  %v157_v40 = vpop.f32.mrf.mxu3 }
  0xc4   :  { %v2117_v18 = vmin.f32 %v535_v42, 16.0  ;;  %v2120_v19 = vmul.f32 0.70710677, %v2092_v52  ;;  %v859_v24 = vmul.f32 %v858_v46, %v2022_v9  ;;  %v498_v27 = vadd.f32 0.00028619796, %v497_v49  ;;  %1352 = vmatpush.msrb.mxu0 %v1520_v22 }
  0xc5   :  { %v2126_v30 = vmin.f32 %v775_v26, 16.0  ;;  %v2129_v31 = vmul.f32 0.70710677, %v2105_v4  ;;  %v2131_v34 = vor.u32 1.1754944e-38, %v329_v0  ;;  %v2134_v35 = vmul.f32 0.5, %v2013_v1 }
  0xc6   :  { %v537_v7 = vmul.f32 2.1237322e-06, %v2117_v18  ;;  %v615_v32 = vmul.f32 %v2120_v19, %v2120_v19  ;;  %vm283_vm0 = vweird.f32 %v1991_v45  ;;  %v977_v26 = vmul.f32 2.1237322e-06, %v2109_v6 }
  0xc7   :  { %3193 = vst [vmem:[#allocation8_spill] sm:$0xff] %v2134_v35  ;;  %v777_v42 = vmul.f32 2.1237322e-06, %v2126_v30  ;;  %v655_v46 = vmul.f32 %v2129_v31, %v2129_v31  ;;  %v2145_v49 = vadd.f32 %v122_v21, %v1841_v57  ;;  %v280_v1 = vsub.f32 1.0, %v279_v60 }
  0xc8   :  { %vm323_vm1 = vweird.f32 %v1997_v48  ;;  %v745_v63 = vmul.f32 %v744_v3, %v1894_v29  ;;  %v385_v53 = vmul.f32 %v384_v62, %v1907_v39  ;;  %v2151_v0 = vmul.f32 0.5, %v1928_v51 }
  0xc9   :  { %v320_v11 = vsub.f32 1.0, %v319_v14  ;;  %v422_v22 = vadd.f32 0.05243302, %v421_v12  ;;  %v860_v38 = vadd.f32 0.0036580483, %v859_v24  ;;  %v499_v41 = vmul.f32 %v498_v27, %v2067_v33 }
  0xca   :  { %3194 = vst [vmem:[#allocation9_spill] sm:$0xff] %v2151_v0  ;;  %v538_v8 = vadd.f32 0.00028619796, %v537_v7  ;;  %v2154_v35 = vmin.f32 %v615_v32, 16.0  ;;  %v2156_v57 = vmin.f32 %v655_v46, 16.0  ;;  %vm284_vm2 = vweird.f32 %v2077_v36  ;;  %v183_v0 = vpop.f32.mrf.mxu2 }
  0xcb   :  { %v2159_v60 = vmul.f32 0.70710677, %v2145_v49  ;;  %v978_v3 = vadd.f32 0.00028619796, %v977_v26  ;;  %v778_v62 = vadd.f32 0.00028619796, %v777_v42  ;;  %v2163_v51 = vadd.f32 %v157_v40, %v1844_v58  ;;  %vm2205_vm6 = vmor %vm283_vm0, %vm284_vm2 }
  0xcc   :  { %v746_v14 = vadd.f32 1.1283791, %v745_v63  ;;  %v617_v12 = vmul.f32 2.1237322e-06, %v2154_v35  ;;  %v657_v21 = vmul.f32 2.1237322e-06, %v2156_v57  ;;  %v281_v27 = vmul.f32 %v2077_v36, %v280_v1 }
  0xcd   :  { %3195 = vst [vmem:[#allocation10_spill] sm:$0xff] %v2159_v60  ;;  %v1095_v24 = vmul.f32 %v2159_v60, %v2159_v60  ;;  %v386_v7 = vadd.f32 1.1283791, %v385_v53  ;;  %v861_v32 = vmul.f32 %v860_v38, %v2022_v9  ;;  %v500_v46 = vadd.f32 0.0036580483, %v499_v41 }
  0xce   :  { %v321_v26 = vmul.f32 %v2085_v43, %v320_v11  ;;  %v423_v42 = vmul.f32 %v422_v22, %v1972_v28  ;;  %v539_v40 = vmul.f32 %v538_v8, %v2117_v18  ;;  %v3197_v25 = vand.u32 2147483647, %v1991_v45 }
  0xcf   :  { %v2174_v63 = vmin.f32 %v1095_v24, 16.0  ;;  %vm2182_vm4 = vcmp.eq.f32.partialorder %v327_v61, 8.507059e+37  ;;  %v979_v41 = vmul.f32 %v978_v3, %v2109_v6  ;;  %v779_v38 = vmul.f32 %v778_v62, %v2126_v30  ;;  %v160_v61 = vpop.f32.mrf.mxu3 }
  0xd0   :  { %vm2178_vm3 = vcmp.eq.f32.partialorder %v3197_v25, 8.507059e+37  ;;  %v2189_v53 = vmul.f32 0.70710677, %v2163_v51  ;;  %v2192_v8 = vperm.slane %v1838_v56, 2  ;;  %vm324_vm5 = vweird.f32 %v2085_v43 }
  0xd1   :  { %3196 = vst [vmem:[#allocation11_spill] sm:$0xff] %v2174_v63  ;;  %v618_v25 = vadd.f32 0.00028619796, %v617_v12  ;;  %v658_v11 = vadd.f32 0.00028619796, %v657_v21  ;;  %v282_v24 = vadd.f32 %v2077_v36, %v281_v27  ;;  %v501_v3 = vmul.f32 %v500_v46, %v2067_v33  ;;  %vm2215_vm7 = vmor %vm323_vm1, %vm324_vm5 }
  0xd2   :  { %v1097_v22 = vmul.f32 2.1237322e-06, %v2174_v63  ;;  %v862_v29 = vadd.f32 0.05243302, %v861_v32  ;;  %v2199_v62 = vadd.f32 %v183_v0, %v2192_v8  ;;  %v322_v12 = vadd.f32 %v2085_v43, %v321_v26 }
  0xd3   :  { %v2211_v21 = vmul.f32 %v746_v14, %v1883_v17  ;;  %v424_v27 = vadd.f32 0.18741608, %v423_v42  ;;  %v540_v32 = vadd.f32 0.0036580483, %v539_v40  ;;  %v980_v46 = vadd.f32 0.0036580483, %v979_v41 }
  0xd4   :  { %v780_v10 = vadd.f32 0.0036580483, %v779_v38  ;;  %v895_v45 = vmul.f32 %v2189_v53, %v2189_v53  ;;  %v2222_v60 = vadd.f32 %v160_v61, %v1844_v58  ;;  %v619_v26 = vmul.f32 %v618_v25, %v2154_v35 }
  0xd5   :  { %v659_v17 = vmul.f32 %v658_v11, %v2156_v57  ;;  %v1098_v14 = vadd.f32 0.00028619796, %v1097_v22  ;;  %v2227_v42 = vmul.f32 0.70710677, %v2199_v62  ;;  %v286_v48 = vsel %vm2205_vm6, %v2077_v36, %v282_v24 }
  0xd6   :  { %v2233_v40 = vmul.f32 %v386_v7, %v1886_v20  ;;  %v863_v41 = vmul.f32 %v862_v29, %v2022_v9  ;;  %v502_v38 = vadd.f32 0.05243302, %v501_v3  ;;  %v326_v25 = vsel %vm2215_vm7, %v2085_v43, %v322_v12 }
  0xd7   :  { %v425_v11 = vmul.f32 %v424_v27, %v1972_v28  ;;  %v541_v22 = vmul.f32 %v540_v32, %v2117_v18  ;;  %v335_v61 = vmul.f32 %v2227_v42, %v2227_v42  ;;  %v981_v56 = vmul.f32 %v980_v46, %v2109_v6 }
  0xd8   :  { %v781_v36 = vmul.f32 %v780_v10, %v2126_v30  ;;  %v2245_v20 = vmin.f32 %v895_v45, 16.0  ;;  %v2248_v29 = vmul.f32 0.70710677, %v2222_v60  ;;  %v620_v7 = vadd.f32 0.0036580483, %v619_v26 }
  0xd9   :  { %v660_v24 = vadd.f32 0.0036580483, %v659_v17  ;;  %v1099_v43 = vmul.f32 %v1098_v14, %v2174_v63  ;;  %v2251_v3 = vmin.f32 %v335_v61, 16.0  ;;  %v864_v12 = vadd.f32 0.18741608, %v863_v41 }
  0xda   :  { %v503_v27 = vmul.f32 %v502_v38, %v2067_v33  ;;  %v2255_v32 = vmul.f32 0.5, %v1995_v47  ;;  %v897_v0 = vmul.f32 2.1237322e-06, %v2245_v20  ;;  %v291_v10 = vsel %vm2178_vm3, %v2100_v59, %v286_v48  ;;  %v186_v38 = vpop.f32.mrf.mxu2 }
  0xdb   :  { %v331_v46 = vsel %vm2182_vm4, %v2131_v34, %v326_v25  ;;  %v542_v45 = vadd.f32 0.05243302, %v541_v22  ;;  %v348_v26 = vmul.f32 3.8918573e-05, %v2251_v3  ;;  %v426_v17 = vadd.f32 1.1283791, %v425_v11 }
  0xdc   :  { %3206 = vst [vmem:[#allocation12_spill] sm:$0xff] %v2255_v32  ;;  %v982_v14 = vadd.f32 0.05243302, %v981_v56  ;;  %v782_v41 = vadd.f32 0.05243302, %v781_v36  ;;  %v1015_v47 = vmul.f32 %v2248_v29, %v2248_v29  ;;  %v621_v61 = vmul.f32 %v620_v7, %v2154_v35  ;;  %v1551_v11 = vld [vmem:[%s3175_s3 + $0x178] sm:$0xff] }
  0xdd   :  { %v661_v32 = vmul.f32 %v660_v24, %v2156_v57  ;;  %v1100_v15 = vadd.f32 0.0036580483, %v1099_v43  ;;  %v349_v59 = vadd.f32 0.001143296, %v348_v26  ;;  %v292_v48 = vmul.f32 %v291_v10, %v2080_v37  ;;  %1395 = vmatpush.msrb.mxu1 %v1551_v11 }
  0xde   :  { %v865_v34 = vmul.f32 %v864_v12, %v2022_v9  ;;  %v504_v1 = vadd.f32 0.18741608, %v503_v27  ;;  %v898_v25 = vadd.f32 0.00028619796, %v897_v0  ;;  %v543_v22 = vmul.f32 %v542_v45, %v2117_v18 }
  0xdf   :  { %v337_v56 = vmul.f32 2.1237322e-06, %v2251_v3  ;;  %v350_v36 = vmul.f32 %v349_v59, %v2251_v3  ;;  %v2278_v7 = vadd.f32 %v186_v38, %v2192_v8  ;;  %v2281_v37 = vmul.f32 %v331_v46, %v2088_v44 }
  0xe0   :  { %v983_v24 = vmul.f32 %v982_v14, %v2109_v6  ;;  %v783_v43 = vmul.f32 %v782_v41, %v2126_v30  ;;  %v2285_v12 = vmin.f32 %v1015_v47, 16.0  ;;  %v622_v27 = vadd.f32 0.05243302, %v621_v61  ;;  %v163_v47 = vpop.f32.mrf.mxu3 }
  0xe1   :  { %v662_v0 = vadd.f32 0.05243302, %v661_v32  ;;  %v1101_v10 = vmul.f32 %v1100_v15, %v2174_v63  ;;  %v351_v45 = vadd.f32 0.014752088, %v350_v36  ;;  %v2289_v26 = vmul.f32 %v426_v17, %v1932_v54 }
  0xe2   :  { %v866_v38 = vadd.f32 1.1283791, %v865_v34  ;;  %v899_v59 = vmul.f32 %v898_v25, %v2245_v20  ;;  %v1017_v44 = vmul.f32 2.1237322e-06, %v2285_v12  ;;  %v505_v46 = vmul.f32 %v504_v1, %v2067_v33 }
  0xe3   :  { %v544_v14 = vadd.f32 0.18741608, %v543_v22  ;;  %v338_v11 = vadd.f32 0.00028619796, %v337_v56  ;;  %v2295_v41 = vmul.f32 0.70710677, %v2278_v7  ;;  %v352_v54 = vmul.f32 %v351_v45, %v2251_v3 }
  0xe4   :  { %v984_v32 = vadd.f32 0.18741608, %v983_v24  ;;  %v784_v61 = vadd.f32 0.18741608, %v783_v43  ;;  %v2298_v15 = vmul.f32 0.5, %v2092_v52  ;;  %v623_v17 = vmul.f32 %v622_v27, %v2154_v35 }
  0xe5   :  { %v2303_v34 = vmul.f32 0.5, %v2105_v4  ;;  %v663_v1 = vmul.f32 %v662_v0, %v2156_v57  ;;  %v1102_v25 = vadd.f32 0.05243302, %v1101_v10  ;;  %v2307_v22 = vmul.f32 %v866_v38, %v1963_v23 }
  0xe6   :  { %v900_v56 = vadd.f32 0.0036580483, %v899_v59  ;;  %v1018_v36 = vadd.f32 0.00028619796, %v1017_v44  ;;  %v2310_v24 = vadd.f32 %v163_v47, %v1844_v58  ;;  %v506_v52 = vadd.f32 1.1283791, %v505_v46 }
  0xe7   :  { %v545_v43 = vmul.f32 %v544_v14, %v2117_v18  ;;  %v339_v45 = vmul.f32 %v338_v11, %v2251_v3  ;;  %v455_v4 = vmul.f32 %v2295_v41, %v2295_v41  ;;  %v985_v27 = vmul.f32 %v984_v32, %v2109_v6 }
  0xe8   :  { %3207 = vst [vmem:[#allocation13_spill] sm:$0xff] %v2310_v24  ;;  %v785_v0 = vmul.f32 %v784_v61, %v2126_v30  ;;  %v353_v10 = vadd.f32 0.112945676, %v352_v54  ;;  %v1496_v23 = vclamps-f32 %v292_v48, 1.0  ;;  %v624_v38 = vadd.f32 0.18741608, %v623_v17 }
  0xe9   :  { %v664_v59 = vadd.f32 0.18741608, %v663_v1  ;;  %v2319_v44 = vmul.f32 0.5, %v2145_v49  ;;  %v1103_v58 = vmul.f32 %v1102_v25, %v2174_v63  ;;  %v901_v46 = vmul.f32 %v900_v56, %v2245_v20  ;;  %v189_v25 = vpop.f32.mrf.mxu2 }
  0xea   :  { %v1019_v14 = vmul.f32 %v1018_v36, %v2285_v12  ;;  %v2325_v11 = vmul.f32 0.70710677, %v2310_v24  ;;  %v1215_v47 = vadd.f32 1.0, %v1496_v23  ;;  %v2328_v32 = vmul.f32 %v506_v52, %v2000_v50 }
  0xeb   :  { %3208 = vst [vmem:[#allocation14_spill] sm:$0xff] %v2319_v44  ;;  %v546_v61 = vadd.f32 1.1283791, %v545_v43  ;;  %v340_v48 = vadd.f32 0.0036580483, %v339_v45  ;;  %v2330_v54 = vmin.f32 %v455_v4, 16.0  ;;  %v354_v1 = vmul.f32 %v353_v10, %v2251_v3 }
  0xec   :  { %v986_v17 = vadd.f32 1.1283791, %v985_v27  ;;  %v786_v49 = vadd.f32 1.1283791, %v785_v0  ;;  %v1239_v56 = vmul.f32 %v1215_v47, %v2009_v55  ;;  %v625_v36 = vmul.f32 %v624_v38, %v2154_v35 }
  0xed   :  { %v1104_v44 = vadd.f32 0.18741608, %v1103_v58  ;;  %v2336_v24 = vmul.f32 0.5, %v2163_v51  ;;  %v1497_v50 = vclamps-f32 %v2281_v37, 1.0  ;;  %v665_v52 = vmul.f32 %v664_v59, %v2156_v57 }
  0xee   :  { %v902_v43 = vadd.f32 0.05243302, %v901_v46  ;;  %v1020_v45 = vadd.f32 0.0036580483, %v1019_v14  ;;  %v1135_v4 = vmul.f32 %v2325_v11, %v2325_v11  ;;  %1295 = vmatmul.f32.vlgmr.msrb.gmra.mxu3 %v1239_v56  ;;  %v2343_v27 = vmul.f32 %v546_v61, %v2048_v16 }
  0xef   :  { %3209 = vst [vmem:[#allocation15_spill] sm:$0xff] %v2336_v24  ;;  %v2346_v55 = vmul.f32 0.5, %v2199_v62  ;;  %v341_v0 = vmul.f32 %v340_v48, %v2251_v3  ;;  %v457_v51 = vmul.f32 2.1237322e-06, %v2330_v54  ;;  %v2351_v37 = vmul.f32 %v986_v17, %v2041_v13 }
  0xf0   :  { %v2354_v10 = vmul.f32 %v786_v49, %v2035_v5  ;;  %v355_v23 = vadd.f32 0.4994258, %v354_v1  ;;  %v2357_v38 = vmul.f32 0.5, %v2278_v7  ;;  %v626_v59 = vadd.f32 1.1283791, %v625_v36 }
  0xf1   :  { %3210 = vst [vmem:[#allocation16_spill] sm:$0xff] %v2351_v37  ;;  %v1105_v16 = vmul.f32 %v1104_v44, %v2174_v63  ;;  %v2361_v62 = vadd.f32 %v189_v25, %v2192_v8  ;;  %v1216_v58 = vadd.f32 1.0, %v1497_v50  ;;  %v666_v46 = vadd.f32 1.1283791, %v665_v52 }
  0xf2   :  { %3211 = vst [vmem:[#allocation17_spill] sm:$0xff] %v2357_v38  ;;  %v903_v14 = vmul.f32 %v902_v43, %v2245_v20  ;;  %v1021_v13 = vmul.f32 %v1020_v45, %v2285_v12  ;;  %v2365_v47 = vmin.f32 %v1135_v4, 16.0  ;;  %v342_v5 = vadd.f32 0.05243302, %v341_v0  ;;  %v192_v45 = vpop.f32.mrf.mxu2 }
  0xf3   :  { %v458_v61 = vadd.f32 0.00028619796, %v457_v51  ;;  %v1240_v48 = vmul.f32 %v1216_v58, %v2016_v2  ;;  %v388_v7 = vmul.f32 3.8918573e-05, %v1907_v39  ;;  %v356_v17 = vmul.f32 %v355_v23, %v2251_v3 }
  0xf4   :  { %v1137_v44 = vmul.f32 2.1237322e-06, %v2365_v47  ;;  %v428_v49 = vmul.f32 3.8918573e-05, %v1972_v28  ;;  %v508_v1 = vmul.f32 3.8918573e-05, %v2067_v33  ;;  %v2374_v25 = vmul.f32 %v626_v59, %v2120_v19 }
  0xf5   :  { %v1106_v56 = vadd.f32 1.1283791, %v1105_v16  ;;  %v2377_v36 = vmul.f32 0.70710677, %v2361_v62  ;;  %1353 = vmatmul.f32.vlgmr.msrb.gmra.mxu0 %v1240_v48  ;;  %v389_v50 = vadd.f32 0.001143296, %v388_v7  ;;  %v2380_v2 = vmul.f32 %v666_v46, %v2129_v31 }
  0xf6   :  { %v904_v52 = vadd.f32 0.18741608, %v903_v14  ;;  %v1022_v43 = vadd.f32 0.05243302, %v1021_v13  ;;  %v548_v4 = vmul.f32 3.8918573e-05, %v2117_v18  ;;  %v343_v0 = vmul.f32 %v342_v5, %v2251_v3 }
  0xf7   :  { %v459_v51 = vmul.f32 %v458_v61, %v2330_v54  ;;  %v390_v19 = vmul.f32 %v389_v50, %v1907_v39  ;;  %v429_v23 = vadd.f32 0.001143296, %v428_v49  ;;  %v2386_v59 = vadd.f32 1.0, %v356_v17  ;;  %v3214_v61 = vld [vmem:[#allocation10_spill] sm:$0xff] }
  0xf8   :  { %v2389_v16 = vmul.f32 0.5, %v2222_v60  ;;  %v1138_v58 = vadd.f32 0.00028619796, %v1137_v44  ;;  %v509_v31 = vadd.f32 0.001143296, %v508_v1  ;;  %v575_v46 = vmul.f32 %v2377_v36, %v2377_v36 }
  0xf9   :  { %v2394_v14 = vadd.f32 %v192_v45, %v2192_v8  ;;  %v391_v13 = vadd.f32 0.014752088, %v390_v19  ;;  %v430_v5 = vmul.f32 %v429_v23, %v1972_v28  ;;  %v2398_v48 = vmul.f32 %v1106_v56, %v3214_v61 }
  0xfa   :  { %3212 = vst [vmem:[#allocation18_spill] sm:$0xff] %v2389_v16  ;;  %v1023_v7 = vmul.f32 %v1022_v43, %v2285_v12  ;;  %v510_v17 = vmul.f32 %v509_v31, %v2067_v33  ;;  %v549_v60 = vadd.f32 0.001143296, %v548_v4  ;;  %v344_v49 = vadd.f32 0.18741608, %v343_v0 }
  0xfb   :  { %3213 = vst [vmem:[#allocation19_spill] sm:$0xff] %v2394_v14  ;;  %v460_v44 = vadd.f32 0.0036580483, %v459_v51  ;;  %v392_v1 = vmul.f32 %v391_v13, %v1907_v39  ;;  %v431_v50 = vadd.f32 0.014752088, %v430_v5  ;;  %1588 = vrcp.f32 %v2386_v59 }
  0xfc   :  { %3215 = vst [vmem:[#allocation10_spill] sm:$0xff] %v2398_v48  ;;  %v1139_v45 = vmul.f32 %v1138_v58, %v2365_v47  ;;  %v511_v19 = vadd.f32 0.014752088, %v510_v17  ;;  %v550_v23 = vmul.f32 %v549_v60, %v2117_v18  ;;  %v2406_v16 = vmin.f32 %v575_v46, 16.0 }
  0xfd   :  { %v2409_v56 = vmul.f32 0.70710677, %v2394_v14  ;;  %v393_v43 = vadd.f32 0.112945676, %v392_v1  ;;  %v432_v4 = vmul.f32 %v431_v50, %v1972_v28  ;;  %v905_v0 = vmul.f32 %v904_v52, %v2245_v20 }
  0xfe   :  { %v512_v51 = vmul.f32 %v511_v19, %v2067_v33  ;;  %v551_v31 = vadd.f32 0.014752088, %v550_v23  ;;  %v628_v13 = vmul.f32 3.8918573e-05, %v2154_v35  ;;  %v345_v58 = vmul.f32 %v344_v49, %v2251_v3 }
  0xff   :  { %3216 = vst [vmem:[#allocation20_spill] sm:$0xff] %v2409_v56  ;;  %v1024_v5 = vadd.f32 0.18741608, %v1023_v7  ;;  %v461_v61 = vmul.f32 %v460_v44, %v2330_v54  ;;  %v394_v46 = vmul.f32 %v393_v43, %v1907_v39  ;;  %v1140_v17 = vadd.f32 0.0036580483, %v1139_v45 }
 0x100   :  { %v433_v60 = vadd.f32 0.112945676, %v432_v4  ;;  %v513_v14 = vadd.f32 0.112945676, %v512_v51  ;;  %v552_v1 = vmul.f32 %v551_v31, %v2117_v18  ;;  %v2420_v50 = vmul.f32 0.5, %v2361_v62  ;;  %v1550_v31 = vld [vmem:[%s3175_s3 + $0x170] sm:$0xff] }
 0x101   :  { %v577_v52 = vmul.f32 2.1237322e-06, %v2406_v16  ;;  %v695_v19 = vmul.f32 %v2409_v56, %v2409_v56  ;;  %v395_v23 = vadd.f32 0.4994258, %v394_v46  ;;  %v2425_v3 = vpop.eup %1588  ;;  %v629_v45 = vadd.f32 0.001143296, %v628_v13  ;;  %1396 = vmatpush.msrb.mxu1 %v1550_v31 }
 0x102   :  { %3217 = vst [vmem:[#allocation21_spill] sm:$0xff] %v2420_v50  ;;  %v434_v7 = vmul.f32 %v433_v60, %v1972_v28  ;;  %v514_v49 = vmul.f32 %v513_v14, %v2067_v33  ;;  %v553_v44 = vadd.f32 0.112945676, %v552_v1  ;;  %v906_v43 = vadd.f32 1.1283791, %v905_v0  ;;  %v1549_v46 = vld [vmem:[%s3175_s3 + $0x168] sm:$0xff] }
 0x103   :  { %v346_v4 = vadd.f32 1.1283791, %v345_v58  ;;  %v1025_v51 = vmul.f32 %v1024_v5, %v2285_v12  ;;  %v396_v62 = vmul.f32 %v395_v23, %v1907_v39  ;;  %v462_v56 = vadd.f32 0.05243302, %v461_v61  ;;  %v1548_v39 = vld [vmem:[%s3175_s3 + $0x160] sm:$0xff]  ;;  %1397 = vmatpush.msrb.mxu1 %v1549_v46 }
 0x104   :  { %v1141_v60 = vmul.f32 %v1140_v17, %v2365_v47  ;;  %v435_v14 = vadd.f32 0.4994258, %v434_v7  ;;  %v515_v13 = vadd.f32 0.4994258, %v514_v49  ;;  %v359_v0 = vmul.f32 %v2425_v3, %v2386_v59 }
 0x105   :  { %v578_v58 = vadd.f32 0.00028619796, %v577_v52  ;;  %v2440_v5 = vadd.f32 1.0, %v396_v62  ;;  %v554_v1 = vmul.f32 %v553_v44, %v2117_v18  ;;  %v2446_v23 = vmin.f32 %v695_v19, 16.0  ;;  %v1547_v19 = vld [vmem:[%s3175_s3 + $0x158] sm:$0xff]  ;;  %1398 = vmatpush.msrb.mxu1 %v1548_v39 }
 0x106   :  { %v436_v61 = vmul.f32 %v435_v14, %v1972_v28  ;;  %v516_v17 = vmul.f32 %v515_v13, %v2067_v33  ;;  %v630_v7 = vmul.f32 %v629_v45, %v2154_v35  ;;  %v2452_v49 = vmul.f32 %v906_v43, %v2189_v53  ;;  %v195_v45 = vpop.f32.mrf.mxu2 }
 0x107   :  { %v2455_v52 = vmul.f32 %v346_v4, %v2227_v42  ;;  %v1026_v62 = vadd.f32 1.1283791, %v1025_v51  ;;  %1590 = vrcp.f32 %v2440_v5  ;;  %v369_v28 = vand.u32 2147483648, %v2386_v59  ;;  %1399 = vmatpush.msrb.mxu1 %v1547_v19 }
 0x108   :  { %3218 = vst [vmem:[#allocation22_spill] sm:$0xff] %v2452_v49  ;;  %v463_v44 = vmul.f32 %v462_v56, %v2330_v54  ;;  %v2463_v33 = vadd.f32 1.0, %v436_v61  ;;  %v2465_v53 = vadd.f32 1.0, %v516_v17  ;;  %v360_v43 = vsub.f32 1.0, %v359_v0  ;;  %v1545_v0 = vld [vmem:[%s3175_s3 + $0x148] sm:$0xff] }
 0x109   :  { %v1142_v42 = vadd.f32 0.05243302, %v1141_v60  ;;  %v579_v4 = vmul.f32 %v578_v58, %v2406_v16  ;;  %v555_v51 = vadd.f32 0.4994258, %v554_v1  ;;  %v697_v31 = vmul.f32 2.1237322e-06, %v2446_v23 }
 0x10a   :  { %1592 = vrcp.f32 %v2463_v33  ;;  %v631_v46 = vadd.f32 0.014752088, %v630_v7  ;;  %v668_v14 = vmul.f32 3.8918573e-05, %v2156_v57  ;;  %v2473_v13 = vmul.f32 %v1026_v62, %v2248_v29  ;;  %v1546_v60 = vld [vmem:[%s3175_s3 + $0x150] sm:$0xff] }
 0x10b   :  { %v2476_v39 = vadd.f32 %v195_v45, %v2192_v8  ;;  %1594 = vrcp.f32 %v2465_v53  ;;  %v2485_v58 = vor.u32 1.1754944e-38, %v369_v28  ;;  %v2487_v1 = vadd.f32 0.18741608, %v463_v44  ;;  %1400 = vmatpush.msrb.mxu1 %v1546_v60  ;;  %v1544_v28 = vld [vmem:[%s3175_s3 + $0x140] sm:$0xff] }
 0x10c   :  { %3219 = vst [vmem:[#allocation23_spill] sm:$0xff] %v2473_v13  ;;  %v407_v29 = vand.u32 2147483647, %v2440_v5  ;;  %v409_v61 = vand.u32 2147483648, %v2440_v5  ;;  %v2492_v7 = vmul.f32 %v2425_v3, %v360_v43  ;;  %v2495_v62 = vmul.f32 %v1142_v42, %v2365_v47 }
 0x10d   :  { %3220 = vst [vmem:[#allocation24_spill] sm:$0xff] %v2476_v39  ;;  %v1591_v17 = vpop.eup %1590  ;;  %v2497_v19 = vadd.f32 0.0036580483, %v579_v4  ;;  %v556_v45 = vmul.f32 %v555_v51, %v2117_v18  ;;  %v2503_v44 = vadd.f32 0.00028619796, %v697_v31  ;;  %1401 = vmatpush.msrb.mxu1 %v1545_v0  ;;  %v632_v60 = vmul.f32 %v631_v46, %v2154_v35  ;;  %v1543_v51 = vld [vmem:[%s3175_s3 + $0x138] sm:$0xff] }
 0x10e   :  { %v399_v56 = vmul.f32 %v1591_v17, %v2440_v5  ;;  %v669_v43 = vadd.f32 0.001143296, %v668_v14  ;;  %vm403_vm8 = vweird.f32 %v2440_v5  ;;  %v447_v42 = vand.u32 2147483647, %v2463_v33 }
 0x10f   :  { %v2510_v4 = vmul.f32 0.70710677, %v2476_v39  ;;  %v2512_v18 = vadd.f32 1.0, %v556_v45  ;;  %vm404_vm9 = vweird.f32 %v1591_v17  ;;  %vm2517_vm10 = vcmp.eq.f32.partialorder %v407_v29, 8.507059e+37  ;;  %1402 = vmatpush.msrb.mxu1 %v1544_v28 }
 0x110   :  { %v1593_v31 = vpop.eup %1592  ;;  %v400_v48 = vsub.f32 1.0, %v399_v56  ;;  %v410_v46 = vor.u32 1.1754944e-38, %v409_v61  ;;  %v449_v39 = vand.u32 2147483648, %v2463_v33  ;;  %v527_v45 = vand.u32 2147483647, %v2465_v53  ;;  %vm2529_vm11 = vmor %vm403_vm8, %vm404_vm9 }
 0x111   :  { %v1595_v14 = vpop.eup %1594  ;;  %v439_v50 = vmul.f32 %v1593_v31, %v2463_v33  ;;  %1596 = vrcp.f32 %v2512_v18  ;;  %v529_v56 = vand.u32 2147483648, %v2465_v53  ;;  %1403 = vmatpush.msrb.mxu1 %v1543_v51  ;;  %v633_v29 = vadd.f32 0.112945676, %v632_v60 }
 0x112   :  { %v401_v13 = vmul.f32 %v1591_v17, %v400_v48  ;;  %v519_v37 = vmul.f32 %v1595_v14, %v2465_v53  ;;  %vm443_vm12 = vweird.f32 %v2463_v33  ;;  %vm444_vm13 = vweird.f32 %v1593_v31 }
 0x113   :  { %v440_v28 = vsub.f32 1.0, %v439_v50  ;;  %vm2534_vm14 = vcmp.eq.f32.partialorder %v447_v42, 8.507059e+37  ;;  %vm523_vm15 = vweird.f32 %v2465_v53  ;;  %vm524_vm0 = vweird.f32 %v1595_v14  ;;  %vm2546_vm2 = vmor %vm443_vm12, %vm444_vm13 }
 0x114   :  { %v402_v48 = vadd.f32 %v1591_v17, %v401_v13  ;;  %v520_v24 = vsub.f32 1.0, %v519_v37  ;;  %v450_v51 = vor.u32 1.1754944e-38, %v449_v39  ;;  %vm2539_vm1 = vcmp.eq.f32.partialorder %v527_v45, 8.507059e+37  ;;  %vm2553_vm3 = vmor %vm523_vm15, %vm524_vm0 }
 0x115   :  { %v441_v60 = vmul.f32 %v1593_v31, %v440_v28  ;;  %v670_v50 = vmul.f32 %v669_v43, %v2156_v57  ;;  %v530_v37 = vor.u32 1.1754944e-38, %v529_v56  ;;  %v634_v53 = vmul.f32 %v633_v29, %v2154_v35 }
 0x116   :  { %v406_v33 = vsel %vm2529_vm11, %v1591_v17, %v402_v48  ;;  %v521_v13 = vmul.f32 %v1595_v14, %v520_v24  ;;  %vm563_vm4 = vweird.f32 %v2512_v18  ;;  %v567_v17 = vand.u32 2147483647, %v2512_v18 }
 0x117   :  { %v1597_v49 = vpop.eup %1596  ;;  %v411_v39 = vsel %vm2517_vm10, %v410_v46, %v406_v33  ;;  %v442_v45 = vadd.f32 %v1593_v31, %v441_v60  ;;  %v569_v56 = vand.u32 2147483648, %v2512_v18  ;;  %v635_v46 = vadd.f32 0.4994258, %v634_v53 }
 0x118   :  { %v412_v43 = vmul.f32 %v411_v39, %v2233_v40  ;;  %v522_v61 = vadd.f32 %v1595_v14, %v521_v13  ;;  %v559_v24 = vmul.f32 %v1597_v49, %v2512_v18  ;;  %vm564_vm5 = vweird.f32 %v1597_v49  ;;  %v3237_v39 = vld [vmem:[#allocation4_spill] sm:$0xff] }
 0x119   :  { %v446_v0 = vsel %vm2546_vm2, %v1593_v31, %v442_v45  ;;  %v671_v29 = vadd.f32 0.014752088, %v670_v50  ;;  %vm363_vm6 = vweird.f32 %v2386_v59  ;;  %v699_v40 = vmul.f32 %v2503_v44, %v2446_v23  ;;  %vm2581_vm7 = vmor %vm563_vm4, %vm564_vm5 }
 0x11a   :  { %v1499_v48 = vclamps-f32 %v412_v43, 1.0  ;;  %v451_v60 = vsel %vm2534_vm14, %v450_v51, %v446_v0  ;;  %v526_v33 = vsel %vm2553_vm3, %v1595_v14, %v522_v61  ;;  %v560_v63 = vsub.f32 1.0, %v559_v24  ;;  %v3238_v43 = vld [vmem:[#allocation2_spill] sm:$0xff]  ;;  %v198_v0 = vpop.f32.mrf.mxu2 }
 0x11b   :  { %v452_v13 = vmul.f32 %v451_v60, %v2289_v26  ;;  %v815_v31 = vmul.f32 %v2510_v4, %v2510_v4  ;;  %v531_v50 = vsel %vm2539_vm1, %v530_v37, %v526_v33  ;;  %v636_v14 = vmul.f32 %v635_v46, %v2154_v35  ;;  %v3242_v60 = vld [vmem:[#allocation5_spill] sm:$0xff] }
 0x11c   :  { %v1218_v42 = vadd.f32 1.0, %v1499_v48  ;;  %v532_v38 = vmul.f32 %v531_v50, %v2328_v32  ;;  %v561_v51 = vmul.f32 %v1597_v49, %v560_v63  ;;  %vm2585_vm8 = vcmp.eq.f32.partialorder %v567_v17, 8.507059e+37 }
 0x11d   :  { %v1500_v53 = vclamps-f32 %v452_v13, 1.0  ;;  %v570_v5 = vor.u32 1.1754944e-38, %v569_v56  ;;  %v672_v37 = vmul.f32 %v671_v29, %v2156_v57  ;;  %v2591_v35 = vadd.f32 1.0, %v636_v14 }
 0x11e   :  { %v1242_v32 = vmul.f32 %v1218_v42, %v3237_v39  ;;  %v1502_v63 = vclamps-f32 %v532_v38, 1.0  ;;  %v562_v45 = vadd.f32 %v1597_v49, %v561_v51  ;;  %vm364_vm9 = vweird.f32 %v2425_v3 }
 0x11f   :  { %v1219_v18 = vadd.f32 1.0, %v1500_v53  ;;  %v673_v28 = vadd.f32 0.112945676, %v672_v37  ;;  %v748_v61 = vmul.f32 3.8918573e-05, %v3238_v43  ;;  %v581_v17 = vmul.f32 %v2497_v19, %v2406_v16  ;;  %vm2627_vm11 = vmor %vm363_vm6, %vm364_vm9  ;;  %v3245_v53 = vld [vmem:[#allocation7_spill] sm:$0xff] }
 0x120   :  { %1298 = vmatmul.f32.gmra.mxu3 %v1242_v32  ;;  %v1221_v24 = vadd.f32 1.0, %v1502_v63  ;;  %v566_v56 = vsel %vm2581_vm7, %v1597_v49, %v562_v45  ;;  %1598 = vrcp.f32 %v2591_v35  ;;  %v362_v46 = vadd.f32 %v2425_v3, %v2492_v7  ;;  %v1541_v37 = vld [vmem:[%s3175_s3 + $0x128] sm:$0xff] }
 0x121   :  { %v3239_v29 = vand.u32 2147483647, %v2386_v59  ;;  %v1243_v33 = vmul.f32 %v1219_v18, %v3242_v60  ;;  %v2609_v19 = vmin.f32 %v815_v31, 16.0  ;;  %v571_v13 = vsel %vm2585_vm8, %v570_v5, %v566_v56  ;;  %v1542_v5 = vld [vmem:[%s3175_s3 + $0x130] sm:$0xff] }
 0x122   :  { %v2614_v49 = vadd.f32 0.18741608, %v2495_v62  ;;  %v700_v50 = vadd.f32 0.0036580483, %v699_v40  ;;  %v572_v42 = vmul.f32 %v571_v13, %v2343_v27  ;;  %v868_v7 = vmul.f32 3.8918573e-05, %v2022_v9  ;;  %1404 = vmatpush.msrb.mxu1 %v1542_v5 }
 0x123   :  { %vm2604_vm10 = vcmp.eq.f32.partialorder %v3239_v29, 8.507059e+37  ;;  %1356 = vmatmul.f32.gmra.mxu0 %v1243_v33  ;;  %v2619_v38 = vadd.f32 %v198_v0, %v2192_v8  ;;  %v674_v51 = vmul.f32 %v673_v28, %v2156_v57  ;;  %v749_v14 = vadd.f32 0.001143296, %v748_v61  ;;  %v1540_v28 = vld [vmem:[%s3175_s3 + $0x120] sm:$0xff]  ;;  %v3246_v0 = vld [vmem:[#allocation8_spill] sm:$0xff]  ;;  %v1539_v33 = vld [vmem:[%s3175_s3 + $0x118] sm:$0xff] }
 0x124   :  { %v788_v31 = vmul.f32 3.8918573e-05, %v2126_v30  ;;  %v465_v27 = vmul.f32 %v2487_v1, %v2330_v54  ;;  %v582_v40 = vadd.f32 0.05243302, %v581_v17  ;;  %v1245_v44 = vmul.f32 %v1221_v24, %v3245_v53  ;;  %1405 = vmatpush.msrb.mxu1 %v1541_v37 }
 0x125   :  { %v1503_v26 = vclamps-f32 %v572_v42, 1.0  ;;  %v366_v59 = vsel %vm2627_vm11, %v2425_v3, %v362_v46  ;;  %v817_v39 = vmul.f32 2.1237322e-06, %v2609_v19  ;;  %v675_v32 = vadd.f32 0.4994258, %v674_v51 }
 0x126   :  { %v750_v1 = vmul.f32 %v749_v14, %v3238_v43  ;;  %v1599_v63 = vpop.eup %1598  ;;  %v701_v45 = vmul.f32 %v700_v50, %v2446_v23  ;;  %v789_v61 = vadd.f32 0.001143296, %v788_v31  ;;  %v869_v17 = vadd.f32 0.001143296, %v868_v7  ;;  %1406 = vmatpush.msrb.mxu1 %v1540_v28  ;;  %v201_v14 = vpop.f32.mrf.mxu2 }
 0x127   :  { %v1222_v18 = vadd.f32 1.0, %v1503_v26  ;;  %v2650_v24 = vmul.f32 0.70710677, %v2619_v38  ;;  %v639_v3 = vmul.f32 %v1599_v63, %v2591_v35  ;;  %vm643_vm12 = vweird.f32 %v2591_v35 }
 0x128   :  { %v676_v56 = vmul.f32 %v675_v32, %v2156_v57  ;;  %1301 = vmatmul.f32.gmra.mxu3 %v1245_v44  ;;  %v647_v29 = vand.u32 2147483647, %v2591_v35  ;;  %v649_v60 = vand.u32 2147483648, %v2591_v35  ;;  %v751_v13 = vadd.f32 0.014752088, %v750_v1  ;;  %1407 = vmatpush.msrb.mxu1 %v1539_v33 }
 0x129   :  { %v1246_v46 = vmul.f32 %v1222_v18, %v3246_v0  ;;  %v640_v50 = vsub.f32 1.0, %v639_v3  ;;  %vm644_vm13 = vweird.f32 %v1599_v63  ;;  %v790_v57 = vmul.f32 %v789_v61, %v2126_v30 }
 0x12a   :  { %v2661_v42 = vadd.f32 1.0, %v676_v56  ;;  %v371_v7 = vsel %vm2604_vm10, %v2485_v58, %v366_v59  ;;  %v583_v51 = vmul.f32 %v582_v40, %v2406_v16  ;;  %v752_v31 = vmul.f32 %v751_v13, %v3238_v43  ;;  %vm2676_vm14 = vmor %vm643_vm12, %vm644_vm13 }
 0x12b   :  { %v870_v62 = vmul.f32 %v869_v17, %v2022_v9  ;;  %v702_v53 = vadd.f32 0.05243302, %v701_v45  ;;  %v818_v44 = vadd.f32 0.00028619796, %v817_v39  ;;  %1359 = vmatmul.f32.gmra.mxu0 %v1246_v46  ;;  %v641_v26 = vmul.f32 %v1599_v63, %v640_v50 }
 0x12c   :  { %1600 = vrcp.f32 %v2661_v42  ;;  %v935_v5 = vmul.f32 %v2650_v24, %v2650_v24  ;;  %vm2680_vm15 = vcmp.eq.f32.partialorder %v647_v29, 8.507059e+37  ;;  %v650_v40 = vor.u32 1.1754944e-38, %v649_v60 }
 0x12d   :  { %v753_v37 = vadd.f32 0.112945676, %v752_v31  ;;  %v642_v59 = vadd.f32 %v1599_v63, %v641_v26  ;;  %v2685_v39 = vadd.f32 %v201_v14, %v2192_v8  ;;  %v791_v32 = vadd.f32 0.014752088, %v790_v57 }
 0x12e   :  { %v871_v1 = vadd.f32 0.014752088, %v870_v62  ;;  %v466_v45 = vadd.f32 1.1283791, %v465_v27  ;;  %v1145_v35 = vmul.f32 %v2614_v49, %v2365_v47  ;;  %v584_v18 = vadd.f32 0.18741608, %v583_v51 }
 0x12f   :  { %v754_v28 = vmul.f32 %v753_v37, %v3238_v43  ;;  %v372_v61 = vmul.f32 %v371_v7, %v2455_v52  ;;  %v646_v17 = vsel %vm2676_vm14, %v1599_v63, %v642_v59  ;;  %v792_v3 = vmul.f32 %v791_v32, %v2126_v30  ;;  %v1536_v59 = vld [vmem:[%s3175_s3 + $0x100] sm:$0xff] }
 0x130   :  { %v872_v56 = vmul.f32 %v871_v1, %v2022_v9  ;;  %v703_v0 = vmul.f32 %v702_v53, %v2446_v23  ;;  %v819_v46 = vmul.f32 %v818_v44, %v2609_v19  ;;  %v651_v27 = vsel %vm2680_vm15, %v650_v40, %v646_v17  ;;  %v1537_v44 = vld [vmem:[%s3175_s3 + $0x108] sm:$0xff] }
 0x131   :  { %v755_v49 = vadd.f32 0.4994258, %v754_v28  ;;  %v2699_v60 = vmin.f32 %v935_v5, 16.0  ;;  %v652_v52 = vmul.f32 %v651_v27, %v2374_v25  ;;  %v2703_v33 = vmul.f32 0.70710677, %v2685_v39 }
 0x132   :  { %v1601_v29 = vpop.eup %1600  ;;  %v793_v63 = vadd.f32 0.112945676, %v792_v3  ;;  %v873_v57 = vadd.f32 0.112945676, %v872_v56  ;;  %v908_v7 = vmul.f32 3.8918573e-05, %v2245_v20  ;;  %vm683_vm0 = vweird.f32 %v2661_v42 }
 0x133   :  { %v679_v13 = vmul.f32 %v1601_v29, %v2661_v42  ;;  %v756_v50 = vmul.f32 %v755_v49, %v3238_v43  ;;  %v1505_v51 = vclamps-f32 %v652_v52, 1.0  ;;  %v689_v14 = vand.u32 2147483648, %v2661_v42  ;;  %v1538_v43 = vld [vmem:[%s3175_s3 + $0x110] sm:$0xff] }
 0x134   :  { %v794_v31 = vmul.f32 %v793_v63, %v2126_v30  ;;  %vm684_vm1 = vweird.f32 %v1601_v29  ;;  %v687_v25 = vand.u32 2147483647, %v2661_v42  ;;  %v820_v26 = vadd.f32 0.0036580483, %v819_v46  ;;  %1408 = vmatpush.msrb.mxu1 %v1538_v43 }
 0x135   :  { %v680_v62 = vsub.f32 1.0, %v679_v13  ;;  %v2712_v53 = vadd.f32 1.0, %v756_v50  ;;  %v1224_v5 = vadd.f32 1.0, %v1505_v51  ;;  %v1498_v48 = vclamps-f32 %v372_v61, 1.0  ;;  %vm2730_vm2 = vmor %vm683_vm0, %vm684_vm1 }
 0x136   :  { %v795_v58 = vadd.f32 0.4994258, %v794_v31  ;;  %v937_v40 = vmul.f32 2.1237322e-06, %v2699_v60  ;;  %v874_v32 = vmul.f32 %v873_v57, %v2022_v9  ;;  %v690_v61 = vor.u32 1.1754944e-38, %v689_v14  ;;  %1409 = vmatpush.msrb.mxu1 %v1537_v44 }
 0x137   :  { %v681_v37 = vmul.f32 %v1601_v29, %v680_v62  ;;  %1602 = vrcp.f32 %v2712_v53  ;;  %v1248_v1 = vmul.f32 %v1224_v5, %v2298_v15  ;;  %v1055_v17 = vmul.f32 %v2703_v33, %v2703_v33 }
 0x138   :  { %v796_v3 = vmul.f32 %v795_v58, %v2126_v30  ;;  %vm688_vm3 = vcmp.eq.f32.partialorder %v687_v25, 8.507059e+37  ;;  %v1217_v46 = vadd.f32 1.0, %v1498_v48  ;;  %v909_v27 = vadd.f32 0.001143296, %v908_v7  ;;  %1410 = vmatpush.msrb.mxu1 %v1536_v59 }
 0x139   :  { %v682_v56 = vadd.f32 %v1601_v29, %v681_v37  ;;  %v1146_v49 = vadd.f32 1.1283791, %v1145_v35  ;;  %v585_v15 = vmul.f32 %v584_v18, %v2406_v16  ;;  %v704_v52 = vadd.f32 0.18741608, %v703_v0  ;;  %1304 = vmatmul.f32.gmra.mxu3 %v1248_v1 }
 0x13a   :  { %v797_v42 = vadd.f32 1.0, %v796_v3  ;;  %v821_v63 = vmul.f32 %v820_v26, %v2609_v19  ;;  %v1241_v50 = vmul.f32 %v1217_v46, %v2346_v55  ;;  %v875_v30 = vadd.f32 0.4994258, %v874_v32 }
 0x13b   :  { %v686_v13 = vsel %vm2730_vm2, %v1601_v29, %v682_v56  ;;  %v2743_v57 = vmul.f32 %v466_v45, %v2295_v41  ;;  %v2745_v7 = vmin.f32 %v1055_v17, 16.0  ;;  %v938_v18 = vadd.f32 0.00028619796, %v937_v40 }
 0x13c   :  { %v691_v51 = vsel %vm688_vm3, %v690_v61, %v686_v13  ;;  %1604 = vrcp.f32 %v797_v42  ;;  %1411 = vmatmul.f32.vlgmr.msrb.gmra.mxu1 %v1241_v50  ;;  %v910_v14 = vmul.f32 %v909_v27, %v2245_v20  ;;  %v468_v31 = vmul.f32 3.8918573e-05, %v2330_v54 }
 0x13d   :  { %v1603_v35 = vpop.eup %1602  ;;  %v692_v0 = vmul.f32 %v691_v51, %v2380_v2  ;;  %v2751_v29 = vmul.f32 %v1146_v49, %v2325_v11  ;;  %v2753_v55 = vadd.f32 1.1283791, %v585_v15  ;;  %v876_v45 = vmul.f32 %v875_v30, %v2022_v9 }
 0x13e   :  { %v759_v41 = vmul.f32 %v1603_v35, %v2712_v53  ;;  %v2758_v62 = vmul.f32 %v704_v52, %v2446_v23  ;;  %v2760_v25 = vadd.f32 0.05243302, %v821_v63  ;;  %v769_v43 = vand.u32 2147483648, %v2712_v53 }
 0x13f   :  { %v1506_v2 = vclamps-f32 %v692_v0, 1.0  ;;  %v2764_v44 = vmul.f32 2.1237322e-06, %v2745_v7  ;;  %v767_v11 = vand.u32 2147483647, %v2712_v53  ;;  %v2767_v5 = vadd.f32 1.0, %v876_v45 }
 0x140   :  { %v760_v26 = vsub.f32 1.0, %v759_v41  ;;  %v2770_v58 = vmul.f32 %v938_v18, %v2699_v60  ;;  %v911_v48 = vadd.f32 0.014752088, %v910_v14  ;;  %v469_v40 = vadd.f32 0.001143296, %v468_v31 }
 0x141   :  { %v1225_v9 = vadd.f32 1.0, %v1506_v2  ;;  %vm764_vm4 = vweird.f32 %v1603_v35  ;;  %v807_v32 = vand.u32 2147483647, %v797_v42  ;;  %1606 = vrcp.f32 %v2767_v5 }
 0x142   :  { %v1605_v37 = vpop.eup %1604  ;;  %v761_v59 = vmul.f32 %v1603_v35, %v760_v26  ;;  %vm763_vm5 = vweird.f32 %v2712_v53  ;;  %v770_v28 = vor.u32 1.1754944e-38, %v769_v43  ;;  %vm803_vm6 = vweird.f32 %v797_v42 }
 0x143   :  { %v1249_v1 = vmul.f32 %v1225_v9, %v2303_v34  ;;  %v799_v61 = vmul.f32 %v1605_v37, %v797_v42  ;;  %vm804_vm7 = vweird.f32 %v1605_v37  ;;  %v809_v3 = vand.u32 2147483648, %v797_v42  ;;  %vm765_vm8 = vmor %vm763_vm5, %vm764_vm4 }
 0x144   :  { %v762_v17 = vadd.f32 %v1603_v35, %v761_v59  ;;  %v912_v46 = vmul.f32 %v911_v48, %v2245_v20  ;;  %v470_v27 = vmul.f32 %v469_v40, %v2330_v54  ;;  %v988_v49 = vmul.f32 3.8918573e-05, %v2109_v6  ;;  %vm2786_vm11 = vmor %vm803_vm6, %vm804_vm7 }
 0x145   :  { %1362 = vmatmul.f32.gmra.mxu0 %v1249_v1  ;;  %v800_v56 = vsub.f32 1.0, %v799_v61  ;;  %vm768_vm9 = vcmp.eq.f32.partialorder %v767_v11, 8.507059e+37  ;;  %vm2778_vm10 = vcmp.eq.f32.partialorder %v807_v32, 8.507059e+37  ;;  %v1028_v53 = vmul.f32 3.8918573e-05, %v2285_v12 }
 0x146   :  { %v766_v15 = vsel %vm765_vm8, %v1603_v35, %v762_v17  ;;  %v913_v13 = vadd.f32 0.112945676, %v912_v46  ;;  %v471_v50 = vadd.f32 0.014752088, %v470_v27  ;;  %v810_v35 = vor.u32 1.1754944e-38, %v809_v3 }
 0x147   :  { %v771_v52 = vsel %vm768_vm9, %v770_v28, %v766_v15  ;;  %v801_v63 = vmul.f32 %v1605_v37, %v800_v56  ;;  %v1607_v30 = vpop.eup %1606  ;;  %v989_v0 = vadd.f32 0.001143296, %v988_v49  ;;  %v1029_v14 = vadd.f32 0.001143296, %v1028_v53  ;;  %v3257_v56 = vld [vmem:[#allocation3_spill] sm:$0xff] }
 0x148   :  { %v772_v51 = vmul.f32 %v771_v52, %v2211_v21  ;;  %v879_v41 = vmul.f32 %v1607_v30, %v2767_v5  ;;  %v887_v45 = vand.u32 2147483647, %v2767_v5  ;;  %v914_v2 = vmul.f32 %v913_v13, %v2245_v20  ;;  %v204_v13 = vpop.f32.mrf.mxu2 }
 0x149   :  { %v802_v31 = vadd.f32 %v1605_v37, %v801_v63  ;;  %v889_v26 = vand.u32 2147483648, %v2767_v5  ;;  %v472_v21 = vmul.f32 %v471_v50, %v2330_v54  ;;  %v990_v42 = vmul.f32 %v989_v0, %v2109_v6 }
 0x14a   :  { %v1508_v43 = vclamps-f32 %v772_v51, 1.0  ;;  %v880_v9 = vsub.f32 1.0, %v879_v41  ;;  %v915_v48 = vadd.f32 0.4994258, %v914_v2  ;;  %v1030_v40 = vmul.f32 %v1029_v14, %v2285_v12  ;;  %v3258_v14 = vld [vmem:[#allocation12_spill] sm:$0xff] }
 0x14b   :  { %v806_v11 = vsel %vm2786_vm11, %v1605_v37, %v802_v31  ;;  %vm884_vm12 = vweird.f32 %v1607_v30  ;;  %v473_v1 = vadd.f32 0.112945676, %v472_v21  ;;  %v991_v3 = vadd.f32 0.014752088, %v990_v42 }
 0x14c   :  { %v1227_v59 = vadd.f32 1.0, %v1508_v43  ;;  %v811_v32 = vsel %vm2778_vm10, %v810_v35, %v806_v11  ;;  %v881_v61 = vmul.f32 %v1607_v30, %v880_v9  ;;  %v916_v17 = vmul.f32 %v915_v48, %v2245_v20  ;;  %v3259_v11 = vld [vmem:[#allocation11_spill] sm:$0xff] }
 0x14d   :  { %v812_v28 = vmul.f32 %v811_v32, %v2354_v10  ;;  %vm883_vm13 = vweird.f32 %v2767_v5  ;;  %v474_v37 = vmul.f32 %v473_v1, %v2330_v54  ;;  %v1031_v27 = vadd.f32 0.014752088, %v1030_v40 }
 0x14e   :  { %v1251_v46 = vmul.f32 %v1227_v59, %v3257_v56  ;;  %v882_v15 = vadd.f32 %v1607_v30, %v881_v61  ;;  %v917_v53 = vadd.f32 1.0, %v916_v17  ;;  %v992_v34 = vmul.f32 %v991_v3, %v2109_v6  ;;  %vm885_vm14 = vmor %vm883_vm13, %vm884_vm12 }
 0x14f   :  { %v1509_v49 = vclamps-f32 %v812_v28, 1.0  ;;  %vm888_vm15 = vcmp.eq.f32.partialorder %v887_v45, 8.507059e+37  ;;  %v890_v10 = vor.u32 1.1754944e-38, %v889_v26  ;;  %v475_v52 = vadd.f32 0.4994258, %v474_v37  ;;  %v3260_v28 = vld [vmem:[#allocation6_spill] sm:$0xff] }
 0x150   :  { %1307 = vmatmul.f32.gmra.mxu3 %v1251_v46  ;;  %v1032_v20 = vmul.f32 %v1031_v27, %v2285_v12  ;;  %v886_v50 = vsel %vm885_vm14, %v1607_v30, %v882_v15  ;;  %1608 = vrcp.f32 %v917_v53  ;;  %v588_v5 = vmul.f32 3.8918573e-05, %v2406_v16 }
 0x151   :  { %v1228_v63 = vadd.f32 1.0, %v1509_v49  ;;  %v823_v51 = vmul.f32 %v2760_v25, %v2609_v19  ;;  %v940_v18 = vadd.f32 0.0036580483, %v2770_v58  ;;  %v1058_v35 = vadd.f32 0.00028619796, %v2764_v44 }
 0x152   :  { %v891_v0 = vsel %vm888_vm15, %v890_v10, %v886_v50  ;;  %v476_v45 = vmul.f32 %v475_v52, %v2330_v54  ;;  %v993_v2 = vadd.f32 0.112945676, %v992_v34  ;;  %v2819_v30 = vmul.f32 %v2753_v55, %v2377_v36 }
 0x153   :  { %v1252_v31 = vmul.f32 %v1228_v63, %v3258_v14  ;;  %v892_v41 = vmul.f32 %v891_v0, %v2307_v22  ;;  %v2822_v43 = vadd.f32 1.1283791, %v2758_v62  ;;  %v2825_v25 = vadd.f32 %v204_v13, %v2192_v8 }
 0x154   :  { %v1033_v58 = vadd.f32 0.112945676, %v1032_v20  ;;  %v2827_v26 = vadd.f32 1.0, %v476_v45  ;;  %v994_v22 = vmul.f32 %v993_v2, %v2109_v6  ;;  %v589_v21 = vadd.f32 0.001143296, %v588_v5 }
 0x155   :  { %1365 = vmatmul.f32.gmra.mxu0 %v1252_v31  ;;  %v1511_v44 = vclamps-f32 %v892_v41, 1.0  ;;  %v2830_v54 = vadd.f32 0.18741608, %v823_v51  ;;  %v2833_v42 = vmul.f32 %v940_v18, %v2699_v60  ;;  %v2836_v36 = vmul.f32 %v1058_v35, %v2745_v7 }
 0x156   :  { %v1034_v55 = vmul.f32 %v1033_v58, %v2285_v12  ;;  %v1609_v8 = vpop.eup %1608  ;;  %1610 = vrcp.f32 %v2827_v26  ;;  %v1108_v9 = vmul.f32 3.8918573e-05, %v3259_v11  ;;  %v1148_v48 = vmul.f32 3.8918573e-05, %v2365_v47 }
 0x157   :  { %v1230_v62 = vadd.f32 1.0, %v1511_v44  ;;  %v2843_v40 = vmul.f32 0.70710677, %v2825_v25  ;;  %v919_v59 = vmul.f32 %v1609_v8, %v917_v53  ;;  %v927_v32 = vand.u32 2147483647, %v917_v53 }
 0x158   :  { %v995_v1 = vadd.f32 0.4994258, %v994_v22  ;;  %v929_v17 = vand.u32 2147483648, %v917_v53  ;;  %v1035_v3 = vadd.f32 0.4994258, %v1034_v55  ;;  %v590_v56 = vmul.f32 %v589_v21, %v2406_v16  ;;  %v3267_v21 = vld [vmem:[#allocation22_spill] sm:$0xff] }
 0x159   :  { %v1254_v61 = vmul.f32 %v1230_v62, %v3260_v28  ;;  %v920_v46 = vsub.f32 1.0, %v919_v59  ;;  %vm923_vm0 = vweird.f32 %v917_v53  ;;  %vm924_vm1 = vweird.f32 %v1609_v8 }
 0x15a   :  { %v996_v37 = vmul.f32 %v995_v1, %v2109_v6  ;;  %v1036_v27 = vmul.f32 %v1035_v3, %v2285_v12  ;;  %v591_v49 = vadd.f32 0.014752088, %v590_v56  ;;  %v1109_v15 = vadd.f32 0.001143296, %v1108_v9  ;;  %vm2856_vm3 = vmor %vm923_vm0, %vm924_vm1 }
 0x15b   :  { %1310 = vmatmul.f32.gmra.mxu3 %v1254_v61  ;;  %v1149_v34 = vadd.f32 0.001143296, %v1148_v48  ;;  %v921_v10 = vmul.f32 %v1609_v8, %v920_v46  ;;  %vm2849_vm2 = vcmp.eq.f32.partialorder %v927_v32, 8.507059e+37  ;;  %v487_v20 = vand.u32 2147483647, %v2827_v26 }
 0x15c   :  { %v2854_v63 = vadd.f32 1.0, %v996_v37  ;;  %v1611_v13 = vpop.eup %1610  ;;  %v930_v6 = vor.u32 1.1754944e-38, %v929_v17  ;;  %vm483_vm4 = vweird.f32 %v2827_v26  ;;  %v489_v12 = vand.u32 2147483648, %v2827_v26 }
 0x15d   :  { %v1037_v50 = vadd.f32 1.0, %v1036_v27  ;;  %v922_v5 = vadd.f32 %v1609_v8, %v921_v10  ;;  %v479_v51 = vmul.f32 %v1611_v13, %v2827_v26  ;;  %v592_v18 = vmul.f32 %v591_v49, %v2406_v16 }
 0x15e   :  { %1612 = vrcp.f32 %v2854_v63  ;;  %v1009_v35 = vand.u32 2147483648, %v2854_v63  ;;  %v1110_v0 = vmul.f32 %v1109_v15, %v3259_v11  ;;  %v1150_v14 = vmul.f32 %v1149_v34, %v2365_v47 }
 0x15f   :  { %1614 = vrcp.f32 %v1037_v50  ;;  %v926_v31 = vsel %vm2856_vm3, %v1609_v8, %v922_v5  ;;  %v480_v41 = vsub.f32 1.0, %v479_v51  ;;  %vm2870_vm5 = vcmp.eq.f32.partialorder %v487_v20, 8.507059e+37 }
 0x160   :  { %v1047_v2 = vand.u32 2147483647, %v1037_v50  ;;  %v931_v58 = vsel %vm2849_vm2, %v930_v6, %v926_v31  ;;  %vm484_vm6 = vweird.f32 %v1611_v13  ;;  %v490_v44 = vor.u32 1.1754944e-38, %v489_v12  ;;  %v3270_v12 = vld [vmem:[#allocation15_spill] sm:$0xff] }
 0x161   :  { %v1007_v22 = vand.u32 2147483647, %v2854_v63  ;;  %v932_v55 = vmul.f32 %v931_v58, %v3267_v21  ;;  %v481_v62 = vmul.f32 %v1611_v13, %v480_v41  ;;  %vm1043_vm7 = vweird.f32 %v1037_v50  ;;  %vm485_vm10 = vmor %vm483_vm4, %vm484_vm6 }
 0x162   :  { %v593_v9 = vadd.f32 0.112945676, %v592_v18  ;;  %vm1003_vm8 = vweird.f32 %v2854_v63  ;;  %v1010_v8 = vor.u32 1.1754944e-38, %v1009_v35  ;;  %v1049_v48 = vand.u32 2147483648, %v1037_v50 }
 0x163   :  { %v1111_v59 = vadd.f32 0.014752088, %v1110_v0  ;;  %v1151_v32 = vadd.f32 0.014752088, %v1150_v14  ;;  %v1512_v28 = vclamps-f32 %v932_v55, 1.0  ;;  %v482_v61 = vadd.f32 %v1611_v13, %v481_v62 }
 0x164   :  { %v1613_v1 = vpop.eup %1612  ;;  %vm2879_vm9 = vcmp.eq.f32.partialorder %v1047_v2, 8.507059e+37  ;;  %v594_v3 = vmul.f32 %v593_v9, %v2406_v16  ;;  %v708_v56 = vmul.f32 3.8918573e-05, %v2446_v23  ;;  %v1050_v45 = vor.u32 1.1754944e-38, %v1049_v48 }
 0x165   :  { %v1615_v46 = vpop.eup %1614  ;;  %v999_v37 = vmul.f32 %v1613_v1, %v2854_v63  ;;  %vm1004_vm11 = vweird.f32 %v1613_v1  ;;  %v1112_v27 = vmul.f32 %v1111_v59, %v3259_v11  ;;  %v1152_v49 = vmul.f32 %v1151_v32, %v2365_v47 }
 0x166   :  { %v1231_v15 = vadd.f32 1.0, %v1512_v28  ;;  %v486_v34 = vsel %vm485_vm10, %v1611_v13, %v482_v61  ;;  %v1039_v10 = vmul.f32 %v1615_v46, %v1037_v50  ;;  %vm1044_vm12 = vweird.f32 %v1615_v46  ;;  %vm1005_vm14 = vmor %vm1003_vm8, %vm1004_vm11  ;;  %v3273_v28 = vld [vmem:[#allocation17_spill] sm:$0xff] }
 0x167   :  { %v491_v52 = vsel %vm2870_vm5, %v490_v44, %v486_v34  ;;  %v1000_v20 = vsub.f32 1.0, %v999_v37  ;;  %v595_v53 = vadd.f32 0.4994258, %v594_v3  ;;  %v1113_v6 = vadd.f32 0.112945676, %v1112_v27  ;;  %vm2900_vm13 = vmor %vm1043_vm7, %vm1044_vm12 }
 0x168   :  { %v1255_v26 = vmul.f32 %v1231_v15, %v3270_v12  ;;  %v492_v5 = vmul.f32 %v491_v52, %v2743_v57  ;;  %v1040_v51 = vsub.f32 1.0, %v1039_v10  ;;  %v1153_v18 = vadd.f32 0.112945676, %v1152_v49  ;;  %v3275_v15 = vld [vmem:[#allocation23_spill] sm:$0xff] }
 0x169   :  { %v1001_v35 = vmul.f32 %v1613_v1, %v1000_v20  ;;  %v596_v0 = vmul.f32 %v595_v53, %v2406_v16  ;;  %v1114_v14 = vmul.f32 %v1113_v6, %v3259_v11  ;;  %v709_v13 = vadd.f32 0.001143296, %v708_v56  ;;  %v3274_v56 = vld [vmem:[#allocation16_spill] sm:$0xff] }
 0x16a   :  { %1368 = vmatmul.f32.gmra.mxu0 %v1255_v26  ;;  %v1501_v31 = vclamps-f32 %v492_v5, 1.0  ;;  %v1041_v41 = vmul.f32 %v1615_v46, %v1040_v51  ;;  %v1154_v2 = vmul.f32 %v1153_v18, %v2365_v47  ;;  %v828_v16 = vmul.f32 3.8918573e-05, %v2609_v19 }
 0x16b   :  { %v1002_v58 = vadd.f32 %v1613_v1, %v1001_v35  ;;  %v2904_v57 = vadd.f32 1.0, %v596_v0  ;;  %v1115_v21 = vadd.f32 0.4994258, %v1114_v14  ;;  %v710_v48 = vmul.f32 %v709_v13, %v2446_v23  ;;  %v3276_v0 = vld [vmem:[#allocation9_spill] sm:$0xff]  ;;  %v3277_v13 = vld [vmem:[#allocation18_spill] sm:$0xff] }
 0x16c   :  { %v1220_v55 = vadd.f32 1.0, %v1501_v31  ;;  %v1042_v62 = vadd.f32 %v1615_v46, %v1041_v41  ;;  %v1155_v9 = vadd.f32 0.4994258, %v1154_v2  ;;  %v1175_v50 = vmul.f32 %v2843_v40, %v2843_v40 }
 0x16d   :  { %v1006_v59 = vsel %vm1005_vm14, %v1613_v1, %v1002_v58  ;;  %vm1008_vm15 = vcmp.eq.f32.partialorder %v1007_v22, 8.507059e+37  ;;  %1616 = vrcp.f32 %v2904_v57  ;;  %v2916_v32 = vmul.f32 %v2830_v54, %v2609_v19 }
 0x16e   :  { %v1244_v61 = vmul.f32 %v1220_v55, %v3273_v28  ;;  %v1011_v3 = vsel %vm1008_vm15, %v1010_v8, %v1006_v59  ;;  %v1046_v63 = vsel %vm2900_vm13, %v1615_v46, %v1042_v62  ;;  %v1116_v1 = vmul.f32 %v1115_v21, %v3259_v11 }
 0x16f   :  { %v1012_v37 = vmul.f32 %v1011_v3, %v3274_v56  ;;  %v1051_v27 = vsel %vm2879_vm9, %v1050_v45, %v1046_v63  ;;  %v829_v22 = vadd.f32 0.001143296, %v828_v16  ;;  %v1060_v49 = vadd.f32 0.0036580483, %v2836_v36 }
 0x170   :  { %1414 = vmatmul.f32.gmra.mxu1 %v1244_v61  ;;  %v1052_v54 = vmul.f32 %v1051_v27, %v3275_v15  ;;  %v1156_v34 = vmul.f32 %v1155_v9, %v2365_v47  ;;  %v711_v10 = vadd.f32 0.014752088, %v710_v48  ;;  %v2929_v8 = vadd.f32 0.05243302, %v2833_v42 }
 0x171   :  { %v2931_v46 = vmin.f32 %v1175_v50, 16.0  ;;  %v1514_v52 = vclamps-f32 %v1012_v37, 1.0  ;;  %v2933_v20 = vadd.f32 1.0, %v1116_v1  ;;  %v607_v11 = vand.u32 2147483647, %v2904_v57 }
 0x172   :  { %v1515_v17 = vclamps-f32 %v1052_v54, 1.0  ;;  %v609_v53 = vand.u32 2147483648, %v2904_v57  ;;  %v2937_v36 = vadd.f32 1.0, %v1156_v34  ;;  %v712_v47 = vmul.f32 %v711_v10, %v2446_v23 }
 0x173   :  { %v1617_v6 = vpop.eup %1616  ;;  %v1233_v12 = vadd.f32 1.0, %v1514_v52  ;;  %1618 = vrcp.f32 %v2933_v20  ;;  %v830_v42 = vmul.f32 %v829_v22, %v2609_v19  ;;  %v2943_v26 = vmul.f32 %v1060_v49, %v2745_v7 }
 0x174   :  { %v1234_v5 = vadd.f32 1.0, %v1515_v17  ;;  %v599_v51 = vmul.f32 %v1617_v6, %v2904_v57  ;;  %v948_v18 = vmul.f32 3.8918573e-05, %v2699_v60  ;;  %v2948_v35 = vmul.f32 2.1237322e-06, %v2931_v46 }
 0x175   :  { %v1257_v14 = vmul.f32 %v1233_v12, %v3276_v0  ;;  %vm603_vm0 = vweird.f32 %v2904_v57  ;;  %1620 = vrcp.f32 %v2937_v36  ;;  %vm2954_vm1 = vcmp.eq.f32.partialorder %v607_v11, 8.507059e+37 }
 0x176   :  { %v1258_v31 = vmul.f32 %v1234_v5, %v3277_v13  ;;  %v600_v41 = vsub.f32 1.0, %v599_v51  ;;  %v610_v2 = vor.u32 1.1754944e-38, %v609_v53  ;;  %vm604_vm2 = vweird.f32 %v1617_v6 }
 0x177   :  { %1313 = vmatmul.f32.gmra.mxu3 %v1257_v14  ;;  %vm1123_vm3 = vweird.f32 %v2933_v20  ;;  %v1127_v58 = vand.u32 2147483647, %v2933_v20  ;;  %v713_v44 = vadd.f32 0.112945676, %v712_v47  ;;  %v831_v21 = vadd.f32 0.014752088, %v830_v42  ;;  %vm605_vm5 = vmor %vm603_vm0, %vm604_vm2 }
 0x178   :  { %1371 = vmatmul.f32.gmra.mxu0 %v1258_v31  ;;  %v601_v16 = vmul.f32 %v1617_v6, %v600_v41  ;;  %v1129_v55 = vand.u32 2147483648, %v2933_v20  ;;  %v949_v62 = vadd.f32 0.001143296, %v948_v18  ;;  %v1068_v9 = vmul.f32 3.8918573e-05, %v2745_v7 }
 0x179   :  { %v1619_v48 = vpop.eup %1618  ;;  %vm1163_vm4 = vweird.f32 %v2937_v36  ;;  %v1167_v50 = vand.u32 2147483647, %v2937_v36  ;;  %v714_v59 = vmul.f32 %v713_v44, %v2446_v23  ;;  %v832_v28 = vmul.f32 %v831_v21, %v2609_v19 }
 0x17a   :  { %v602_v61 = vadd.f32 %v1617_v6, %v601_v16  ;;  %v1119_v3 = vmul.f32 %v1619_v48, %v2933_v20  ;;  %v1169_v63 = vand.u32 2147483648, %v2937_v36  ;;  %v950_v56 = vmul.f32 %v949_v62, %v2699_v60  ;;  %v3286_v16 = vld [vmem:[#allocation21_spill] sm:$0xff]  ;;  %v3287_v62 = vld [vmem:[#allocation10_spill] sm:$0xff] }
 0x17b   :  { %v1621_v37 = vpop.eup %1620  ;;  %vm1124_vm6 = vweird.f32 %v1619_v48  ;;  %v715_v27 = vadd.f32 0.4994258, %v714_v59  ;;  %v833_v1 = vadd.f32 0.112945676, %v832_v28  ;;  %v1069_v22 = vadd.f32 0.001143296, %v1068_v9 }
 0x17c   :  { %v606_v49 = vsel %vm605_vm5, %v1617_v6, %v602_v61  ;;  %v1120_v15 = vsub.f32 1.0, %v1119_v3  ;;  %v1159_v54 = vmul.f32 %v1621_v37, %v2937_v36  ;;  %vm1164_vm7 = vweird.f32 %v1621_v37  ;;  %vm1125_vm9 = vmor %vm1123_vm3, %vm1124_vm6 }
 0x17d   :  { %v611_v34 = vsel %vm2954_vm1, %v610_v2, %v606_v49  ;;  %v716_v10 = vmul.f32 %v715_v27, %v2446_v23  ;;  %v834_v52 = vmul.f32 %v833_v1, %v2609_v19  ;;  %v951_v17 = vadd.f32 0.014752088, %v950_v56  ;;  %vm2992_vm10 = vmor %vm1163_vm4, %vm1164_vm7  ;;  %v3288_v56 = vld [vmem:[#allocation13_spill] sm:$0xff]  ;;  %v3289_v27 = vld [vmem:[#allocation20_spill] sm:$0xff] }
 0x17e   :  { %v612_v57 = vmul.f32 %v611_v34, %v2819_v30  ;;  %v1121_v11 = vmul.f32 %v1619_v48, %v1120_v15  ;;  %v1160_v53 = vsub.f32 1.0, %v1159_v54  ;;  %v1070_v12 = vmul.f32 %v1069_v22, %v2745_v7 }
 0x17f   :  { %vm2979_vm8 = vcmp.eq.f32.partialorder %v1127_v58, 8.507059e+37  ;;  %v2983_v47 = vadd.f32 1.0, %v716_v10  ;;  %v835_v42 = vadd.f32 0.4994258, %v834_v52  ;;  %v952_v5 = vmul.f32 %v951_v17, %v2699_v60 }
 0x180   :  { %v1504_v51 = vclamps-f32 %v612_v57, 1.0  ;;  %v1122_v23 = vadd.f32 %v1619_v48, %v1121_v11  ;;  %v1130_v30 = vor.u32 1.1754944e-38, %v1129_v55  ;;  %v1161_v18 = vmul.f32 %v1621_v37, %v1160_v53  ;;  %v3290_v57 = vld [vmem:[#allocation14_spill] sm:$0xff] }
 0x181   :  { %vm2996_vm11 = vcmp.eq.f32.partialorder %v1167_v50, 8.507059e+37  ;;  %v1170_v13 = vor.u32 1.1754944e-38, %v1169_v63  ;;  %1622 = vrcp.f32 %v2983_v47  ;;  %v1071_v31 = vadd.f32 0.014752088, %v1070_v12 }
 0x182   :  { %v1223_v41 = vadd.f32 1.0, %v1504_v51  ;;  %v1126_v20 = vsel %vm1125_vm9, %v1619_v48, %v1122_v23  ;;  %v1162_v45 = vadd.f32 %v1621_v37, %v1161_v18  ;;  %v836_v2 = vmul.f32 %v835_v42, %v2609_v19 }
 0x183   :  { %v943_v36 = vmul.f32 %v2929_v8, %v2699_v60  ;;  %v1062_v58 = vadd.f32 0.05243302, %v2943_v26  ;;  %v1131_v44 = vsel %vm2979_vm8, %v1130_v30, %v1126_v20  ;;  %v953_v21 = vadd.f32 0.112945676, %v952_v5 }
 0x184   :  { %v1247_v55 = vmul.f32 %v1223_v41, %v3286_v16  ;;  %v1132_v9 = vmul.f32 %v1131_v44, %v3287_v62  ;;  %v1166_v50 = vsel %vm2992_vm10, %v1621_v37, %v1162_v45  ;;  %v3011_v48 = vadd.f32 1.0, %v836_v2 }
 0x185   :  { %v1178_v19 = vadd.f32 0.00028619796, %v2948_v35  ;;  %v1171_v8 = vsel %vm2996_vm11, %v1170_v13, %v1166_v50  ;;  %v954_v26 = vmul.f32 %v953_v21, %v2699_v60  ;;  %v1072_v59 = vmul.f32 %v1071_v31, %v2745_v7 }
 0x186   :  { %1417 = vmatmul.f32.gmra.mxu1 %v1247_v55  ;;  %v1517_v28 = vclamps-f32 %v1132_v9, 1.0  ;;  %v1172_v61 = vmul.f32 %v1171_v8, %v2751_v29  ;;  %1624 = vrcp.f32 %v3011_v48  ;;  %v1188_v3 = vmul.f32 3.8918573e-05, %v2931_v46  ;;  %v3291_v9 = vld [vmem:[#allocation19_spill] sm:$0xff] }
 0x187   :  { %v1623_v63 = vpop.eup %1622  ;;  %v229_v37 = vmul.f32 0.5, %v3288_v56  ;;  %v707_v35 = vmul.f32 %v2822_v43, %v3289_v27  ;;  %v826_v1 = vadd.f32 1.1283791, %v2916_v32  ;;  %v955_v22 = vadd.f32 0.4994258, %v954_v26 }
 0x188   :  { %v944_v49 = vadd.f32 0.18741608, %v943_v36  ;;  %v1236_v15 = vadd.f32 1.0, %v1517_v28  ;;  %v1518_v54 = vclamps-f32 %v1172_v61, 1.0  ;;  %v719_v34 = vmul.f32 %v1623_v63, %v2983_v47 }
 0x189   :  { %v1063_v29 = vmul.f32 %v1062_v58, %v2745_v7  ;;  %v1179_v10 = vmul.f32 %v1178_v19, %v2931_v46  ;;  %v956_v52 = vmul.f32 %v955_v22, %v2699_v60  ;;  %v1073_v17 = vadd.f32 0.112945676, %v1072_v59 }
 0x18a   :  { %v1260_v11 = vmul.f32 %v1236_v15, %v3290_v57  ;;  %v1237_v53 = vadd.f32 1.0, %v1518_v54  ;;  %v720_v12 = vsub.f32 1.0, %v719_v34  ;;  %v1189_v43 = vadd.f32 0.001143296, %v1188_v3 }
 0x18b   :  { %v727_v32 = vand.u32 2147483647, %v2983_v47  ;;  %v729_v6 = vand.u32 2147483648, %v2983_v47  ;;  %v3032_v42 = vadd.f32 1.0, %v956_v52  ;;  %v1074_v5 = vmul.f32 %v1073_v17, %v2745_v7  ;;  %v3292_v52 = vld [vmem:[#allocation24_spill] sm:$0xff] }
 0x18c   :  { %v1625_v51 = vpop.eup %1624  ;;  %1316 = vmatmul.f32.gmra.mxu3 %v1260_v11  ;;  %v1261_v23 = vmul.f32 %v1237_v53, %v229_v37  ;;  %v721_v30 = vmul.f32 %v1623_v63, %v720_v12  ;;  %vm724_vm12 = vweird.f32 %v1623_v63  ;;  %v1190_v18 = vmul.f32 %v1189_v43, %v2931_v46 }
 0x18d   :  { %v945_v0 = vmul.f32 %v944_v49, %v2699_v60  ;;  %v1064_v14 = vadd.f32 0.18741608, %v1063_v29  ;;  %v839_v13 = vmul.f32 %v1625_v51, %v3011_v48  ;;  %1626 = vrcp.f32 %v3032_v42 }
 0x18e   :  { %v1180_v31 = vadd.f32 0.0036580483, %v1179_v10  ;;  %1374 = vmatmul.f32.gmra.mxu0 %v1261_v23  ;;  %v722_v41 = vadd.f32 %v1623_v63, %v721_v30  ;;  %vm723_vm13 = vweird.f32 %v2983_v47  ;;  %v1075_v20 = vadd.f32 0.4994258, %v1074_v5  ;;  %v3063_v5 = vld [vmem:[%s3176_s4] sm:$0x7] }
 0x18f   :  { %vm725_vm14 = vmor %vm723_vm13, %vm724_vm12  ;;  %vm728_vm15 = vcmp.eq.f32.partialorder %v727_v32, 8.507059e+37  ;;  %v730_v45 = vor.u32 1.1754944e-38, %v729_v6  ;;  %v840_v2 = vsub.f32 1.0, %v839_v13  ;;  %v1191_v36 = vadd.f32 0.014752088, %v1190_v18  ;;  %v1354_v6 = vpop.f32.mrf.mxu0 }
 0x190   :  { %v726_v58 = vsel %vm725_vm14, %v1623_v63, %v722_v41  ;;  %v847_v44 = vand.u32 2147483647, %v3011_v48  ;;  %v849_v60 = vand.u32 2147483648, %v3011_v48  ;;  %v1076_v21 = vmul.f32 %v1075_v20, %v2745_v7 }
 0x191   :  { %v731_v16 = vsel %vm728_vm15, %v730_v45, %v726_v58  ;;  %v841_v55 = vmul.f32 %v1625_v51, %v840_v2  ;;  %vm844_vm0 = vweird.f32 %v1625_v51  ;;  %v1192_v62 = vmul.f32 %v1191_v36, %v2931_v46 }
 0x192   :  { %v218_v47 = vmul.f32 0.5, %v3291_v9  ;;  %v827_v50 = vmul.f32 %v826_v1, %v2510_v4  ;;  %v732_v19 = vmul.f32 %v731_v16, %v707_v35  ;;  %v3046_v8 = vadd.f32 1.0, %v1076_v21 }
 0x193   :  { %v1627_v26 = vpop.eup %1626  ;;  %v946_v59 = vadd.f32 1.1283791, %v945_v0  ;;  %v842_v28 = vadd.f32 %v1625_v51, %v841_v55  ;;  %vm843_vm1 = vweird.f32 %v3011_v48  ;;  %v1193_v61 = vadd.f32 0.112945676, %v1192_v62 }
 0x194   :  { %v1507_v3 = vclamps-f32 %v732_v19, 1.0  ;;  %vm845_vm2 = vmor %vm843_vm1, %vm844_vm0  ;;  %v850_v63 = vor.u32 1.1754944e-38, %v849_v60  ;;  %v959_v56 = vmul.f32 %v1627_v26, %v3032_v42  ;;  %1628 = vrcp.f32 %v3046_v8 }
 0x195   :  { %v1065_v37 = vmul.f32 %v1064_v14, %v2745_v7  ;;  %v1181_v4 = vmul.f32 %v1180_v31, %v2931_v46  ;;  %v846_v27 = vsel %vm845_vm2, %v1625_v51, %v842_v28  ;;  %vm848_vm3 = vcmp.eq.f32.partialorder %v847_v44, 8.507059e+37  ;;  %v1296_v51 = vpop.f32.mrf.mxu3 }
 0x196   :  { %v1226_v35 = vadd.f32 1.0, %v1507_v3  ;;  %v851_v1 = vsel %vm848_vm3, %v850_v63, %v846_v27  ;;  %v960_v22 = vsub.f32 1.0, %v959_v56  ;;  %v1194_v49 = vmul.f32 %v1193_v61, %v2931_v46 }
 0x197   :  { %v852_v48 = vmul.f32 %v851_v1, %v827_v50  ;;  %v967_v15 = vand.u32 2147483647, %v3032_v42  ;;  %v969_v54 = vand.u32 2147483648, %v3032_v42  ;;  %vm964_vm4 = vweird.f32 %v1627_v26 }
 0x198   :  { %v1250_v34 = vmul.f32 %v1226_v35, %v218_v47  ;;  %v961_v29 = vmul.f32 %v1627_v26, %v960_v22  ;;  %v1195_v10 = vadd.f32 0.4994258, %v1194_v49  ;;  %v221_v7 = vmul.f32 0.5, %v3292_v52 }
 0x199   :  { %v947_v17 = vmul.f32 %v946_v59, %v2650_v24  ;;  %v1182_v57 = vadd.f32 0.05243302, %v1181_v4  ;;  %v1510_v11 = vclamps-f32 %v852_v48, 1.0  ;;  %v1066_v12 = vadd.f32 1.1283791, %v1065_v37 }
 0x19a   :  { %v1629_v53 = vpop.eup %1628  ;;  %1420 = vmatmul.f32.gmra.mxu1 %v1250_v34  ;;  %v962_v43 = vadd.f32 %v1627_v26, %v961_v29  ;;  %vm963_vm5 = vweird.f32 %v3032_v42  ;;  %v1196_v32 = vmul.f32 %v1195_v10, %v2931_v46  ;;  %v970_v24 = vor.u32 1.1754944e-38, %v969_v54 }
 0x19b   :  { %v1229_v23 = vadd.f32 1.0, %v1510_v11  ;;  %vm965_vm6 = vmor %vm963_vm5, %vm964_vm4  ;;  %v1079_v30 = vmul.f32 %v1629_v53, %v3046_v8  ;;  %v3068_v18 = vperm.slane %v3063_v5, 1  ;;  %vm968_vm7 = vcmp.eq.f32.partialorder %v967_v15, 8.507059e+37 }
 0x19c   :  { %v966_v0 = vsel %vm965_vm6, %v1627_v26, %v962_v43  ;;  %v1197_v42 = vadd.f32 1.0, %v1196_v32  ;;  %v3071_v14 = vperm.slane %v3063_v5, 0  ;;  %v1183_v13 = vmul.f32 %v1182_v57, %v2931_v46 }
 0x19d   :  { %v971_v31 = vsel %vm968_vm7, %v970_v24, %v966_v0  ;;  %v1080_v41 = vsub.f32 1.0, %v1079_v30  ;;  %v1445_v20 = vadd.f32 %v3068_v18, %v1354_v6  ;;  %v1253_v45 = vmul.f32 %v1229_v23, %v221_v7 }
 0x19e   :  { %v972_v2 = vmul.f32 %v971_v31, %v947_v17  ;;  %v1089_v36 = vand.u32 2147483648, %v3046_v8  ;;  %1630 = vrcp.f32 %v1197_v42  ;;  %vm1084_vm8 = vweird.f32 %v1629_v53 }
 0x19f   :  { %v1081_v58 = vmul.f32 %v1629_v53, %v1080_v41  ;;  %v1087_v44 = vand.u32 2147483647, %v3046_v8  ;;  %1469 = vst [vmem:[%s3177_s5 + $0x8] sm:$0xff] %v1445_v20  ;;  %v1444_v60 = vadd.f32 %v3071_v14, %v1296_v51  ;;  %v1184_v16 = vadd.f32 0.18741608, %v1183_v13 }
 0x1a0   :  { %v1513_v21 = vclamps-f32 %v972_v2, 1.0  ;;  %vm1083_vm9 = vweird.f32 %v3046_v8  ;;  %v1090_v9 = vor.u32 1.1754944e-38, %v1089_v36  ;;  %v1357_v47 = vpop.f32.mrf.mxu0  ;;  %v1067_v50 = vmul.f32 %v1066_v12, %v2703_v33 }
 0x1a1   :  { %v1082_v55 = vadd.f32 %v1629_v53, %v1081_v58  ;;  %1468 = vst [vmem:[%s3177_s5] sm:$0xff] %v1444_v60  ;;  %vm1085_vm10 = vmor %vm1083_vm9, %vm1084_vm8  ;;  %vm1088_vm11 = vcmp.eq.f32.partialorder %v1087_v44, 8.507059e+37  ;;  %v1448_v26 = vadd.f32 %v3068_v18, %v1357_v47  ;;  %v224_v28 = vmul.f32 0.5, %v2619_v38 }
 0x1a2   :  { %1423 = vmatmul.f32.gmra.mxu1 %v1253_v45  ;;  %v1232_v62 = vadd.f32 1.0, %v1513_v21  ;;  %v1185_v3 = vmul.f32 %v1184_v16, %v2931_v46  ;;  %v1209_v38 = vand.u32 2147483648, %v1197_v42  ;;  %v1207_v46 = vand.u32 2147483647, %v1197_v42 }
 0x1a3   :  { %v1086_v19 = vsel %vm1085_vm10, %v1629_v53, %v1082_v55  ;;  %v1299_v8 = vpop.f32.mrf.mxu3  ;;  %1472 = vst [vmem:[%s3177_s5 + $0x20] sm:$0xff] %v1448_v26  ;;  %vm1203_vm13 = vweird.f32 %v1197_v42  ;;  %v227_v54 = vmul.f32 0.5, %v2685_v39  ;;  %v1440_v43 = vperm.slane %v3063_v5, 2 }
 0x1a4   :  { %v1631_v59 = vpop.eup %1630  ;;  %v1091_v61 = vsel %vm1088_vm11, %v1090_v9, %v1086_v19  ;;  %v1447_v37 = vadd.f32 %v3071_v14, %v1299_v8  ;;  %v1256_v33 = vmul.f32 %v1232_v62, %v224_v28  ;;  %v1186_v35 = vadd.f32 1.1283791, %v1185_v3 }
 0x1a5   :  { %v1092_v63 = vmul.f32 %v1091_v61, %v1067_v50  ;;  %v1199_v56 = vmul.f32 %v1631_v59, %v1197_v42  ;;  %vm1204_vm12 = vweird.f32 %v1631_v59  ;;  %v1210_v34 = vor.u32 1.1754944e-38, %v1209_v38 }
 0x1a6   :  { %1471 = vst [vmem:[%s3177_s5 + $0x18] sm:$0xff] %v1447_v37  ;;  %vm1205_vm14 = vmor %vm1203_vm13, %vm1204_vm12  ;;  %v1187_v10 = vmul.f32 %v1186_v35, %v2843_v40  ;;  %vm1208_vm15 = vcmp.eq.f32.partialorder %v1207_v46, 8.507059e+37  ;;  %v230_v40 = vmul.f32 0.5, %v2825_v25 }
 0x1a7   :  { %v1516_v4 = vclamps-f32 %v1092_v63, 1.0  ;;  %v1200_v27 = vsub.f32 1.0, %v1199_v56 }
 0x1a8   :  { %v1360_v49 = vpop.f32.mrf.mxu0 }
 0x1a9   :  { %v1201_v1 = vmul.f32 %v1631_v59, %v1200_v27  ;;  %v1235_v22 = vadd.f32 1.0, %v1516_v4  ;;  %v1451_v15 = vadd.f32 %v3068_v18, %v1360_v49 }
 0x1aa   :  { %1426 = vmatmul.f32.gmra.mxu1 %v1256_v33 }
 0x1ab   :  { %v1202_v48 = vadd.f32 %v1631_v59, %v1201_v1  ;;  %v1302_v29 = vpop.f32.mrf.mxu3  ;;  %1475 = vst [vmem:[%s3177_s5 + $0x38] sm:$0xff] %v1451_v15  ;;  %v1259_v17 = vmul.f32 %v1235_v22, %v227_v54 }
 0x1ac   :  { %v1450_v7 = vadd.f32 %v3071_v14, %v1302_v29 }
 0x1ad   :  { %v1206_v52 = vsel %vm1205_vm14, %v1631_v59, %v1202_v48 }
 0x1ae   :  { %v1211_v57 = vsel %vm1208_vm15, %v1210_v34, %v1206_v52  ;;  %1474 = vst [vmem:[%s3177_s5 + $0x30] sm:$0xff] %v1450_v7 }
 0x1af   :  { %v1212_v11 = vmul.f32 %v1211_v57, %v1187_v10 }
 0x1b1   :  { %v1519_v39 = vclamps-f32 %v1212_v11, 1.0 }
 0x1b2   :  { %1429 = vmatmul.f32.gmra.mxu1 %v1259_v17 }
 0x1b3   :  { %v1238_v53 = vadd.f32 1.0, %v1519_v39 }
 0x1b5   :  { %v1262_v12 = vmul.f32 %v1238_v53, %v230_v40 }
 0x1b9   :  { %v1412_v32 = vpop.f32.mrf.mxu1 }
 0x1ba   :  { %1432 = vmatmul.f32.gmra.mxu1 %v1262_v12  ;;  %v1446_v6 = vadd.f32 %v1440_v43, %v1412_v32 }
 0x1bc   :  { %v1305_v51 = vpop.f32.mrf.mxu3  ;;  %1470 = vst [vmem:[%s3177_s5 + $0x10] sm:$0xff] %v1446_v6 }
 0x1bd   :  { %v1453_v23 = vadd.f32 %v3071_v14, %v1305_v51 }
 0x1bf   :  { %1477 = vst [vmem:[%s3177_s5 + $0x48] sm:$0xff] %v1453_v23 }
 0x1c2   :  { %v1363_v24 = vpop.f32.mrf.mxu0 }
 0x1c3   :  { %v1454_v25 = vadd.f32 %v3068_v18, %v1363_v24 }
 0x1c5   :  { %1478 = vst [vmem:[%s3177_s5 + $0x50] sm:$0xff] %v1454_v25 }
 0x1d2   :  { %v1366_v5 = vpop.f32.mrf.mxu0 }
 0x1d3   :  { %v1457_v30 = vadd.f32 %v3068_v18, %v1366_v5  ;;  %v1308_v0 = vpop.f32.mrf.mxu3 }
 0x1d4   :  { %v1456_v42 = vadd.f32 %v3071_v14, %v1308_v0 }
 0x1d5   :  { %1481 = vst [vmem:[%s3177_s5 + $0x68] sm:$0xff] %v1457_v30 }
 0x1d6   :  { %1480 = vst [vmem:[%s3177_s5 + $0x60] sm:$0xff] %v1456_v42 }
 0x1de   :  { %v1311_v13 = vpop.f32.mrf.mxu3 }
 0x1df   :  { %v1459_v31 = vadd.f32 %v3071_v14, %v1311_v13 }
 0x1e1   :  { %1483 = vst [vmem:[%s3177_s5 + $0x78] sm:$0xff] %v1459_v31 }
 0x1e7   :  { %v1369_v41 = vpop.f32.mrf.mxu0 }
 0x1e8   :  { %v1460_v20 = vadd.f32 %v3068_v18, %v1369_v41 }
 0x1ea   :  { %1484 = vst [vmem:[%s3177_s5 + $0x80] sm:$0xff] %v1460_v20 }
 0x1ed   :  { %v1415_v45 = vpop.f32.mrf.mxu1 }
 0x1ee   :  { %v1449_v2 = vadd.f32 %v1440_v43, %v1415_v45 }
 0x1f0   :  { %1473 = vst [vmem:[%s3177_s5 + $0x28] sm:$0xff] %v1449_v2 }
 0x1f5   :  { %v1372_v36 = vpop.f32.mrf.mxu0 }
 0x1f6   :  { %v1463_v58 = vadd.f32 %v3068_v18, %v1372_v36 }
 0x1f8   :  { %1487 = vst [vmem:[%s3177_s5 + $0x98] sm:$0xff] %v1463_v58 }
 0x1fa   :  { %v1314_v44 = vpop.f32.mrf.mxu3 }
 0x1fb   :  { %v1462_v60 = vadd.f32 %v3071_v14, %v1314_v44 }
 0x1fd   :  { %1486 = vst [vmem:[%s3177_s5 + $0x90] sm:$0xff] %v1462_v60 }
 0x203   :  { %v1418_v21 = vpop.f32.mrf.mxu1 }
 0x204   :  { %v1452_v16 = vadd.f32 %v1440_v43, %v1418_v21 }
 0x206   :  { %1476 = vst [vmem:[%s3177_s5 + $0x40] sm:$0xff] %v1452_v16 }
 0x20b   :  { %v1375_v55 = vpop.f32.mrf.mxu0 }
 0x20c   :  { %v1466_v62 = vadd.f32 %v3068_v18, %v1375_v55 }
 0x20e   :  { %1490 = vst [vmem:[%s3177_s5 + $0xb0] sm:$0xff] %v1466_v62 }
 0x20f   :  { %v1317_v9 = vpop.f32.mrf.mxu3 }
 0x210   :  { %v1465_v47 = vadd.f32 %v3071_v14, %v1317_v9 }
 0x212   :  { %1489 = vst [vmem:[%s3177_s5 + $0xa8] sm:$0xff] %v1465_v47 }
 0x217   :  { %v1421_v50 = vpop.f32.mrf.mxu1 }
 0x218   :  { %v1455_v19 = vadd.f32 %v1440_v43, %v1421_v50 }
 0x21a   :  { %1479 = vst [vmem:[%s3177_s5 + $0x58] sm:$0xff] %v1455_v19 }
 0x21f   :  { %v1424_v26 = vpop.f32.mrf.mxu1 }
 0x220   :  { %v1458_v59 = vadd.f32 %v1440_v43, %v1424_v26 }
 0x222   :  { %1482 = vst [vmem:[%s3177_s5 + $0x70] sm:$0xff] %v1458_v59 }
 0x227   :  { %v1427_v18 = vpop.f32.mrf.mxu1 }
 0x228   :  { %v1461_v28 = vadd.f32 %v1440_v43, %v1427_v18 }
 0x22a   :  { %1485 = vst [vmem:[%s3177_s5 + $0x88] sm:$0xff] %v1461_v28 }
 0x22f   :  { %v1430_v14 = vpop.f32.mrf.mxu1 }
 0x230   :  { %v1464_v61 = vadd.f32 %v1440_v43, %v1430_v14 }
 0x232   :  { %1488 = vst [vmem:[%s3177_s5 + $0xa0] sm:$0xff] %v1464_v61 }
 0x237   :  { %v1433_v8 = vpop.f32.mrf.mxu1 }
 0x238   :  { %v1467_v3 = vadd.f32 %v1440_v43, %v1433_v8 }
 0x23a   :  { %1491 = vst [vmem:[%s3177_s5 + $0xb8] sm:$0xff] %v1467_v3 }

// kernel: recurrent_block_forward.4
= control target key start
LH: loop header
LB: loop body
LE: loop exit
PB: predicated region body
PF: predicated region fallthrough
CT: control target
= control target key end

     0   :  { %v1599_v60 = vmov 0.0   ;;  %s2915_s1 = inlined_call_operand.vmem [shape: f32[128,512], index: 1, kind: input, shape index: {}]   ;;  %s2916_s0 = inlined_call_operand.vmem [shape: f32[8,8,512], index: 0, kind: input, shape index: {}]   ;;  %s2917_s2 = inlined_call_operand.vmem [shape: f32[8,8,128], index: 2, kind: output, shape index: {}]  }
   0x1   :  { %v1618_v0 = vld [vmem:[%s2915_s1 + $0x1e0] sm:$0xff]  ;;  %v1623_v1 = vld [vmem:[%s2915_s1 + $0x1e8] sm:$0xff]  ;;  %v1628_v2 = vld [vmem:[%s2915_s1 + $0x1f8] sm:$0xff] }
   0x2   :  { %3024 = vst [vmem:[#allocation4_spill] sm:$0xff] %v1628_v2  ;;  %86 = vmatpush.msra.mxu0 %v1618_v0  ;;  %106 = vmatpush.msra.mxu1 %v1623_v1  ;;  %v1635_v3 = vld [vmem:[%s2915_s1 + $0x1c0] sm:$0xff]  ;;  %v1640_v4 = vld [vmem:[%s2915_s1 + $0x1c8] sm:$0xff]  ;;  %v1645_v5 = vld [vmem:[%s2915_s1 + $0x1d8] sm:$0xff] }
   0x3   :  { %146 = vmatpush.msra.mxu3 %v1628_v2  ;;  %v1651_v6 = vld [vmem:[%s2915_s1 + $0x1a0] sm:$0xff]  ;;  %v1656_v7 = vld [vmem:[%s2915_s1 + $0x1a8] sm:$0xff]  ;;  %v1663_v8 = vld [vmem:[%s2915_s1 + $0x1b8] sm:$0xff] }
   0x4   :  { %87 = vmatpush.msra.mxu0 %v1635_v3  ;;  %107 = vmatpush.msra.mxu1 %v1640_v4  ;;  %v1669_v9 = vld [vmem:[%s2915_s1 + $0x180] sm:$0xff]  ;;  %v1674_v10 = vld [vmem:[%s2915_s1 + $0x188] sm:$0xff]  ;;  %v1681_v11 = vld [vmem:[%s2915_s1 + $0x198] sm:$0xff] }
   0x5   :  { %147 = vmatpush.msra.mxu3 %v1645_v5  ;;  %v1687_v12 = vld [vmem:[%s2915_s1 + $0x160] sm:$0xff]  ;;  %v1692_v13 = vld [vmem:[%s2915_s1 + $0x168] sm:$0xff]  ;;  %v1699_v14 = vld [vmem:[%s2915_s1 + $0x178] sm:$0xff] }
   0x6   :  { %88 = vmatpush.msra.mxu0 %v1651_v6  ;;  %108 = vmatpush.msra.mxu1 %v1656_v7  ;;  %v1705_v15 = vld [vmem:[%s2915_s1 + $0x140] sm:$0xff]  ;;  %v1710_v16 = vld [vmem:[%s2915_s1 + $0x148] sm:$0xff]  ;;  %v1715_v17 = vld [vmem:[%s2915_s1 + $0x1f0] sm:$0xff] }
   0x7   :  { %148 = vmatpush.msra.mxu3 %v1663_v8  ;;  %v1722_v18 = vld [vmem:[%s2915_s1 + $0x158] sm:$0xff]  ;;  %v1727_v19 = vld [vmem:[%s2915_s1 + $0x1d0] sm:$0xff]  ;;  %v1733_v20 = vld [vmem:[%s2915_s1 + $0x120] sm:$0xff]  ;;  %126 = vmatpush.msra.mxu2 %v1715_v17 }
   0x8   :  { %89 = vmatpush.msra.mxu0 %v1669_v9  ;;  %109 = vmatpush.msra.mxu1 %v1674_v10  ;;  %v1738_v21 = vld [vmem:[%s2915_s1 + $0x128] sm:$0xff]  ;;  %v1746_v22 = vld [vmem:[%s2915_s1 + $0x138] sm:$0xff]  ;;  %v1751_v23 = vld [vmem:[%s2915_s1 + $0x1b0] sm:$0xff] }
   0x9   :  { %149 = vmatpush.msra.mxu3 %v1681_v11  ;;  %v1757_v24 = vld [vmem:[%s2915_s1 + $0x100] sm:$0xff]  ;;  %v1762_v25 = vld [vmem:[%s2915_s1 + $0x108] sm:$0xff]  ;;  %127 = vmatpush.msra.mxu2 %v1727_v19  ;;  %v1770_v26 = vld [vmem:[%s2915_s1 + $0x118] sm:$0xff] }
   0xa   :  { %90 = vmatpush.msra.mxu0 %v1687_v12  ;;  %110 = vmatpush.msra.mxu1 %v1692_v13  ;;  %v1775_v27 = vld [vmem:[%s2915_s1 + $0x190] sm:$0xff]  ;;  %v1781_v28 = vld [vmem:[%s2915_s1 + $0xe0] sm:$0xff]  ;;  %v1786_v29 = vld [vmem:[%s2915_s1 + $0xe8] sm:$0xff] }
   0xb   :  { %150 = vmatpush.msra.mxu3 %v1699_v14  ;;  %128 = vmatpush.msra.mxu2 %v1751_v23  ;;  %v1794_v30 = vld [vmem:[%s2915_s1 + $0xf8] sm:$0xff]  ;;  %v1799_v31 = vld [vmem:[%s2915_s1 + $0x170] sm:$0xff]  ;;  %v1805_v32 = vld [vmem:[%s2915_s1 + $0xc0] sm:$0xff] }
   0xc   :  { %91 = vmatpush.msra.mxu0 %v1705_v15  ;;  %111 = vmatpush.msra.mxu1 %v1710_v16  ;;  %v1810_v33 = vld [vmem:[%s2915_s1 + $0xc8] sm:$0xff]  ;;  %v1818_v34 = vld [vmem:[%s2915_s1 + $0xd8] sm:$0xff]  ;;  %v1823_v35 = vld [vmem:[%s2915_s1 + $0x150] sm:$0xff] }
   0xd   :  { %151 = vmatpush.msra.mxu3 %v1722_v18  ;;  %129 = vmatpush.msra.mxu2 %v1775_v27  ;;  %3025 = vst [vmem:[#allocation5_spill] sm:$0xff] %v1818_v34  ;;  %v1829_v36 = vld [vmem:[%s2915_s1 + $0xa0] sm:$0xff]  ;;  %v1834_v37 = vld [vmem:[%s2915_s1 + $0xa8] sm:$0xff]  ;;  %v1842_v38 = vld [vmem:[%s2915_s1 + $0xb8] sm:$0xff] }
   0xe   :  { %92 = vmatpush.msra.mxu0 %v1733_v20  ;;  %112 = vmatpush.msra.mxu1 %v1738_v21  ;;  %3026 = vst [vmem:[#allocation6_spill] sm:$0xff] %v1829_v36  ;;  %v1847_v39 = vld [vmem:[%s2915_s1 + $0x130] sm:$0xff]  ;;  %v1853_v40 = vld [vmem:[%s2915_s1 + $0x80] sm:$0xff]  ;;  %v1858_v41 = vld [vmem:[%s2915_s1 + $0x88] sm:$0xff] }
   0xf   :  { %152 = vmatpush.msra.mxu3 %v1746_v22  ;;  %3027 = vst [vmem:[#allocation7_spill] sm:$0xff] %v1834_v37  ;;  %130 = vmatpush.msra.mxu2 %v1799_v31  ;;  %v1866_v42 = vld [vmem:[%s2915_s1 + $0x98] sm:$0xff]  ;;  %v1871_v43 = vld [vmem:[%s2915_s1 + $0x110] sm:$0xff]  ;;  %v1877_v44 = vld [vmem:[%s2915_s1 + $0x60] sm:$0xff] }
  0x10   :  { %93 = vmatpush.msra.mxu0 %v1757_v24  ;;  %113 = vmatpush.msra.mxu1 %v1762_v25  ;;  %3028 = vst [vmem:[#allocation8_spill] sm:$0xff] %v1842_v38  ;;  %v1882_v45 = vld [vmem:[%s2915_s1 + $0x68] sm:$0xff]  ;;  %v1890_v46 = vld [vmem:[%s2915_s1 + $0x78] sm:$0xff]  ;;  %v1895_v47 = vld [vmem:[%s2915_s1 + $0xf0] sm:$0xff] }
  0x11   :  { %153 = vmatpush.msra.mxu3 %v1770_v26  ;;  %3029 = vst [vmem:[#allocation9_spill] sm:$0xff] %v1853_v40  ;;  %131 = vmatpush.msra.mxu2 %v1823_v35  ;;  %v1901_v48 = vld [vmem:[%s2915_s1 + $0x40] sm:$0xff]  ;;  %v1906_v49 = vld [vmem:[%s2915_s1 + $0x48] sm:$0xff]  ;;  %v1914_v50 = vld [vmem:[%s2915_s1 + $0x58] sm:$0xff] }
  0x12   :  { %94 = vmatpush.msra.mxu0 %v1781_v28  ;;  %114 = vmatpush.msra.mxu1 %v1786_v29  ;;  %3030 = vst [vmem:[#allocation10_spill] sm:$0xff] %v1858_v41  ;;  %v1919_v51 = vld [vmem:[%s2915_s1 + $0xd0] sm:$0xff]  ;;  %v1925_v52 = vld [vmem:[%s2915_s1 + $0x20] sm:$0xff]  ;;  %v1930_v53 = vld [vmem:[%s2915_s1 + $0x28] sm:$0xff] }
  0x13   :  { %154 = vmatpush.msra.mxu3 %v1794_v30  ;;  %3031 = vst [vmem:[#allocation11_spill] sm:$0xff] %v1866_v42  ;;  %132 = vmatpush.msra.mxu2 %v1847_v39  ;;  %v1938_v54 = vld [vmem:[%s2915_s1 + $0x38] sm:$0xff]  ;;  %v1943_v55 = vld [vmem:[%s2915_s1 + $0xb0] sm:$0xff]  ;;  %v1949_v56 = vld [vmem:[%s2915_s1] sm:$0xff] }
  0x14   :  { %95 = vmatpush.msra.mxu0 %v1805_v32  ;;  %115 = vmatpush.msra.mxu1 %v1810_v33  ;;  %3032 = vst [vmem:[#allocation12_spill] sm:$0xff] %v1877_v44  ;;  %v1954_v57 = vld [vmem:[%s2915_s1 + $0x8] sm:$0xff]  ;;  %v1962_v58 = vld [vmem:[%s2915_s1 + $0x18] sm:$0xff]  ;;  %v1971_v59 = vld [vmem:[%s2915_s1 + $0x90] sm:$0xff] }
  0x15   :  { %155 = vmatpush.msra.mxu3 %v1818_v34  ;;  %3033 = vst [vmem:[#allocation13_spill] sm:$0xff] %v1882_v45  ;;  %133 = vmatpush.msra.mxu2 %v1871_v43  ;;  %v1977_v61 = vld [vmem:[%s2915_s1 + $0x70] sm:$0xff] }
  0x16   :  { %96 = vmatpush.msra.mxu0 %v1829_v36  ;;  %116 = vmatpush.msra.mxu1 %v1834_v37  ;;  %3034 = vst [vmem:[#allocation14_spill] sm:$0xff] %v1890_v46  ;;  %v1984_v62 = vld [vmem:[%s2915_s1 + $0x50] sm:$0xff] }
  0x17   :  { %156 = vmatpush.msra.mxu3 %v1842_v38  ;;  %3035 = vst [vmem:[#allocation15_spill] sm:$0xff] %v1901_v48  ;;  %134 = vmatpush.msra.mxu2 %v1895_v47  ;;  %v1993_v63 = vld [vmem:[%s2915_s1 + $0x30] sm:$0xff] }
  0x18   :  { %97 = vmatpush.msra.mxu0 %v1853_v40  ;;  %117 = vmatpush.msra.mxu1 %v1858_v41  ;;  %3036 = vst [vmem:[#allocation16_spill] sm:$0xff] %v1906_v49 }
  0x19   :  { %157 = vmatpush.msra.mxu3 %v1866_v42  ;;  %3037 = vst [vmem:[#allocation17_spill] sm:$0xff] %v1914_v50  ;;  %135 = vmatpush.msra.mxu2 %v1919_v51 }
  0x1a   :  { %98 = vmatpush.msra.mxu0 %v1877_v44  ;;  %118 = vmatpush.msra.mxu1 %v1882_v45  ;;  %3038 = vst [vmem:[#allocation18_spill] sm:$0xff] %v1919_v51 }
  0x1b   :  { %158 = vmatpush.msra.mxu3 %v1890_v46  ;;  %3039 = vst [vmem:[#allocation19_spill] sm:$0xff] %v1925_v52  ;;  %136 = vmatpush.msra.mxu2 %v1943_v55 }
  0x1c   :  { %3040 = vst [vmem:[#allocation20_spill] sm:$0xff] %v1930_v53  ;;  %99 = vmatpush.msra.mxu0 %v1901_v48  ;;  %119 = vmatpush.msra.mxu1 %v1906_v49 }
  0x1d   :  { %3041 = vst [vmem:[#allocation21_spill] sm:$0xff] %v1938_v54  ;;  %159 = vmatpush.msra.mxu3 %v1914_v50  ;;  %137 = vmatpush.msra.mxu2 %v1971_v59 }
  0x1e   :  { %3042 = vst [vmem:[#allocation22_spill] sm:$0xff] %v1943_v55  ;;  %100 = vmatpush.msra.mxu0 %v1925_v52  ;;  %120 = vmatpush.msra.mxu1 %v1930_v53 }
  0x1f   :  { %3043 = vst [vmem:[#allocation23_spill] sm:$0xff] %v1949_v56  ;;  %160 = vmatpush.msra.mxu3 %v1938_v54  ;;  %138 = vmatpush.msra.mxu2 %v1977_v61 }
  0x20   :  { %3044 = vst [vmem:[#allocation24_spill] sm:$0xff] %v1954_v57  ;;  %101 = vmatpush.msra.mxu0 %v1949_v56  ;;  %121 = vmatpush.msra.mxu1 %v1954_v57 }
  0x21   :  { %3045 = vst [vmem:[#allocation25_spill] sm:$0xff] %v1962_v58  ;;  %161 = vmatpush.msra.mxu3 %v1962_v58  ;;  %102 = vmatmul.f32.vlgmr.msra.gmra.mxu0 %v1599_v60 }
  0x22   :  { %3046 = vst [vmem:[#allocation26_spill] sm:$0xff] %v1971_v59  ;;  %122 = vmatmul.f32.vlgmr.msra.gmra.mxu1 %v1599_v60  ;;  %162 = vmatmul.f32.vlgmr.msra.gmra.mxu3 %v1599_v60 }
  0x23   :  { %3047 = vst [vmem:[#allocation27_spill] sm:$0xff] %v1977_v61  ;;  %243 = vmatpush.msrb.mxu0 %v1618_v0  ;;  %263 = vmatpush.msrb.mxu1 %v1623_v1 }
  0x24   :  { %3048 = vst [vmem:[#allocation28_spill] sm:$0xff] %v1984_v62  ;;  %303 = vmatpush.msrb.mxu3 %v1628_v2  ;;  %139 = vmatpush.msra.mxu2 %v1984_v62  ;;  %v2002_v2 = vld [vmem:[%s2915_s1 + $0x10] sm:$0xff] }
  0x25   :  { %244 = vmatpush.msrb.mxu0 %v1635_v3  ;;  %3049 = vst [vmem:[#allocation29_spill] sm:$0xff] %v1993_v63  ;;  %264 = vmatpush.msrb.mxu1 %v1640_v4 }
  0x26   :  { %304 = vmatpush.msrb.mxu3 %v1645_v5  ;;  %3050 = vst [vmem:[#allocation30_spill] sm:$0xff] %v2002_v2  ;;  %140 = vmatpush.msra.mxu2 %v1993_v63 }
  0x27   :  { %245 = vmatpush.msrb.mxu0 %v1651_v6  ;;  %265 = vmatpush.msrb.mxu1 %v1656_v7 }
  0x28   :  { %305 = vmatpush.msrb.mxu3 %v1663_v8  ;;  %141 = vmatpush.msra.mxu2 %v2002_v2 }
  0x29   :  { %246 = vmatpush.msrb.mxu0 %v1669_v9  ;;  %266 = vmatpush.msrb.mxu1 %v1674_v10 }
  0x2a   :  { %306 = vmatpush.msrb.mxu3 %v1681_v11  ;;  %142 = vmatmul.f32.vlgmr.msra.gmra.mxu2 %v1599_v60  ;;  %v3051_v60 = vld [vmem:[#allocation4_spill] sm:$0xff] }
  0x2b   :  { %247 = vmatpush.msrb.mxu0 %v1687_v12  ;;  %267 = vmatpush.msrb.mxu1 %v1692_v13 }
  0x2c   :  { %283 = vmatpush.msrb.mxu2 %v1715_v17  ;;  %307 = vmatpush.msrb.mxu3 %v1699_v14 }
  0x2d   :  { %248 = vmatpush.msrb.mxu0 %v1705_v15  ;;  %268 = vmatpush.msrb.mxu1 %v1710_v16 }
  0x2e   :  { %284 = vmatpush.msrb.mxu2 %v1727_v19  ;;  %308 = vmatpush.msrb.mxu3 %v1722_v18 }
  0x2f   :  { %249 = vmatpush.msrb.mxu0 %v1733_v20  ;;  %269 = vmatpush.msrb.mxu1 %v1738_v21 }
  0x30   :  { %285 = vmatpush.msrb.mxu2 %v1751_v23  ;;  %309 = vmatpush.msrb.mxu3 %v1746_v22 }
  0x31   :  { %250 = vmatpush.msrb.mxu0 %v1757_v24  ;;  %270 = vmatpush.msrb.mxu1 %v1762_v25 }
  0x32   :  { %286 = vmatpush.msrb.mxu2 %v1775_v27  ;;  %310 = vmatpush.msrb.mxu3 %v1770_v26 }
  0x33   :  { %251 = vmatpush.msrb.mxu0 %v1781_v28  ;;  %271 = vmatpush.msrb.mxu1 %v1786_v29 }
  0x34   :  { %287 = vmatpush.msrb.mxu2 %v1799_v31  ;;  %311 = vmatpush.msrb.mxu3 %v1794_v30 }
  0x35   :  { %252 = vmatpush.msrb.mxu0 %v1805_v32  ;;  %272 = vmatpush.msrb.mxu1 %v1810_v33 }
  0x36   :  { %288 = vmatpush.msrb.mxu2 %v1823_v35  ;;  %312 = vmatpush.msrb.mxu3 %v1818_v34 }
  0x37   :  { %253 = vmatpush.msrb.mxu0 %v1829_v36  ;;  %273 = vmatpush.msrb.mxu1 %v1834_v37 }
  0x38   :  { %289 = vmatpush.msrb.mxu2 %v1847_v39  ;;  %313 = vmatpush.msrb.mxu3 %v1842_v38 }
  0x39   :  { %254 = vmatpush.msrb.mxu0 %v1853_v40  ;;  %274 = vmatpush.msrb.mxu1 %v1858_v41 }
  0x3a   :  { %290 = vmatpush.msrb.mxu2 %v1871_v43  ;;  %314 = vmatpush.msrb.mxu3 %v1866_v42 }
  0x3b   :  { %255 = vmatpush.msrb.mxu0 %v1877_v44  ;;  %275 = vmatpush.msrb.mxu1 %v1882_v45 }
  0x3c   :  { %291 = vmatpush.msrb.mxu2 %v1895_v47  ;;  %315 = vmatpush.msrb.mxu3 %v1890_v46 }
  0x3d   :  { %256 = vmatpush.msrb.mxu0 %v1901_v48  ;;  %276 = vmatpush.msrb.mxu1 %v1906_v49 }
  0x3e   :  { %292 = vmatpush.msrb.mxu2 %v1919_v51  ;;  %316 = vmatpush.msrb.mxu3 %v1914_v50 }
  0x3f   :  { %257 = vmatpush.msrb.mxu0 %v1925_v52  ;;  %277 = vmatpush.msrb.mxu1 %v1930_v53 }
  0x40   :  { %293 = vmatpush.msrb.mxu2 %v1943_v55  ;;  %317 = vmatpush.msrb.mxu3 %v1938_v54 }
  0x41   :  { %258 = vmatpush.msrb.mxu0 %v1949_v56  ;;  %278 = vmatpush.msrb.mxu1 %v1954_v57 }
  0x42   :  { %294 = vmatpush.msrb.mxu2 %v1971_v59  ;;  %318 = vmatpush.msrb.mxu3 %v1962_v58 }
  0x43   :  { %401 = vmatpush.msra.mxu0 %v1618_v0  ;;  %421 = vmatpush.msra.mxu1 %v1623_v1 }
  0x44   :  { %295 = vmatpush.msrb.mxu2 %v1977_v61  ;;  %461 = vmatpush.msra.mxu3 %v3051_v60 }
  0x45   :  { %402 = vmatpush.msra.mxu0 %v1635_v3  ;;  %422 = vmatpush.msra.mxu1 %v1640_v4 }
  0x46   :  { %296 = vmatpush.msrb.mxu2 %v1984_v62  ;;  %462 = vmatpush.msra.mxu3 %v1645_v5 }
  0x47   :  { %403 = vmatpush.msra.mxu0 %v1651_v6  ;;  %423 = vmatpush.msra.mxu1 %v1656_v7 }
  0x48   :  { %297 = vmatpush.msrb.mxu2 %v1993_v63  ;;  %463 = vmatpush.msra.mxu3 %v1663_v8 }
  0x49   :  { %404 = vmatpush.msra.mxu0 %v1669_v9  ;;  %424 = vmatpush.msra.mxu1 %v1674_v10 }
  0x4a   :  { %298 = vmatpush.msrb.mxu2 %v2002_v2  ;;  %464 = vmatpush.msra.mxu3 %v1681_v11 }
  0x4b   :  { %405 = vmatpush.msra.mxu0 %v1687_v12  ;;  %425 = vmatpush.msra.mxu1 %v1692_v13 }
  0x4c   :  { %441 = vmatpush.msra.mxu2 %v1715_v17  ;;  %465 = vmatpush.msra.mxu3 %v1699_v14 }
  0x4d   :  { %406 = vmatpush.msra.mxu0 %v1705_v15  ;;  %426 = vmatpush.msra.mxu1 %v1710_v16 }
  0x4e   :  { %442 = vmatpush.msra.mxu2 %v1727_v19  ;;  %466 = vmatpush.msra.mxu3 %v1722_v18 }
  0x4f   :  { %407 = vmatpush.msra.mxu0 %v1733_v20  ;;  %427 = vmatpush.msra.mxu1 %v1738_v21 }
  0x50   :  { %443 = vmatpush.msra.mxu2 %v1751_v23  ;;  %467 = vmatpush.msra.mxu3 %v1746_v22 }
  0x51   :  { %408 = vmatpush.msra.mxu0 %v1757_v24  ;;  %428 = vmatpush.msra.mxu1 %v1762_v25 }
  0x52   :  { %444 = vmatpush.msra.mxu2 %v1775_v27  ;;  %468 = vmatpush.msra.mxu3 %v1770_v26 }
  0x53   :  { %409 = vmatpush.msra.mxu0 %v1781_v28  ;;  %429 = vmatpush.msra.mxu1 %v1786_v29 }
  0x54   :  { %445 = vmatpush.msra.mxu2 %v1799_v31  ;;  %469 = vmatpush.msra.mxu3 %v1794_v30 }
  0x55   :  { %410 = vmatpush.msra.mxu0 %v1805_v32  ;;  %430 = vmatpush.msra.mxu1 %v1810_v33 }
  0x56   :  { %446 = vmatpush.msra.mxu2 %v1823_v35  ;;  %470 = vmatpush.msra.mxu3 %v1818_v34 }
  0x57   :  { %411 = vmatpush.msra.mxu0 %v1829_v36  ;;  %431 = vmatpush.msra.mxu1 %v1834_v37 }
  0x58   :  { %447 = vmatpush.msra.mxu2 %v1847_v39  ;;  %471 = vmatpush.msra.mxu3 %v1842_v38 }
  0x59   :  { %412 = vmatpush.msra.mxu0 %v1853_v40  ;;  %432 = vmatpush.msra.mxu1 %v1858_v41 }
  0x5a   :  { %448 = vmatpush.msra.mxu2 %v1871_v43  ;;  %472 = vmatpush.msra.mxu3 %v1866_v42 }
  0x5b   :  { %413 = vmatpush.msra.mxu0 %v1877_v44  ;;  %433 = vmatpush.msra.mxu1 %v1882_v45 }
  0x5c   :  { %449 = vmatpush.msra.mxu2 %v1895_v47  ;;  %473 = vmatpush.msra.mxu3 %v1890_v46 }
  0x5d   :  { %414 = vmatpush.msra.mxu0 %v1901_v48  ;;  %434 = vmatpush.msra.mxu1 %v1906_v49 }
  0x5e   :  { %450 = vmatpush.msra.mxu2 %v1919_v51  ;;  %474 = vmatpush.msra.mxu3 %v1914_v50 }
  0x5f   :  { %415 = vmatpush.msra.mxu0 %v1925_v52  ;;  %435 = vmatpush.msra.mxu1 %v1930_v53 }
  0x60   :  { %451 = vmatpush.msra.mxu2 %v1943_v55  ;;  %475 = vmatpush.msra.mxu3 %v1938_v54  ;;  %v82_v54 = vld [vmem:[%s2916_s0] sm:$0xff] }
  0x61   :  { %416 = vmatpush.msra.mxu0 %v1949_v56  ;;  %436 = vmatpush.msra.mxu1 %v1954_v57  ;;  %v83_v56 = vld [vmem:[%s2916_s0 + $0x8] sm:$0xff] }
  0x62   :  { %452 = vmatpush.msra.mxu2 %v1971_v59  ;;  %476 = vmatpush.msra.mxu3 %v1962_v58 }
  0x64   :  { %453 = vmatpush.msra.mxu2 %v1977_v61 }
  0x66   :  { %454 = vmatpush.msra.mxu2 %v1984_v62 }
  0x68   :  { %455 = vmatpush.msra.mxu2 %v1993_v63  ;;  %v85_v63 = vld [vmem:[%s2916_s0 + $0x18] sm:$0xff] }
  0x6a   :  { %456 = vmatpush.msra.mxu2 %v2002_v2 }
  0x9e   :  { %v103_v53 = vpop.f32.mrf.mxu0 }
  0x9f   :  { %v166_v57 = vadd.f32 %v103_v53, %v82_v54  ;;  %v123_v52 = vpop.f32.mrf.mxu1 }
  0xa0   :  { %v167_v58 = vadd.f32 %v123_v52, %v83_v56  ;;  %v84_v52 = vld [vmem:[%s2916_s0 + $0x10] sm:$0xff] }
  0xa1   :  { %v1347_v50 = vmul.f32 -1.442695, %v166_v57 }
  0xa2   :  { %v1348_v49 = vmul.f32 -1.442695, %v167_v58 }
  0xa3   :  { %1407 = vpow2.f32 %v1347_v50 }
  0xa4   :  { %1409 = vpow2.f32 %v1348_v49 }
  0xa5   :  { %v163_v2 = vpop.f32.mrf.mxu3 }
  0xa6   :  { %v169_v62 = vadd.f32 %v163_v2, %v85_v63 }
  0xa8   :  { %v1349_v48 = vmul.f32 -1.442695, %v169_v62 }
  0xa9   :  { %v1408_v46 = vpop.eup %1407 }
  0xaa   :  { %v1410_v61 = vpop.eup %1409  ;;  %v173_v45 = vadd.f32 1.0, %v1408_v46  ;;  %1411 = vpow2.f32 %v1349_v48 }
  0xab   :  { %v192_v44 = vadd.f32 1.0, %v1410_v61 }
  0xac   :  { %1413 = vrcp.f32 %v173_v45  ;;  %v185_v48 = vand.u32 2147483648, %v173_v45  ;;  %v183_v42 = vand.u32 2147483647, %v173_v45  ;;  %vm179_vm2 = vweird.f32 %v173_v45 }
  0xad   :  { %1415 = vrcp.f32 %v192_v44  ;;  %v143_v50 = vpop.f32.mrf.mxu2  ;;  %v204_v61 = vand.u32 2147483648, %v192_v44  ;;  %v202_v41 = vand.u32 2147483647, %v192_v44  ;;  %vm198_vm3 = vweird.f32 %v192_v44 }
  0xae   :  { %v168_v54 = vadd.f32 %v143_v50, %v84_v52  ;;  %vm184_vm5 = vcmp.eq.f32.partialorder %v183_v42, 8.507059e+37 }
  0xaf   :  { %vm203_vm7 = vcmp.eq.f32.partialorder %v202_v41, 8.507059e+37 }
  0xb0   :  { %v1412_v53 = vpop.eup %1411 }
  0xb1   :  { %v212_v56 = vadd.f32 1.0, %v1412_v53  ;;  %v186_v53 = vor.u32 1.1754944e-38, %v185_v48  ;;  %v3059_v48 = vld [vmem:[#allocation10_spill] sm:$0xff] }
  0xb2   :  { %v1414_v57 = vpop.eup %1413 }
  0xb3   :  { %v1416_v49 = vpop.eup %1415  ;;  %v175_v58 = vmul.f32 %v1414_v57, %v173_v45  ;;  %1417 = vrcp.f32 %v212_v56  ;;  %vm180_vm0 = vweird.f32 %v1414_v57  ;;  %v224_v45 = vand.u32 2147483648, %v212_v56 }
  0xb4   :  { %v194_v2 = vmul.f32 %v1416_v49, %v192_v44  ;;  %1419 = vtanh.f32 %v168_v54  ;;  %vm199_vm1 = vweird.f32 %v1416_v49  ;;  %vm181_vm4 = vmor %vm179_vm2, %vm180_vm0  ;;  %v205_v54 = vor.u32 1.1754944e-38, %v204_v61  ;;  %v3060_v61 = vld [vmem:[#allocation26_spill] sm:$0xff] }
  0xb5   :  { %v176_v62 = vsub.f32 1.0, %v175_v58  ;;  %vm200_vm6 = vmor %vm198_vm3, %vm199_vm1  ;;  %vm218_vm9 = vweird.f32 %v212_v56  ;;  %v225_v42 = vor.u32 1.1754944e-38, %v224_v45  ;;  %v3070_v45 = vld [vmem:[#allocation19_spill] sm:$0xff] }
  0xb6   :  { %v195_v46 = vsub.f32 1.0, %v194_v2 }
  0xb7   :  { %v177_v63 = vmul.f32 %v1414_v57, %v176_v62 }
  0xb8   :  { %v196_v59 = vmul.f32 %v1416_v49, %v195_v46 }
  0xb9   :  { %v1418_v40 = vpop.eup %1417  ;;  %v178_v38 = vadd.f32 %v1414_v57, %v177_v63 }
  0xba   :  { %v1420_v52 = vpop.eup %1419  ;;  %v214_v50 = vmul.f32 %v1418_v40, %v212_v56  ;;  %v197_v55 = vadd.f32 %v1416_v49, %v196_v59  ;;  %vm219_vm8 = vweird.f32 %v1418_v40  ;;  %v222_v59 = vand.u32 2147483647, %v212_v56  ;;  %v3057_v56 = vld [vmem:[#allocation8_spill] sm:$0xff] }
  0xbb   :  { %v182_v58 = vsel %vm181_vm4, %v1414_v57, %v178_v38  ;;  %vm220_vm10 = vmor %vm218_vm9, %vm219_vm8 }
  0xbc   :  { %v215_v2 = vsub.f32 1.0, %v214_v50  ;;  %v187_v62 = vsel %vm184_vm5, %v186_v53, %v182_v58  ;;  %v201_v37 = vsel %vm200_vm6, %v1416_v49, %v197_v55  ;;  %vm223_vm11 = vcmp.eq.f32.partialorder %v222_v59, 8.507059e+37  ;;  %v3058_v49 = vld [vmem:[#allocation9_spill] sm:$0xff]  ;;  %v3062_v50 = vld [vmem:[#allocation12_spill] sm:$0xff]  ;;  %v3065_v58 = vld [vmem:[#allocation14_spill] sm:$0xff] }
  0xbd   :  { %v206_v46 = vsel %vm203_vm7, %v205_v54, %v201_v37  ;;  %v230_v36 = vmul.f32 %v1420_v52, %v187_v62  ;;  %v3054_v37 = vld [vmem:[#allocation6_spill] sm:$0xff]  ;;  %v3061_v52 = vld [vmem:[#allocation11_spill] sm:$0xff]  ;;  %v3063_v53 = vld [vmem:[#allocation13_spill] sm:$0xff] }
  0xbe   :  { %v216_v34 = vmul.f32 %v1418_v40, %v215_v2  ;;  %v229_v51 = vmul.f32 0.0, %v206_v46  ;;  %v3064_v54 = vld [vmem:[#allocation27_spill] sm:$0xff]  ;;  %v3067_v62 = vld [vmem:[#allocation16_spill] sm:$0xff] }
  0xbf   :  { %v3066_v2 = vld [vmem:[#allocation15_spill] sm:$0xff]  ;;  %v3068_v46 = vld [vmem:[#allocation28_spill] sm:$0xff] }
  0xc0   :  { %v2139_v63 = vadd.f32 %v230_v36, %v229_v51  ;;  %v217_v44 = vadd.f32 %v1418_v40, %v216_v34  ;;  %v3052_v34 = vld [vmem:[#allocation18_spill] sm:$0xff]  ;;  %v3053_v36 = vld [vmem:[#allocation5_spill] sm:$0xff]  ;;  %v3071_v59 = vld [vmem:[#allocation20_spill] sm:$0xff] }
  0xc1   :  { %v3056_v51 = vld [vmem:[#allocation22_spill] sm:$0xff] }
  0xc2   :  { %1421 = vtanh.f32 %v2139_v63  ;;  %v221_v38 = vsel %vm220_vm10, %v1418_v40, %v217_v44  ;;  %v3055_v40 = vld [vmem:[#allocation7_spill] sm:$0xff]  ;;  %v3069_v44 = vld [vmem:[#allocation17_spill] sm:$0xff] }
  0xc3   :  { %v226_v55 = vsel %vm223_vm11, %v225_v42, %v221_v38  ;;  %v3072_v38 = vld [vmem:[#allocation29_spill] sm:$0xff] }
  0xc4   :  { %v3073_v42 = vld [vmem:[#allocation21_spill] sm:$0xff] }
  0xc8   :  { %v1422_v57 = vpop.eup %1421 }
  0xc9   :  { %v233_v41 = vmul.f32 %v1422_v57, %v226_v55  ;;  %v3074_v57 = vld [vmem:[#allocation23_spill] sm:$0xff]  ;;  %v3075_v55 = vld [vmem:[#allocation24_spill] sm:$0xff] }
  0xcb   :  { %236 = vst [vmem:[%s2917_s2] sm:$0xff] %v233_v41  ;;  %259 = vmatmul.f32.vlgmr.msrb.gmra.mxu0 %v233_v41  ;;  %279 = vmatmul.f32.vlgmr.msrb.gmra.mxu1 %v233_v41 }
  0xcc   :  { %299 = vmatmul.f32.vlgmr.msrb.gmra.mxu2 %v233_v41  ;;  %319 = vmatmul.f32.vlgmr.msrb.gmra.mxu3 %v233_v41  ;;  %v3076_v41 = vld [vmem:[#allocation30_spill] sm:$0xff] }
  0xcd   :  { %559 = vmatpush.msrb.mxu0 %v1618_v0  ;;  %579 = vmatpush.msrb.mxu1 %v1623_v1 }
  0xce   :  { %599 = vmatpush.msrb.mxu2 %v1715_v17  ;;  %619 = vmatpush.msrb.mxu3 %v3051_v60 }
  0xcf   :  { %560 = vmatpush.msrb.mxu0 %v1635_v3  ;;  %580 = vmatpush.msrb.mxu1 %v1640_v4 }
  0xd0   :  { %600 = vmatpush.msrb.mxu2 %v1727_v19  ;;  %620 = vmatpush.msrb.mxu3 %v1645_v5 }
  0xd1   :  { %561 = vmatpush.msrb.mxu0 %v1651_v6  ;;  %581 = vmatpush.msrb.mxu1 %v1656_v7 }
  0xd2   :  { %601 = vmatpush.msrb.mxu2 %v1751_v23  ;;  %621 = vmatpush.msrb.mxu3 %v1663_v8 }
  0xd3   :  { %562 = vmatpush.msrb.mxu0 %v1669_v9  ;;  %582 = vmatpush.msrb.mxu1 %v1674_v10 }
  0xd4   :  { %602 = vmatpush.msrb.mxu2 %v1775_v27  ;;  %622 = vmatpush.msrb.mxu3 %v1681_v11 }
  0xd5   :  { %563 = vmatpush.msrb.mxu0 %v1687_v12  ;;  %583 = vmatpush.msrb.mxu1 %v1692_v13 }
  0xd6   :  { %603 = vmatpush.msrb.mxu2 %v1799_v31  ;;  %623 = vmatpush.msrb.mxu3 %v1699_v14 }
  0xd7   :  { %564 = vmatpush.msrb.mxu0 %v1705_v15  ;;  %584 = vmatpush.msrb.mxu1 %v1710_v16 }
  0xd8   :  { %604 = vmatpush.msrb.mxu2 %v1823_v35  ;;  %624 = vmatpush.msrb.mxu3 %v1722_v18 }
  0xd9   :  { %565 = vmatpush.msrb.mxu0 %v1733_v20  ;;  %585 = vmatpush.msrb.mxu1 %v1738_v21 }
  0xda   :  { %605 = vmatpush.msrb.mxu2 %v1847_v39  ;;  %625 = vmatpush.msrb.mxu3 %v1746_v22 }
  0xdb   :  { %566 = vmatpush.msrb.mxu0 %v1757_v24  ;;  %586 = vmatpush.msrb.mxu1 %v1762_v25 }
  0xdc   :  { %606 = vmatpush.msrb.mxu2 %v1871_v43  ;;  %626 = vmatpush.msrb.mxu3 %v1770_v26 }
  0xdd   :  { %567 = vmatpush.msrb.mxu0 %v1781_v28  ;;  %587 = vmatpush.msrb.mxu1 %v1786_v29 }
  0xde   :  { %607 = vmatpush.msrb.mxu2 %v1895_v47  ;;  %627 = vmatpush.msrb.mxu3 %v1794_v30 }
  0xdf   :  { %568 = vmatpush.msrb.mxu0 %v1805_v32  ;;  %588 = vmatpush.msrb.mxu1 %v1810_v33 }
  0xe0   :  { %608 = vmatpush.msrb.mxu2 %v3052_v34  ;;  %628 = vmatpush.msrb.mxu3 %v3053_v36 }
  0xe1   :  { %569 = vmatpush.msrb.mxu0 %v3054_v37  ;;  %589 = vmatpush.msrb.mxu1 %v3055_v40 }
  0xe2   :  { %609 = vmatpush.msrb.mxu2 %v3056_v51  ;;  %629 = vmatpush.msrb.mxu3 %v3057_v56 }
  0xe3   :  { %570 = vmatpush.msrb.mxu0 %v3058_v49  ;;  %590 = vmatpush.msrb.mxu1 %v3059_v48 }
  0xe4   :  { %610 = vmatpush.msrb.mxu2 %v3060_v61  ;;  %630 = vmatpush.msrb.mxu3 %v3061_v52 }
  0xe5   :  { %571 = vmatpush.msrb.mxu0 %v3062_v50  ;;  %591 = vmatpush.msrb.mxu1 %v3063_v53 }
  0xe6   :  { %611 = vmatpush.msrb.mxu2 %v3064_v54  ;;  %631 = vmatpush.msrb.mxu3 %v3065_v58 }
  0xe7   :  { %572 = vmatpush.msrb.mxu0 %v3066_v2  ;;  %592 = vmatpush.msrb.mxu1 %v3067_v62  ;;  %v3077_v2 = vld [vmem:[#allocation25_spill] sm:$0xff] }
  0xe8   :  { %612 = vmatpush.msrb.mxu2 %v3068_v46  ;;  %632 = vmatpush.msrb.mxu3 %v3069_v44  ;;  %v1350_v44 = vld [vmem:[%s2916_s0 + $0x20] sm:$0xff] }
  0xe9   :  { %573 = vmatpush.msrb.mxu0 %v3070_v45  ;;  %593 = vmatpush.msrb.mxu1 %v3071_v59  ;;  %v1351_v59 = vld [vmem:[%s2916_s0 + $0x28] sm:$0xff] }
  0xea   :  { %613 = vmatpush.msrb.mxu2 %v3072_v38  ;;  %633 = vmatpush.msrb.mxu3 %v3073_v42 }
  0xeb   :  { %574 = vmatpush.msrb.mxu0 %v3074_v57  ;;  %594 = vmatpush.msrb.mxu1 %v3075_v55 }
  0xec   :  { %614 = vmatpush.msrb.mxu2 %v3076_v41  ;;  %634 = vmatpush.msrb.mxu3 %v3077_v2  ;;  %v1353_v41 = vld [vmem:[%s2916_s0 + $0x38] sm:$0xff] }
 0x148   :  { %v260_v45 = vpop.f32.mrf.mxu0  ;;  %v280_v38 = vpop.f32.mrf.mxu1 }
 0x149   :  { %v323_v46 = vadd.f32 %v1350_v44, %v260_v45  ;;  %v324_v42 = vadd.f32 %v1351_v59, %v280_v38 }
 0x14b   :  { %v1354_v62 = vmul.f32 -1.442695, %v323_v46  ;;  %v1355_v57 = vmul.f32 -1.442695, %v324_v42  ;;  %v1352_v46 = vld [vmem:[%s2916_s0 + $0x30] sm:$0xff] }
 0x14d   :  { %1423 = vpow2.f32 %v1354_v62 }
 0x14e   :  { %1425 = vpow2.f32 %v1355_v57 }
 0x14f   :  { %v320_v2 = vpop.f32.mrf.mxu3  ;;  %v300_v62 = vpop.f32.mrf.mxu2 }
 0x150   :  { %v326_v55 = vadd.f32 %v1353_v41, %v320_v2  ;;  %v325_v38 = vadd.f32 %v1352_v46, %v300_v62 }
 0x152   :  { %v1356_v58 = vmul.f32 -1.442695, %v326_v55 }
 0x153   :  { %v1424_v54 = vpop.eup %1423 }
 0x154   :  { %v1426_v53 = vpop.eup %1425  ;;  %v330_v50 = vadd.f32 1.0, %v1424_v54  ;;  %1427 = vpow2.f32 %v1356_v58 }
 0x155   :  { %v349_v52 = vadd.f32 1.0, %v1426_v53 }
 0x156   :  { %1429 = vrcp.f32 %v330_v50  ;;  %v342_v54 = vand.u32 2147483648, %v330_v50  ;;  %v340_v61 = vand.u32 2147483647, %v330_v50  ;;  %vm336_vm14 = vweird.f32 %v330_v50 }
 0x157   :  { %1431 = vrcp.f32 %v349_v52  ;;  %v361_v53 = vand.u32 2147483648, %v349_v52  ;;  %v359_v49 = vand.u32 2147483647, %v349_v52  ;;  %vm355_vm15 = vweird.f32 %v349_v52 }
 0x158   :  { %v343_v46 = vor.u32 1.1754944e-38, %v342_v54  ;;  %vm341_vm2 = vcmp.eq.f32.partialorder %v340_v61, 8.507059e+37 }
 0x159   :  { %vm360_vm3 = vcmp.eq.f32.partialorder %v359_v49, 8.507059e+37 }
 0x15a   :  { %v1428_v44 = vpop.eup %1427 }
 0x15b   :  { %v369_v45 = vadd.f32 1.0, %v1428_v44 }
 0x15c   :  { %v1430_v59 = vpop.eup %1429 }
 0x15d   :  { %v1432_v42 = vpop.eup %1431  ;;  %v332_v57 = vmul.f32 %v1430_v59, %v330_v50  ;;  %1433 = vrcp.f32 %v369_v45  ;;  %vm337_vm12 = vweird.f32 %v1430_v59  ;;  %vm375_vm5 = vweird.f32 %v369_v45 }
 0x15e   :  { %v351_v2 = vmul.f32 %v1432_v42, %v349_v52  ;;  %1435 = vtanh.f32 %v325_v38  ;;  %vm356_vm13 = vweird.f32 %v1432_v42  ;;  %vm338_vm0 = vmor %vm336_vm14, %vm337_vm12 }
 0x15f   :  { %v333_v55 = vsub.f32 1.0, %v332_v57  ;;  %vm357_vm1 = vmor %vm355_vm15, %vm356_vm13  ;;  %v362_v57 = vor.u32 1.1754944e-38, %v361_v53 }
 0x160   :  { %v352_v41 = vsub.f32 1.0, %v351_v2 }
 0x161   :  { %v334_v58 = vmul.f32 %v1430_v59, %v333_v55 }
 0x162   :  { %v353_v48 = vmul.f32 %v1432_v42, %v352_v41 }
 0x163   :  { %v1434_v56 = vpop.eup %1433  ;;  %v335_v51 = vadd.f32 %v1430_v59, %v334_v58 }
 0x164   :  { %v354_v62 = vadd.f32 %v1432_v42, %v353_v48  ;;  %v371_v44 = vmul.f32 %v1434_v56, %v369_v45  ;;  %v1436_v38 = vpop.eup %1435  ;;  %vm376_vm4 = vweird.f32 %v1434_v56  ;;  %v381_v48 = vand.u32 2147483648, %v369_v45 }
 0x165   :  { %v339_v2 = vsel %vm338_vm0, %v1430_v59, %v335_v51  ;;  %v379_v51 = vand.u32 2147483647, %v369_v45  ;;  %vm377_vm6 = vmor %vm375_vm5, %vm376_vm4 }
 0x166   :  { %v344_v40 = vsel %vm341_vm2, %v343_v46, %v339_v2  ;;  %v358_v55 = vsel %vm357_vm1, %v1432_v42, %v354_v62  ;;  %v372_v37 = vsub.f32 1.0, %v371_v44  ;;  %v382_v59 = vor.u32 1.1754944e-38, %v381_v48 }
 0x167   :  { %v363_v41 = vsel %vm360_vm3, %v362_v57, %v358_v55  ;;  %v387_v36 = vmul.f32 %v1436_v38, %v344_v40  ;;  %vm380_vm7 = vcmp.eq.f32.partialorder %v379_v51, 8.507059e+37  ;;  %v1360_v40 = vld [vmem:[%s2916_s0 + $0x50] sm:$0xff] }
 0x168   :  { %v386_v34 = vmul.f32 %v363_v41, %v2139_v63  ;;  %v373_v58 = vmul.f32 %v1434_v56, %v372_v37 }
 0x16a   :  { %v2222_v50 = vadd.f32 %v387_v36, %v386_v34  ;;  %v374_v52 = vadd.f32 %v1434_v56, %v373_v58 }
 0x16c   :  { %1437 = vtanh.f32 %v2222_v50  ;;  %v378_v61 = vsel %vm377_vm6, %v1434_v56, %v374_v52 }
 0x16d   :  { %v383_v42 = vsel %vm380_vm7, %v382_v59, %v378_v61 }
 0x172   :  { %v1438_v49 = vpop.eup %1437 }
 0x173   :  { %v390_v54 = vmul.f32 %v1438_v49, %v383_v42 }
 0x175   :  { %1357 = vst [vmem:[%s2917_s2 + $0x8] sm:$0xff] %v390_v54  ;;  %417 = vmatmul.f32.vlgmr.msra.gmra.mxu0 %v390_v54  ;;  %437 = vmatmul.f32.vlgmr.msra.gmra.mxu1 %v390_v54 }
 0x176   :  { %457 = vmatmul.f32.vlgmr.msra.gmra.mxu2 %v390_v54  ;;  %477 = vmatmul.f32.vlgmr.msra.gmra.mxu3 %v390_v54 }
 0x177   :  { %717 = vmatpush.msra.mxu0 %v1618_v0  ;;  %737 = vmatpush.msra.mxu1 %v1623_v1  ;;  %v3078_v0 = vld [vmem:[#allocation18_spill] sm:$0xff]  ;;  %v3079_v1 = vld [vmem:[#allocation5_spill] sm:$0xff] }
 0x178   :  { %757 = vmatpush.msra.mxu2 %v1715_v17  ;;  %777 = vmatpush.msra.mxu3 %v3051_v60  ;;  %v3094_v17 = vld [vmem:[#allocation28_spill] sm:$0xff] }
 0x179   :  { %718 = vmatpush.msra.mxu0 %v1635_v3  ;;  %738 = vmatpush.msra.mxu1 %v1640_v4  ;;  %v3080_v3 = vld [vmem:[#allocation6_spill] sm:$0xff]  ;;  %v3081_v4 = vld [vmem:[#allocation7_spill] sm:$0xff] }
 0x17a   :  { %758 = vmatpush.msra.mxu2 %v1727_v19  ;;  %778 = vmatpush.msra.mxu3 %v1645_v5  ;;  %v3082_v5 = vld [vmem:[#allocation22_spill] sm:$0xff]  ;;  %v3096_v19 = vld [vmem:[#allocation19_spill] sm:$0xff] }
 0x17b   :  { %719 = vmatpush.msra.mxu0 %v1651_v6  ;;  %739 = vmatpush.msra.mxu1 %v1656_v7  ;;  %v3083_v6 = vld [vmem:[#allocation8_spill] sm:$0xff]  ;;  %v3084_v7 = vld [vmem:[#allocation9_spill] sm:$0xff] }
 0x17c   :  { %759 = vmatpush.msra.mxu2 %v1751_v23  ;;  %779 = vmatpush.msra.mxu3 %v1663_v8  ;;  %v3085_v8 = vld [vmem:[#allocation10_spill] sm:$0xff]  ;;  %v3100_v23 = vld [vmem:[#allocation23_spill] sm:$0xff] }
 0x17d   :  { %720 = vmatpush.msra.mxu0 %v1669_v9  ;;  %740 = vmatpush.msra.mxu1 %v1674_v10  ;;  %v3086_v9 = vld [vmem:[#allocation26_spill] sm:$0xff]  ;;  %v3087_v10 = vld [vmem:[#allocation11_spill] sm:$0xff] }
 0x17e   :  { %760 = vmatpush.msra.mxu2 %v1775_v27  ;;  %780 = vmatpush.msra.mxu3 %v1681_v11  ;;  %v3088_v11 = vld [vmem:[#allocation12_spill] sm:$0xff] }
 0x17f   :  { %721 = vmatpush.msra.mxu0 %v1687_v12  ;;  %741 = vmatpush.msra.mxu1 %v1692_v13  ;;  %v3089_v12 = vld [vmem:[#allocation13_spill] sm:$0xff]  ;;  %v3090_v13 = vld [vmem:[#allocation27_spill] sm:$0xff]  ;;  %v1358_v27 = vld [vmem:[%s2916_s0 + $0x40] sm:$0xff] }
 0x180   :  { %761 = vmatpush.msra.mxu2 %v1799_v31  ;;  %781 = vmatpush.msra.mxu3 %v1699_v14  ;;  %v3091_v14 = vld [vmem:[#allocation14_spill] sm:$0xff] }
 0x181   :  { %722 = vmatpush.msra.mxu0 %v1705_v15  ;;  %742 = vmatpush.msra.mxu1 %v1710_v16  ;;  %v3092_v15 = vld [vmem:[#allocation15_spill] sm:$0xff]  ;;  %v3093_v16 = vld [vmem:[#allocation16_spill] sm:$0xff] }
 0x182   :  { %762 = vmatpush.msra.mxu2 %v1823_v35  ;;  %782 = vmatpush.msra.mxu3 %v1722_v18  ;;  %v3095_v18 = vld [vmem:[#allocation17_spill] sm:$0xff] }
 0x183   :  { %723 = vmatpush.msra.mxu0 %v1733_v20  ;;  %743 = vmatpush.msra.mxu1 %v1738_v21  ;;  %v3097_v20 = vld [vmem:[#allocation20_spill] sm:$0xff]  ;;  %v3098_v21 = vld [vmem:[#allocation29_spill] sm:$0xff] }
 0x184   :  { %763 = vmatpush.msra.mxu2 %v1847_v39  ;;  %783 = vmatpush.msra.mxu3 %v1746_v22  ;;  %v3099_v22 = vld [vmem:[#allocation21_spill] sm:$0xff]  ;;  %v1361_v39 = vld [vmem:[%s2916_s0 + $0x58] sm:$0xff] }
 0x185   :  { %724 = vmatpush.msra.mxu0 %v1757_v24  ;;  %744 = vmatpush.msra.mxu1 %v1762_v25  ;;  %v3101_v24 = vld [vmem:[#allocation24_spill] sm:$0xff]  ;;  %v3102_v25 = vld [vmem:[#allocation30_spill] sm:$0xff] }
 0x186   :  { %764 = vmatpush.msra.mxu2 %v1871_v43  ;;  %784 = vmatpush.msra.mxu3 %v1770_v26  ;;  %v3103_v26 = vld [vmem:[#allocation25_spill] sm:$0xff] }
 0x187   :  { %725 = vmatpush.msra.mxu0 %v1781_v28  ;;  %745 = vmatpush.msra.mxu1 %v1786_v29  ;;  %v1359_v28 = vld [vmem:[%s2916_s0 + $0x48] sm:$0xff] }
 0x188   :  { %765 = vmatpush.msra.mxu2 %v1895_v47  ;;  %785 = vmatpush.msra.mxu3 %v1794_v30 }
 0x189   :  { %726 = vmatpush.msra.mxu0 %v1805_v32  ;;  %746 = vmatpush.msra.mxu1 %v1810_v33 }
 0x18a   :  { %766 = vmatpush.msra.mxu2 %v3078_v0  ;;  %786 = vmatpush.msra.mxu3 %v3079_v1 }
 0x18b   :  { %727 = vmatpush.msra.mxu0 %v3080_v3  ;;  %747 = vmatpush.msra.mxu1 %v3081_v4 }
 0x18c   :  { %767 = vmatpush.msra.mxu2 %v3082_v5  ;;  %787 = vmatpush.msra.mxu3 %v3083_v6 }
 0x18d   :  { %728 = vmatpush.msra.mxu0 %v3084_v7  ;;  %748 = vmatpush.msra.mxu1 %v3085_v8 }
 0x18e   :  { %768 = vmatpush.msra.mxu2 %v3086_v9  ;;  %788 = vmatpush.msra.mxu3 %v3087_v10 }
 0x18f   :  { %729 = vmatpush.msra.mxu0 %v3088_v11  ;;  %749 = vmatpush.msra.mxu1 %v3089_v12 }
 0x190   :  { %769 = vmatpush.msra.mxu2 %v3090_v13  ;;  %789 = vmatpush.msra.mxu3 %v3091_v14 }
 0x191   :  { %730 = vmatpush.msra.mxu0 %v3092_v15  ;;  %750 = vmatpush.msra.mxu1 %v3093_v16 }
 0x192   :  { %770 = vmatpush.msra.mxu2 %v3094_v17  ;;  %790 = vmatpush.msra.mxu3 %v3095_v18 }
 0x193   :  { %731 = vmatpush.msra.mxu0 %v3096_v19  ;;  %751 = vmatpush.msra.mxu1 %v3097_v20 }
 0x194   :  { %771 = vmatpush.msra.mxu2 %v3098_v21  ;;  %791 = vmatpush.msra.mxu3 %v3099_v22  ;;  %v2320_v21 = vld [vmem:[%s2915_s1 + $0x1e8] sm:$0xff]  ;;  %v2326_v22 = vld [vmem:[%s2915_s1 + $0x1f0] sm:$0xff] }
 0x195   :  { %732 = vmatpush.msra.mxu0 %v3100_v23  ;;  %752 = vmatpush.msra.mxu1 %v3101_v24  ;;  %v2332_v23 = vld [vmem:[%s2915_s1 + $0x1f8] sm:$0xff]  ;;  %v2338_v24 = vld [vmem:[%s2915_s1 + $0x1c0] sm:$0xff] }
 0x196   :  { %772 = vmatpush.msra.mxu2 %v3102_v25  ;;  %792 = vmatpush.msra.mxu3 %v3103_v26  ;;  %v2344_v25 = vld [vmem:[%s2915_s1 + $0x1c8] sm:$0xff]  ;;  %v2350_v26 = vld [vmem:[%s2915_s1 + $0x1d0] sm:$0xff] }
 0x1f2   :  { %v418_v29 = vpop.f32.mrf.mxu0  ;;  %v438_v30 = vpop.f32.mrf.mxu1 }
 0x1f3   :  { %v481_v31 = vadd.f32 %v1358_v27, %v418_v29  ;;  %v482_v32 = vadd.f32 %v1359_v28, %v438_v30  ;;  %v2356_v27 = vld [vmem:[%s2915_s1 + $0x1d8] sm:$0xff]  ;;  %v2362_v28 = vld [vmem:[%s2915_s1 + $0x1a0] sm:$0xff]  ;;  %v2368_v29 = vld [vmem:[%s2915_s1 + $0x1a8] sm:$0xff] }
 0x1f4   :  { %v2374_v30 = vld [vmem:[%s2915_s1 + $0x1b0] sm:$0xff] }
 0x1f5   :  { %v1362_v33 = vmul.f32 -1.442695, %v481_v31  ;;  %v1363_v35 = vmul.f32 -1.442695, %v482_v32  ;;  %v2380_v31 = vld [vmem:[%s2915_s1 + $0x1b8] sm:$0xff]  ;;  %v2386_v32 = vld [vmem:[%s2915_s1 + $0x180] sm:$0xff] }
 0x1f7   :  { %1439 = vpow2.f32 %v1362_v33  ;;  %v2392_v33 = vld [vmem:[%s2915_s1 + $0x188] sm:$0xff] }
 0x1f8   :  { %1441 = vpow2.f32 %v1363_v35  ;;  %v2398_v35 = vld [vmem:[%s2915_s1 + $0x190] sm:$0xff] }
 0x1f9   :  { %v478_v43 = vpop.f32.mrf.mxu3  ;;  %v458_v56 = vpop.f32.mrf.mxu2 }
 0x1fa   :  { %v484_v47 = vadd.f32 %v1361_v39, %v478_v43  ;;  %v483_v62 = vadd.f32 %v1360_v40, %v458_v56  ;;  %v2404_v39 = vld [vmem:[%s2915_s1 + $0x198] sm:$0xff]  ;;  %v2410_v43 = vld [vmem:[%s2915_s1 + $0x160] sm:$0xff] }
 0x1fb   :  { %v2452_v40 = vld [vmem:[%s2915_s1 + $0x158] sm:$0xff]  ;;  %v2458_v56 = vld [vmem:[%s2915_s1 + $0x120] sm:$0xff] }
 0x1fc   :  { %v1364_v60 = vmul.f32 -1.442695, %v484_v47  ;;  %v2416_v47 = vld [vmem:[%s2915_s1 + $0x168] sm:$0xff] }
 0x1fd   :  { %v1440_v63 = vpop.eup %1439 }
 0x1fe   :  { %v1442_v34 = vpop.eup %1441  ;;  %v488_v36 = vadd.f32 1.0, %v1440_v63  ;;  %1443 = vpow2.f32 %v1364_v60  ;;  %v2422_v60 = vld [vmem:[%s2915_s1 + $0x170] sm:$0xff]  ;;  %v2428_v63 = vld [vmem:[%s2915_s1 + $0x178] sm:$0xff] }
 0x1ff   :  { %v507_v37 = vadd.f32 1.0, %v1442_v34  ;;  %v2434_v34 = vld [vmem:[%s2915_s1 + $0x140] sm:$0xff] }
 0x200   :  { %1445 = vrcp.f32 %v488_v36  ;;  %v500_v41 = vand.u32 2147483648, %v488_v36  ;;  %v498_v48 = vand.u32 2147483647, %v488_v36  ;;  %vm494_vm10 = vweird.f32 %v488_v36 }
 0x201   :  { %1447 = vrcp.f32 %v507_v37  ;;  %v519_v58 = vand.u32 2147483648, %v507_v37  ;;  %v517_v61 = vand.u32 2147483647, %v507_v37  ;;  %vm513_vm11 = vweird.f32 %v507_v37 }
 0x202   :  { %v501_v42 = vor.u32 1.1754944e-38, %v500_v41  ;;  %vm499_vm14 = vcmp.eq.f32.partialorder %v498_v48, 8.507059e+37  ;;  %v2518_v41 = vld [vmem:[%s2915_s1 + $0xf0] sm:$0xff]  ;;  %v2536_v48 = vld [vmem:[%s2915_s1 + $0xc8] sm:$0xff] }
 0x203   :  { %v520_v1 = vor.u32 1.1754944e-38, %v519_v58  ;;  %vm518_vm15 = vcmp.eq.f32.partialorder %v517_v61, 8.507059e+37  ;;  %v2524_v58 = vld [vmem:[%s2915_s1 + $0xf8] sm:$0xff] }
 0x204   :  { %v1444_v45 = vpop.eup %1443  ;;  %v2548_v61 = vld [vmem:[%s2915_s1 + $0xd8] sm:$0xff] }
 0x205   :  { %v527_v53 = vadd.f32 1.0, %v1444_v45  ;;  %v2464_v45 = vld [vmem:[%s2915_s1 + $0x128] sm:$0xff]  ;;  %3105 = vst [vmem:[#allocation18_spill] sm:$0xff] %v2548_v61 }
 0x206   :  { %v1446_v46 = vpop.eup %1445 }
 0x207   :  { %v1448_v44 = vpop.eup %1447  ;;  %v490_v57 = vmul.f32 %v1446_v46, %v488_v36  ;;  %1449 = vrcp.f32 %v527_v53  ;;  %vm495_vm8 = vweird.f32 %v1446_v46  ;;  %v539_v14 = vand.u32 2147483648, %v527_v53  ;;  %v2440_v36 = vld [vmem:[%s2915_s1 + $0x148] sm:$0xff] }
 0x208   :  { %v509_v2 = vmul.f32 %v1448_v44, %v507_v37  ;;  %1451 = vtanh.f32 %v483_v62  ;;  %vm514_vm9 = vweird.f32 %v1448_v44  ;;  %vm496_vm12 = vmor %vm494_vm10, %vm495_vm8  ;;  %vm533_vm1 = vweird.f32 %v527_v53  ;;  %v2446_v37 = vld [vmem:[%s2915_s1 + $0x150] sm:$0xff]  ;;  %v2482_v62 = vld [vmem:[%s2915_s1 + $0x100] sm:$0xff] }
 0x209   :  { %v491_v38 = vsub.f32 1.0, %v490_v57  ;;  %vm515_vm13 = vmor %vm513_vm11, %vm514_vm9  ;;  %v537_v15 = vand.u32 2147483647, %v527_v53  ;;  %v540_v17 = vor.u32 1.1754944e-38, %v539_v14  ;;  %v2494_v57 = vld [vmem:[%s2915_s1 + $0x110] sm:$0xff]  ;;  %v2650_v14 = vld [vmem:[%s2915_s1 + $0x20] sm:$0xff] }
 0x20a   :  { %v510_v55 = vsub.f32 1.0, %v509_v2  ;;  %v2500_v2 = vld [vmem:[%s2915_s1 + $0x118] sm:$0xff]  ;;  %3122 = vst [vmem:[#allocation17_spill] sm:$0xff] %v2650_v14 }
 0x20b   :  { %v492_v52 = vmul.f32 %v1446_v46, %v491_v38  ;;  %vm538_vm3 = vcmp.eq.f32.partialorder %v537_v15, 8.507059e+37  ;;  %v2506_v38 = vld [vmem:[%s2915_s1 + $0xe0] sm:$0xff]  ;;  %v2656_v15 = vld [vmem:[%s2915_s1 + $0x28] sm:$0xff] }
 0x20c   :  { %v511_v51 = vmul.f32 %v1448_v44, %v510_v55  ;;  %v2512_v55 = vld [vmem:[%s2915_s1 + $0xe8] sm:$0xff]  ;;  %3123 = vst [vmem:[#allocation19_spill] sm:$0xff] %v2656_v15 }
 0x20d   :  { %v1450_v59 = vpop.eup %1449  ;;  %v493_v49 = vadd.f32 %v1446_v46, %v492_v52  ;;  %v2530_v52 = vld [vmem:[%s2915_s1 + $0xc0] sm:$0xff] }
 0x20e   :  { %v512_v54 = vadd.f32 %v1448_v44, %v511_v51  ;;  %v529_v0 = vmul.f32 %v1450_v59, %v527_v53  ;;  %v1452_v4 = vpop.eup %1451  ;;  %vm534_vm0 = vweird.f32 %v1450_v59  ;;  %v2470_v53 = vld [vmem:[%s2915_s1 + $0x130] sm:$0xff] }
 0x20f   :  { %v497_v3 = vsel %vm496_vm12, %v1446_v46, %v493_v49  ;;  %vm535_vm2 = vmor %vm533_vm1, %vm534_vm0  ;;  %v2476_v46 = vld [vmem:[%s2915_s1 + $0x138] sm:$0xff]  ;;  %v2542_v51 = vld [vmem:[%s2915_s1 + $0xd0] sm:$0xff] }
 0x210   :  { %v502_v5 = vsel %vm499_vm14, %v501_v42, %v497_v3  ;;  %v516_v6 = vsel %vm515_vm13, %v1448_v44, %v512_v54  ;;  %v530_v7 = vsub.f32 1.0, %v529_v0  ;;  %v2488_v44 = vld [vmem:[%s2915_s1 + $0x108] sm:$0xff]  ;;  %3104 = vst [vmem:[#allocation4_spill] sm:$0xff] %v2542_v51  ;;  %v2566_v42 = vld [vmem:[%s2915_s1 + $0xb0] sm:$0xff]  ;;  %v2572_v54 = vld [vmem:[%s2915_s1 + $0xb8] sm:$0xff] }
 0x211   :  { %v521_v8 = vsel %vm518_vm15, %v520_v1, %v516_v6  ;;  %v545_v9 = vmul.f32 %v1452_v4, %v502_v5  ;;  %v2560_v49 = vld [vmem:[%s2915_s1 + $0xa8] sm:$0xff]  ;;  %3108 = vst [vmem:[#allocation7_spill] sm:$0xff] %v2566_v42  ;;  %v2578_v0 = vld [vmem:[%s2915_s1 + $0x80] sm:$0xff]  ;;  %v2590_v3 = vld [vmem:[%s2915_s1 + $0x90] sm:$0xff] }
 0x212   :  { %v544_v10 = vmul.f32 %v521_v8, %v2222_v50  ;;  %v531_v11 = vmul.f32 %v1450_v59, %v530_v7  ;;  %v2314_v50 = vld [vmem:[%s2915_s1 + $0x1e0] sm:$0xff]  ;;  %3107 = vst [vmem:[#allocation6_spill] sm:$0xff] %v2560_v49  ;;  %v2584_v1 = vld [vmem:[%s2915_s1 + $0x88] sm:$0xff]  ;;  %v2596_v4 = vld [vmem:[%s2915_s1 + $0x98] sm:$0xff] }
 0x213   :  { %3109 = vst [vmem:[#allocation22_spill] sm:$0xff] %v2572_v54  ;;  %v2602_v5 = vld [vmem:[%s2915_s1 + $0x60] sm:$0xff]  ;;  %v2608_v6 = vld [vmem:[%s2915_s1 + $0x68] sm:$0xff]  ;;  %v2614_v7 = vld [vmem:[%s2915_s1 + $0x70] sm:$0xff] }
 0x214   :  { %v2305_v12 = vadd.f32 %v545_v9, %v544_v10  ;;  %v532_v13 = vadd.f32 %v1450_v59, %v531_v11  ;;  %3110 = vst [vmem:[#allocation8_spill] sm:$0xff] %v2578_v0  ;;  %v2620_v8 = vld [vmem:[%s2915_s1 + $0x78] sm:$0xff]  ;;  %v2626_v9 = vld [vmem:[%s2915_s1 + $0x40] sm:$0xff]  ;;  %v2632_v10 = vld [vmem:[%s2915_s1 + $0x48] sm:$0xff] }
 0x215   :  { %3111 = vst [vmem:[#allocation9_spill] sm:$0xff] %v2584_v1  ;;  %v2638_v11 = vld [vmem:[%s2915_s1 + $0x50] sm:$0xff] }
 0x216   :  { %1453 = vtanh.f32 %v2305_v12  ;;  %v536_v16 = vsel %vm535_vm2, %v1450_v59, %v532_v13  ;;  %v2554_v59 = vld [vmem:[%s2915_s1 + $0xa0] sm:$0xff]  ;;  %3112 = vst [vmem:[#allocation10_spill] sm:$0xff] %v2590_v3  ;;  %v2644_v13 = vld [vmem:[%s2915_s1 + $0x58] sm:$0xff] }
 0x217   :  { %v541_v19 = vsel %vm538_vm3, %v540_v17, %v536_v16  ;;  %3106 = vst [vmem:[#allocation5_spill] sm:$0xff] %v2554_v59  ;;  %v2662_v16 = vld [vmem:[%s2915_s1 + $0x30] sm:$0xff]  ;;  %v2668_v17 = vld [vmem:[%s2915_s1 + $0x38] sm:$0xff] }
 0x218   :  { %3113 = vst [vmem:[#allocation26_spill] sm:$0xff] %v2596_v4 }
 0x219   :  { %3114 = vst [vmem:[#allocation11_spill] sm:$0xff] %v2602_v5 }
 0x21a   :  { %3115 = vst [vmem:[#allocation12_spill] sm:$0xff] %v2608_v6 }
 0x21b   :  { %3116 = vst [vmem:[#allocation13_spill] sm:$0xff] %v2614_v7 }
 0x21c   :  { %v1454_v18 = vpop.eup %1453  ;;  %3117 = vst [vmem:[#allocation27_spill] sm:$0xff] %v2620_v8 }
 0x21d   :  { %v548_v20 = vmul.f32 %v1454_v18, %v541_v19  ;;  %3118 = vst [vmem:[#allocation14_spill] sm:$0xff] %v2626_v9  ;;  %v2674_v18 = vld [vmem:[%s2915_s1] sm:$0xff]  ;;  %v2680_v19 = vld [vmem:[%s2915_s1 + $0x8] sm:$0xff] }
 0x21e   :  { %3119 = vst [vmem:[#allocation15_spill] sm:$0xff] %v2632_v10 }
 0x21f   :  { %1365 = vst [vmem:[%s2917_s2 + $0x10] sm:$0xff] %v548_v20  ;;  %575 = vmatmul.f32.vlgmr.msrb.gmra.mxu0 %v548_v20  ;;  %595 = vmatmul.f32.vlgmr.msrb.gmra.mxu1 %v548_v20 }
 0x220   :  { %615 = vmatmul.f32.vlgmr.msrb.gmra.mxu2 %v548_v20  ;;  %635 = vmatmul.f32.vlgmr.msrb.gmra.mxu3 %v548_v20  ;;  %3120 = vst [vmem:[#allocation16_spill] sm:$0xff] %v2638_v11  ;;  %v2686_v20 = vld [vmem:[%s2915_s1 + $0x10] sm:$0xff] }
 0x221   :  { %875 = vmatpush.msrb.mxu0 %v2314_v50  ;;  %895 = vmatpush.msrb.mxu1 %v2320_v21  ;;  %3121 = vst [vmem:[#allocation28_spill] sm:$0xff] %v2644_v13 }
 0x222   :  { %915 = vmatpush.msrb.mxu2 %v2326_v22  ;;  %935 = vmatpush.msrb.mxu3 %v2332_v23  ;;  %3124 = vst [vmem:[#allocation20_spill] sm:$0xff] %v2662_v16 }
 0x223   :  { %876 = vmatpush.msrb.mxu0 %v2338_v24  ;;  %896 = vmatpush.msrb.mxu1 %v2344_v25  ;;  %3125 = vst [vmem:[#allocation29_spill] sm:$0xff] %v2668_v17 }
 0x224   :  { %916 = vmatpush.msrb.mxu2 %v2350_v26  ;;  %936 = vmatpush.msrb.mxu3 %v2356_v27  ;;  %3126 = vst [vmem:[#allocation21_spill] sm:$0xff] %v2674_v18 }
 0x225   :  { %877 = vmatpush.msrb.mxu0 %v2362_v28  ;;  %897 = vmatpush.msrb.mxu1 %v2368_v29  ;;  %3127 = vst [vmem:[#allocation23_spill] sm:$0xff] %v2680_v19 }
 0x226   :  { %917 = vmatpush.msrb.mxu2 %v2374_v30  ;;  %937 = vmatpush.msrb.mxu3 %v2380_v31  ;;  %3128 = vst [vmem:[#allocation24_spill] sm:$0xff] %v2686_v20 }
 0x227   :  { %878 = vmatpush.msrb.mxu0 %v2386_v32  ;;  %898 = vmatpush.msrb.mxu1 %v2392_v33 }
 0x228   :  { %918 = vmatpush.msrb.mxu2 %v2398_v35  ;;  %938 = vmatpush.msrb.mxu3 %v2404_v39 }
 0x229   :  { %879 = vmatpush.msrb.mxu0 %v2410_v43  ;;  %899 = vmatpush.msrb.mxu1 %v2416_v47 }
 0x22a   :  { %919 = vmatpush.msrb.mxu2 %v2422_v60  ;;  %939 = vmatpush.msrb.mxu3 %v2428_v63 }
 0x22b   :  { %880 = vmatpush.msrb.mxu0 %v2434_v34  ;;  %900 = vmatpush.msrb.mxu1 %v2440_v36 }
 0x22c   :  { %920 = vmatpush.msrb.mxu2 %v2446_v37  ;;  %940 = vmatpush.msrb.mxu3 %v2452_v40 }
 0x22d   :  { %881 = vmatpush.msrb.mxu0 %v2458_v56  ;;  %901 = vmatpush.msrb.mxu1 %v2464_v45 }
 0x22e   :  { %921 = vmatpush.msrb.mxu2 %v2470_v53  ;;  %941 = vmatpush.msrb.mxu3 %v2476_v46 }
 0x22f   :  { %882 = vmatpush.msrb.mxu0 %v2482_v62  ;;  %902 = vmatpush.msrb.mxu1 %v2488_v44 }
 0x230   :  { %922 = vmatpush.msrb.mxu2 %v2494_v57  ;;  %942 = vmatpush.msrb.mxu3 %v2500_v2 }
 0x231   :  { %883 = vmatpush.msrb.mxu0 %v2506_v38  ;;  %903 = vmatpush.msrb.mxu1 %v2512_v55 }
 0x232   :  { %923 = vmatpush.msrb.mxu2 %v2518_v41  ;;  %943 = vmatpush.msrb.mxu3 %v2524_v58 }
 0x233   :  { %884 = vmatpush.msrb.mxu0 %v2530_v52  ;;  %904 = vmatpush.msrb.mxu1 %v2536_v48 }
 0x234   :  { %924 = vmatpush.msrb.mxu2 %v2542_v51  ;;  %944 = vmatpush.msrb.mxu3 %v2548_v61 }
 0x235   :  { %885 = vmatpush.msrb.mxu0 %v2554_v59  ;;  %905 = vmatpush.msrb.mxu1 %v2560_v49 }
 0x236   :  { %925 = vmatpush.msrb.mxu2 %v2566_v42  ;;  %945 = vmatpush.msrb.mxu3 %v2572_v54 }
 0x237   :  { %886 = vmatpush.msrb.mxu0 %v2578_v0  ;;  %906 = vmatpush.msrb.mxu1 %v2584_v1 }
 0x238   :  { %926 = vmatpush.msrb.mxu2 %v2590_v3  ;;  %946 = vmatpush.msrb.mxu3 %v2596_v4 }
 0x239   :  { %887 = vmatpush.msrb.mxu0 %v2602_v5  ;;  %907 = vmatpush.msrb.mxu1 %v2608_v6 }
 0x23a   :  { %927 = vmatpush.msrb.mxu2 %v2614_v7  ;;  %947 = vmatpush.msrb.mxu3 %v2620_v8 }
 0x23b   :  { %888 = vmatpush.msrb.mxu0 %v2626_v9  ;;  %908 = vmatpush.msrb.mxu1 %v2632_v10  ;;  %v1369_v10 = vld [vmem:[%s2916_s0 + $0x78] sm:$0xff] }
 0x23c   :  { %928 = vmatpush.msrb.mxu2 %v2638_v11  ;;  %948 = vmatpush.msrb.mxu3 %v2644_v13 }
 0x23d   :  { %889 = vmatpush.msrb.mxu0 %v2650_v14  ;;  %909 = vmatpush.msrb.mxu1 %v2656_v15 }
 0x23e   :  { %929 = vmatpush.msrb.mxu2 %v2662_v16  ;;  %949 = vmatpush.msrb.mxu3 %v2668_v17  ;;  %v2692_v17 = vld [vmem:[%s2915_s1 + $0x18] sm:$0xff] }
 0x23f   :  { %890 = vmatpush.msrb.mxu0 %v2674_v18  ;;  %910 = vmatpush.msrb.mxu1 %v2680_v19  ;;  %3129 = vst [vmem:[#allocation30_spill] sm:$0xff] %v2692_v17  ;;  %v1366_v18 = vld [vmem:[%s2916_s0 + $0x60] sm:$0xff]  ;;  %v1367_v19 = vld [vmem:[%s2916_s0 + $0x68] sm:$0xff] }
 0x240   :  { %930 = vmatpush.msrb.mxu2 %v2686_v20  ;;  %950 = vmatpush.msrb.mxu3 %v2692_v17 }
 0x29c   :  { %v576_v16 = vpop.f32.mrf.mxu0  ;;  %v596_v15 = vpop.f32.mrf.mxu1 }
 0x29d   :  { %v639_v14 = vadd.f32 %v1366_v18, %v576_v16  ;;  %v640_v13 = vadd.f32 %v1367_v19, %v596_v15 }
 0x29f   :  { %v1370_v20 = vmul.f32 -1.442695, %v639_v14  ;;  %v1371_v11 = vmul.f32 -1.442695, %v640_v13  ;;  %v1368_v13 = vld [vmem:[%s2916_s0 + $0x70] sm:$0xff] }
 0x2a1   :  { %1455 = vpow2.f32 %v1370_v20 }
 0x2a2   :  { %1457 = vpow2.f32 %v1371_v11 }
 0x2a3   :  { %v636_v17 = vpop.f32.mrf.mxu3  ;;  %v616_v14 = vpop.f32.mrf.mxu2 }
 0x2a4   :  { %v642_v9 = vadd.f32 %v1369_v10, %v636_v17  ;;  %v641_v19 = vadd.f32 %v1368_v13, %v616_v14 }
 0x2a6   :  { %v1372_v8 = vmul.f32 -1.442695, %v642_v9 }
 0x2a7   :  { %v1456_v7 = vpop.eup %1455 }
 0x2a8   :  { %v1458_v6 = vpop.eup %1457  ;;  %v646_v5 = vadd.f32 1.0, %v1456_v7  ;;  %1459 = vpow2.f32 %v1372_v8 }
 0x2a9   :  { %v665_v4 = vadd.f32 1.0, %v1458_v6 }
 0x2aa   :  { %1461 = vrcp.f32 %v646_v5  ;;  %v658_v7 = vand.u32 2147483648, %v646_v5  ;;  %v656_v3 = vand.u32 2147483647, %v646_v5  ;;  %vm652_vm6 = vweird.f32 %v646_v5 }
 0x2ab   :  { %1463 = vrcp.f32 %v665_v4  ;;  %v677_v6 = vand.u32 2147483648, %v665_v4  ;;  %v675_v0 = vand.u32 2147483647, %v665_v4  ;;  %vm671_vm7 = vweird.f32 %v665_v4 }
 0x2ac   :  { %v659_v13 = vor.u32 1.1754944e-38, %v658_v7  ;;  %vm657_vm10 = vcmp.eq.f32.partialorder %v656_v3, 8.507059e+37 }
 0x2ad   :  { %vm676_vm11 = vcmp.eq.f32.partialorder %v675_v0, 8.507059e+37 }
 0x2ae   :  { %v1460_v15 = vpop.eup %1459 }
 0x2af   :  { %v685_v16 = vadd.f32 1.0, %v1460_v15 }
 0x2b0   :  { %v1462_v18 = vpop.eup %1461 }
 0x2b1   :  { %v1464_v11 = vpop.eup %1463  ;;  %v648_v20 = vmul.f32 %v1462_v18, %v646_v5  ;;  %1465 = vrcp.f32 %v685_v16  ;;  %vm653_vm4 = vweird.f32 %v1462_v18  ;;  %vm691_vm13 = vweird.f32 %v685_v16 }
 0x2b2   :  { %v667_v9 = vmul.f32 %v1464_v11, %v665_v4  ;;  %1467 = vtanh.f32 %v641_v19  ;;  %vm672_vm5 = vweird.f32 %v1464_v11  ;;  %vm654_vm8 = vmor %vm652_vm6, %vm653_vm4 }
 0x2b3   :  { %v649_v10 = vsub.f32 1.0, %v648_v20  ;;  %vm673_vm9 = vmor %vm671_vm7, %vm672_vm5  ;;  %v678_v20 = vor.u32 1.1754944e-38, %v677_v6  ;;  %v3137_v6 = vld [vmem:[#allocation9_spill] sm:$0xff] }
 0x2b4   :  { %v668_v17 = vsub.f32 1.0, %v667_v9 }
 0x2b5   :  { %v650_v8 = vmul.f32 %v1462_v18, %v649_v10 }
 0x2b6   :  { %v669_v1 = vmul.f32 %v1464_v11, %v668_v17 }
 0x2b7   :  { %v1466_v54 = vpop.eup %1465  ;;  %v651_v42 = vadd.f32 %v1462_v18, %v650_v8 }
 0x2b8   :  { %v670_v14 = vadd.f32 %v1464_v11, %v669_v1  ;;  %v687_v15 = vmul.f32 %v1466_v54, %v685_v16  ;;  %v1468_v19 = vpop.eup %1467  ;;  %vm692_vm12 = vweird.f32 %v1466_v54  ;;  %v697_v1 = vand.u32 2147483648, %v685_v16 }
 0x2b9   :  { %v655_v9 = vsel %vm654_vm8, %v1462_v18, %v651_v42  ;;  %v695_v42 = vand.u32 2147483647, %v685_v16  ;;  %vm693_vm14 = vmor %vm691_vm13, %vm692_vm12  ;;  %v3136_v16 = vld [vmem:[#allocation8_spill] sm:$0xff] }
 0x2ba   :  { %v660_v49 = vsel %vm657_vm10, %v659_v13, %v655_v9  ;;  %v674_v10 = vsel %vm673_vm9, %v1464_v11, %v670_v14  ;;  %v688_v59 = vsub.f32 1.0, %v687_v15  ;;  %v698_v18 = vor.u32 1.1754944e-38, %v697_v1  ;;  %v3138_v13 = vld [vmem:[#allocation10_spill] sm:$0xff]  ;;  %v3140_v15 = vld [vmem:[#allocation11_spill] sm:$0xff]  ;;  %v3142_v9 = vld [vmem:[#allocation13_spill] sm:$0xff] }
 0x2bb   :  { %v679_v17 = vsel %vm676_vm11, %v678_v20, %v674_v10  ;;  %v703_v61 = vmul.f32 %v1468_v19, %v660_v49  ;;  %vm696_vm15 = vcmp.eq.f32.partialorder %v695_v42, 8.507059e+37  ;;  %v3134_v49 = vld [vmem:[#allocation7_spill] sm:$0xff]  ;;  %v3139_v14 = vld [vmem:[#allocation26_spill] sm:$0xff]  ;;  %v3141_v20 = vld [vmem:[#allocation12_spill] sm:$0xff] }
 0x2bc   :  { %v702_v51 = vmul.f32 %v679_v17, %v2305_v12  ;;  %v689_v8 = vmul.f32 %v1466_v54, %v688_v59  ;;  %v3130_v12 = vld [vmem:[#allocation4_spill] sm:$0xff]  ;;  %v3133_v59 = vld [vmem:[#allocation6_spill] sm:$0xff]  ;;  %v3143_v19 = vld [vmem:[#allocation27_spill] sm:$0xff] }
 0x2bd   :  { %v3144_v10 = vld [vmem:[#allocation14_spill] sm:$0xff]  ;;  %v3145_v17 = vld [vmem:[#allocation15_spill] sm:$0xff]  ;;  %v3148_v1 = vld [vmem:[#allocation17_spill] sm:$0xff] }
 0x2be   :  { %v2708_v5 = vadd.f32 %v703_v61, %v702_v51  ;;  %v690_v4 = vadd.f32 %v1466_v54, %v689_v8  ;;  %v3131_v51 = vld [vmem:[#allocation18_spill] sm:$0xff]  ;;  %v3132_v61 = vld [vmem:[#allocation5_spill] sm:$0xff]  ;;  %v3146_v8 = vld [vmem:[#allocation16_spill] sm:$0xff] }
 0x2bf   :  { %v3149_v42 = vld [vmem:[#allocation19_spill] sm:$0xff] }
 0x2c0   :  { %1469 = vtanh.f32 %v2708_v5  ;;  %v694_v3 = vsel %vm693_vm14, %v1466_v54, %v690_v4  ;;  %v3135_v54 = vld [vmem:[#allocation22_spill] sm:$0xff]  ;;  %v3147_v4 = vld [vmem:[#allocation28_spill] sm:$0xff] }
 0x2c1   :  { %v699_v11 = vsel %vm696_vm15, %v698_v18, %v694_v3  ;;  %v3150_v3 = vld [vmem:[#allocation20_spill] sm:$0xff]  ;;  %v3151_v18 = vld [vmem:[#allocation29_spill] sm:$0xff] }
 0x2c6   :  { %v1470_v0 = vpop.eup %1469 }
 0x2c7   :  { %v706_v7 = vmul.f32 %v1470_v0, %v699_v11  ;;  %v3152_v0 = vld [vmem:[#allocation21_spill] sm:$0xff]  ;;  %v3153_v11 = vld [vmem:[#allocation23_spill] sm:$0xff] }
 0x2c9   :  { %1373 = vst [vmem:[%s2917_s2 + $0x18] sm:$0xff] %v706_v7  ;;  %733 = vmatmul.f32.vlgmr.msra.gmra.mxu0 %v706_v7  ;;  %753 = vmatmul.f32.vlgmr.msra.gmra.mxu1 %v706_v7 }
 0x2ca   :  { %773 = vmatmul.f32.vlgmr.msra.gmra.mxu2 %v706_v7  ;;  %793 = vmatmul.f32.vlgmr.msra.gmra.mxu3 %v706_v7  ;;  %v3154_v7 = vld [vmem:[#allocation24_spill] sm:$0xff] }
 0x2cb   :  { %1033 = vmatpush.msra.mxu0 %v2314_v50  ;;  %1053 = vmatpush.msra.mxu1 %v2320_v21 }
 0x2cc   :  { %1073 = vmatpush.msra.mxu2 %v2326_v22  ;;  %1093 = vmatpush.msra.mxu3 %v2332_v23 }
 0x2cd   :  { %1034 = vmatpush.msra.mxu0 %v2338_v24  ;;  %1054 = vmatpush.msra.mxu1 %v2344_v25 }
 0x2ce   :  { %1074 = vmatpush.msra.mxu2 %v2350_v26  ;;  %1094 = vmatpush.msra.mxu3 %v2356_v27 }
 0x2cf   :  { %1035 = vmatpush.msra.mxu0 %v2362_v28  ;;  %1055 = vmatpush.msra.mxu1 %v2368_v29 }
 0x2d0   :  { %1075 = vmatpush.msra.mxu2 %v2374_v30  ;;  %1095 = vmatpush.msra.mxu3 %v2380_v31 }
 0x2d1   :  { %1036 = vmatpush.msra.mxu0 %v2386_v32  ;;  %1056 = vmatpush.msra.mxu1 %v2392_v33 }
 0x2d2   :  { %1076 = vmatpush.msra.mxu2 %v2398_v35  ;;  %1096 = vmatpush.msra.mxu3 %v2404_v39 }
 0x2d3   :  { %1037 = vmatpush.msra.mxu0 %v2410_v43  ;;  %1057 = vmatpush.msra.mxu1 %v2416_v47 }
 0x2d4   :  { %1077 = vmatpush.msra.mxu2 %v2422_v60  ;;  %1097 = vmatpush.msra.mxu3 %v2428_v63 }
 0x2d5   :  { %1038 = vmatpush.msra.mxu0 %v2434_v34  ;;  %1058 = vmatpush.msra.mxu1 %v2440_v36 }
 0x2d6   :  { %1078 = vmatpush.msra.mxu2 %v2446_v37  ;;  %1098 = vmatpush.msra.mxu3 %v2452_v40 }
 0x2d7   :  { %1039 = vmatpush.msra.mxu0 %v2458_v56  ;;  %1059 = vmatpush.msra.mxu1 %v2464_v45 }
 0x2d8   :  { %1079 = vmatpush.msra.mxu2 %v2470_v53  ;;  %1099 = vmatpush.msra.mxu3 %v2476_v46 }
 0x2d9   :  { %1040 = vmatpush.msra.mxu0 %v2482_v62  ;;  %1060 = vmatpush.msra.mxu1 %v2488_v44 }
 0x2da   :  { %1080 = vmatpush.msra.mxu2 %v2494_v57  ;;  %1100 = vmatpush.msra.mxu3 %v2500_v2 }
 0x2db   :  { %1041 = vmatpush.msra.mxu0 %v2506_v38  ;;  %1061 = vmatpush.msra.mxu1 %v2512_v55 }
 0x2dc   :  { %1081 = vmatpush.msra.mxu2 %v2518_v41  ;;  %1101 = vmatpush.msra.mxu3 %v2524_v58 }
 0x2dd   :  { %1042 = vmatpush.msra.mxu0 %v2530_v52  ;;  %1062 = vmatpush.msra.mxu1 %v2536_v48 }
 0x2de   :  { %1082 = vmatpush.msra.mxu2 %v3130_v12  ;;  %1102 = vmatpush.msra.mxu3 %v3131_v51 }
 0x2df   :  { %1043 = vmatpush.msra.mxu0 %v3132_v61  ;;  %1063 = vmatpush.msra.mxu1 %v3133_v59 }
 0x2e0   :  { %1083 = vmatpush.msra.mxu2 %v3134_v49  ;;  %1103 = vmatpush.msra.mxu3 %v3135_v54 }
 0x2e1   :  { %1044 = vmatpush.msra.mxu0 %v3136_v16  ;;  %1064 = vmatpush.msra.mxu1 %v3137_v6 }
 0x2e2   :  { %1084 = vmatpush.msra.mxu2 %v3138_v13  ;;  %1104 = vmatpush.msra.mxu3 %v3139_v14 }
 0x2e3   :  { %1045 = vmatpush.msra.mxu0 %v3140_v15  ;;  %1065 = vmatpush.msra.mxu1 %v3141_v20 }
 0x2e4   :  { %1085 = vmatpush.msra.mxu2 %v3142_v9  ;;  %1105 = vmatpush.msra.mxu3 %v3143_v19 }
 0x2e5   :  { %1046 = vmatpush.msra.mxu0 %v3144_v10  ;;  %1066 = vmatpush.msra.mxu1 %v3145_v17  ;;  %v3155_v10 = vld [vmem:[#allocation30_spill] sm:$0xff] }
 0x2e6   :  { %1086 = vmatpush.msra.mxu2 %v3146_v8  ;;  %1106 = vmatpush.msra.mxu3 %v3147_v4  ;;  %v1374_v4 = vld [vmem:[%s2916_s0 + $0x80] sm:$0xff] }
 0x2e7   :  { %1047 = vmatpush.msra.mxu0 %v3148_v1  ;;  %1067 = vmatpush.msra.mxu1 %v3149_v42  ;;  %v1375_v42 = vld [vmem:[%s2916_s0 + $0x88] sm:$0xff] }
 0x2e8   :  { %1087 = vmatpush.msra.mxu2 %v3150_v3  ;;  %1107 = vmatpush.msra.mxu3 %v3151_v18 }
 0x2e9   :  { %1048 = vmatpush.msra.mxu0 %v3152_v0  ;;  %1068 = vmatpush.msra.mxu1 %v3153_v11 }
 0x2ea   :  { %1088 = vmatpush.msra.mxu2 %v3154_v7  ;;  %1108 = vmatpush.msra.mxu3 %v3155_v10  ;;  %v1377_v7 = vld [vmem:[%s2916_s0 + $0x98] sm:$0xff] }
 0x346   :  { %v734_v1 = vpop.f32.mrf.mxu0  ;;  %v754_v3 = vpop.f32.mrf.mxu1 }
 0x347   :  { %v797_v8 = vadd.f32 %v1374_v4, %v734_v1  ;;  %v798_v18 = vadd.f32 %v1375_v42, %v754_v3 }
 0x349   :  { %v1378_v17 = vmul.f32 -1.442695, %v797_v8  ;;  %v1379_v0 = vmul.f32 -1.442695, %v798_v18  ;;  %v1376_v8 = vld [vmem:[%s2916_s0 + $0x90] sm:$0xff] }
 0x34b   :  { %1471 = vpow2.f32 %v1378_v17 }
 0x34c   :  { %1473 = vpow2.f32 %v1379_v0 }
 0x34d   :  { %v794_v10 = vpop.f32.mrf.mxu3  ;;  %v774_v17 = vpop.f32.mrf.mxu2 }
 0x34e   :  { %v800_v11 = vadd.f32 %v1377_v7, %v794_v10  ;;  %v799_v3 = vadd.f32 %v1376_v8, %v774_v17 }
 0x350   :  { %v1380_v19 = vmul.f32 -1.442695, %v800_v11 }
 0x351   :  { %v1472_v9 = vpop.eup %1471 }
 0x352   :  { %v1474_v20 = vpop.eup %1473  ;;  %v804_v15 = vadd.f32 1.0, %v1472_v9  ;;  %1475 = vpow2.f32 %v1380_v19 }
 0x353   :  { %v823_v14 = vadd.f32 1.0, %v1474_v20 }
 0x354   :  { %1477 = vrcp.f32 %v804_v15  ;;  %v816_v9 = vand.u32 2147483648, %v804_v15  ;;  %v814_v13 = vand.u32 2147483647, %v804_v15  ;;  %vm810_vm2 = vweird.f32 %v804_v15 }
 0x355   :  { %1479 = vrcp.f32 %v823_v14  ;;  %v835_v20 = vand.u32 2147483648, %v823_v14  ;;  %v833_v16 = vand.u32 2147483647, %v823_v14  ;;  %vm829_vm3 = vweird.f32 %v823_v14 }
 0x356   :  { %v817_v8 = vor.u32 1.1754944e-38, %v816_v9  ;;  %vm815_vm6 = vcmp.eq.f32.partialorder %v814_v13, 8.507059e+37 }
 0x357   :  { %vm834_vm7 = vcmp.eq.f32.partialorder %v833_v16, 8.507059e+37 }
 0x358   :  { %v1476_v4 = vpop.eup %1475 }
 0x359   :  { %v843_v1 = vadd.f32 1.0, %v1476_v4 }
 0x35a   :  { %v1478_v42 = vpop.eup %1477 }
 0x35b   :  { %v1480_v18 = vpop.eup %1479  ;;  %v806_v0 = vmul.f32 %v1478_v42, %v804_v15  ;;  %1481 = vrcp.f32 %v843_v1  ;;  %vm811_vm0 = vweird.f32 %v1478_v42  ;;  %vm849_vm9 = vweird.f32 %v843_v1 }
 0x35c   :  { %v825_v10 = vmul.f32 %v1480_v18, %v823_v14  ;;  %1483 = vtanh.f32 %v799_v3  ;;  %vm830_vm1 = vweird.f32 %v1480_v18  ;;  %vm812_vm4 = vmor %vm810_vm2, %vm811_vm0 }
 0x35d   :  { %v807_v11 = vsub.f32 1.0, %v806_v0  ;;  %vm831_vm5 = vmor %vm829_vm3, %vm830_vm1  ;;  %v836_v0 = vor.u32 1.1754944e-38, %v835_v20 }
 0x35e   :  { %v826_v7 = vsub.f32 1.0, %v825_v10 }
 0x35f   :  { %v808_v19 = vmul.f32 %v1478_v42, %v807_v11 }
 0x360   :  { %v827_v6 = vmul.f32 %v1480_v18, %v826_v7 }
 0x361   :  { %v1482_v54 = vpop.eup %1481  ;;  %v809_v49 = vadd.f32 %v1478_v42, %v808_v19 }
 0x362   :  { %v828_v17 = vadd.f32 %v1480_v18, %v827_v6  ;;  %v845_v4 = vmul.f32 %v1482_v54, %v843_v1  ;;  %v1484_v3 = vpop.eup %1483  ;;  %vm850_vm8 = vweird.f32 %v1482_v54  ;;  %v855_v6 = vand.u32 2147483648, %v843_v1 }
 0x363   :  { %v813_v10 = vsel %vm812_vm4, %v1478_v42, %v809_v49  ;;  %v853_v49 = vand.u32 2147483647, %v843_v1  ;;  %vm851_vm10 = vmor %vm849_vm9, %vm850_vm8 }
 0x364   :  { %v818_v59 = vsel %vm815_vm6, %v817_v8, %v813_v10  ;;  %v832_v11 = vsel %vm831_vm5, %v1480_v18, %v828_v17  ;;  %v846_v61 = vsub.f32 1.0, %v845_v4  ;;  %v856_v42 = vor.u32 1.1754944e-38, %v855_v6 }
 0x365   :  { %v837_v7 = vsel %vm834_vm7, %v836_v0, %v832_v11  ;;  %v861_v51 = vmul.f32 %v1484_v3, %v818_v59  ;;  %vm854_vm11 = vcmp.eq.f32.partialorder %v853_v49, 8.507059e+37  ;;  %v1384_v59 = vld [vmem:[%s2916_s0 + $0xb0] sm:$0xff] }
 0x366   :  { %v860_v12 = vmul.f32 %v837_v7, %v2708_v5  ;;  %v847_v19 = vmul.f32 %v1482_v54, %v846_v61 }
 0x368   :  { %v2791_v15 = vadd.f32 %v861_v51, %v860_v12  ;;  %v848_v14 = vadd.f32 %v1482_v54, %v847_v19 }
 0x36a   :  { %1485 = vtanh.f32 %v2791_v15  ;;  %v852_v13 = vsel %vm851_vm10, %v1482_v54, %v848_v14 }
 0x36b   :  { %v857_v18 = vsel %vm854_vm11, %v856_v42, %v852_v13 }
 0x370   :  { %v1486_v16 = vpop.eup %1485 }
 0x371   :  { %v864_v9 = vmul.f32 %v1486_v16, %v857_v18 }
 0x373   :  { %1381 = vst [vmem:[%s2917_s2 + $0x20] sm:$0xff] %v864_v9  ;;  %891 = vmatmul.f32.vlgmr.msrb.gmra.mxu0 %v864_v9  ;;  %911 = vmatmul.f32.vlgmr.msrb.gmra.mxu1 %v864_v9 }
 0x374   :  { %931 = vmatmul.f32.vlgmr.msrb.gmra.mxu2 %v864_v9  ;;  %951 = vmatmul.f32.vlgmr.msrb.gmra.mxu3 %v864_v9 }
 0x375   :  { %1191 = vmatpush.msrb.mxu0 %v2314_v50  ;;  %1211 = vmatpush.msrb.mxu1 %v2320_v21  ;;  %v3156_v50 = vld [vmem:[#allocation4_spill] sm:$0xff]  ;;  %v3157_v21 = vld [vmem:[#allocation18_spill] sm:$0xff] }
 0x376   :  { %1231 = vmatpush.msrb.mxu2 %v2326_v22  ;;  %1251 = vmatpush.msrb.mxu3 %v2332_v23  ;;  %v3158_v22 = vld [vmem:[#allocation5_spill] sm:$0xff]  ;;  %v3159_v23 = vld [vmem:[#allocation6_spill] sm:$0xff] }
 0x377   :  { %1192 = vmatpush.msrb.mxu0 %v2338_v24  ;;  %1212 = vmatpush.msrb.mxu1 %v2344_v25  ;;  %v3160_v24 = vld [vmem:[#allocation7_spill] sm:$0xff]  ;;  %v3161_v25 = vld [vmem:[#allocation22_spill] sm:$0xff] }
 0x378   :  { %1232 = vmatpush.msrb.mxu2 %v2350_v26  ;;  %1252 = vmatpush.msrb.mxu3 %v2356_v27  ;;  %v3162_v26 = vld [vmem:[#allocation8_spill] sm:$0xff]  ;;  %v3163_v27 = vld [vmem:[#allocation9_spill] sm:$0xff] }
 0x379   :  { %1193 = vmatpush.msrb.mxu0 %v2362_v28  ;;  %1213 = vmatpush.msrb.mxu1 %v2368_v29  ;;  %v3164_v28 = vld [vmem:[#allocation10_spill] sm:$0xff] }
 0x37a   :  { %1233 = vmatpush.msrb.mxu2 %v2374_v30  ;;  %1253 = vmatpush.msrb.mxu3 %v2380_v31  ;;  %v3165_v29 = vld [vmem:[#allocation26_spill] sm:$0xff]  ;;  %v3166_v30 = vld [vmem:[#allocation11_spill] sm:$0xff]  ;;  %v3167_v31 = vld [vmem:[#allocation12_spill] sm:$0xff] }
 0x37b   :  { %1194 = vmatpush.msrb.mxu0 %v2386_v32  ;;  %1214 = vmatpush.msrb.mxu1 %v2392_v33  ;;  %v3168_v32 = vld [vmem:[#allocation13_spill] sm:$0xff]  ;;  %v3169_v33 = vld [vmem:[#allocation27_spill] sm:$0xff] }
 0x37c   :  { %1234 = vmatpush.msrb.mxu2 %v2398_v35  ;;  %1254 = vmatpush.msrb.mxu3 %v2404_v39  ;;  %v3170_v35 = vld [vmem:[#allocation14_spill] sm:$0xff]  ;;  %v3171_v39 = vld [vmem:[#allocation15_spill] sm:$0xff] }
 0x37d   :  { %1195 = vmatpush.msrb.mxu0 %v2410_v43  ;;  %1215 = vmatpush.msrb.mxu1 %v2416_v47  ;;  %v3172_v43 = vld [vmem:[#allocation16_spill] sm:$0xff] }
 0x37e   :  { %1235 = vmatpush.msrb.mxu2 %v2422_v60  ;;  %1255 = vmatpush.msrb.mxu3 %v2428_v63  ;;  %v3173_v47 = vld [vmem:[#allocation28_spill] sm:$0xff]  ;;  %v3174_v60 = vld [vmem:[#allocation17_spill] sm:$0xff]  ;;  %v3175_v63 = vld [vmem:[#allocation19_spill] sm:$0xff] }
 0x37f   :  { %1196 = vmatpush.msrb.mxu0 %v2434_v34  ;;  %1216 = vmatpush.msrb.mxu1 %v2440_v36  ;;  %v3176_v34 = vld [vmem:[#allocation20_spill] sm:$0xff]  ;;  %v3177_v36 = vld [vmem:[#allocation29_spill] sm:$0xff] }
 0x380   :  { %1236 = vmatpush.msrb.mxu2 %v2446_v37  ;;  %1256 = vmatpush.msrb.mxu3 %v2452_v40  ;;  %v3178_v37 = vld [vmem:[#allocation21_spill] sm:$0xff]  ;;  %v3179_v40 = vld [vmem:[#allocation23_spill] sm:$0xff] }
 0x381   :  { %1197 = vmatpush.msrb.mxu0 %v2458_v56  ;;  %1217 = vmatpush.msrb.mxu1 %v2464_v45  ;;  %v3180_v56 = vld [vmem:[#allocation24_spill] sm:$0xff]  ;;  %v3181_v45 = vld [vmem:[#allocation30_spill] sm:$0xff] }
 0x382   :  { %1237 = vmatpush.msrb.mxu2 %v2470_v53  ;;  %1257 = vmatpush.msrb.mxu3 %v2476_v46  ;;  %v1382_v53 = vld [vmem:[%s2916_s0 + $0xa0] sm:$0xff]  ;;  %v1383_v46 = vld [vmem:[%s2916_s0 + $0xa8] sm:$0xff] }
 0x383   :  { %1198 = vmatpush.msrb.mxu0 %v2482_v62  ;;  %1218 = vmatpush.msrb.mxu1 %v2488_v44 }
 0x384   :  { %1238 = vmatpush.msrb.mxu2 %v2494_v57  ;;  %1258 = vmatpush.msrb.mxu3 %v2500_v2 }
 0x385   :  { %1199 = vmatpush.msrb.mxu0 %v2506_v38  ;;  %1219 = vmatpush.msrb.mxu1 %v2512_v55 }
 0x386   :  { %1239 = vmatpush.msrb.mxu2 %v2518_v41  ;;  %1259 = vmatpush.msrb.mxu3 %v2524_v58  ;;  %v1385_v41 = vld [vmem:[%s2916_s0 + $0xb8] sm:$0xff] }
 0x387   :  { %1200 = vmatpush.msrb.mxu0 %v2530_v52  ;;  %1220 = vmatpush.msrb.mxu1 %v2536_v48 }
 0x388   :  { %1240 = vmatpush.msrb.mxu2 %v3156_v50  ;;  %1260 = vmatpush.msrb.mxu3 %v3157_v21 }
 0x389   :  { %1201 = vmatpush.msrb.mxu0 %v3158_v22  ;;  %1221 = vmatpush.msrb.mxu1 %v3159_v23 }
 0x38a   :  { %1241 = vmatpush.msrb.mxu2 %v3160_v24  ;;  %1261 = vmatpush.msrb.mxu3 %v3161_v25 }
 0x38b   :  { %1202 = vmatpush.msrb.mxu0 %v3162_v26  ;;  %1222 = vmatpush.msrb.mxu1 %v3163_v27 }
 0x38c   :  { %1242 = vmatpush.msrb.mxu2 %v3164_v28  ;;  %1262 = vmatpush.msrb.mxu3 %v3165_v29 }
 0x38d   :  { %1203 = vmatpush.msrb.mxu0 %v3166_v30  ;;  %1223 = vmatpush.msrb.mxu1 %v3167_v31 }
 0x38e   :  { %1243 = vmatpush.msrb.mxu2 %v3168_v32  ;;  %1263 = vmatpush.msrb.mxu3 %v3169_v33 }
 0x38f   :  { %1204 = vmatpush.msrb.mxu0 %v3170_v35  ;;  %1224 = vmatpush.msrb.mxu1 %v3171_v39 }
 0x390   :  { %1244 = vmatpush.msrb.mxu2 %v3172_v43  ;;  %1264 = vmatpush.msrb.mxu3 %v3173_v47 }
 0x391   :  { %1205 = vmatpush.msrb.mxu0 %v3174_v60  ;;  %1225 = vmatpush.msrb.mxu1 %v3175_v63 }
 0x392   :  { %1245 = vmatpush.msrb.mxu2 %v3176_v34  ;;  %1265 = vmatpush.msrb.mxu3 %v3177_v36  ;;  %v1391_v34 = vld [vmem:[%s2916_s0 + $0xc8] sm:$0xff] }
 0x393   :  { %1206 = vmatpush.msrb.mxu0 %v3178_v37  ;;  %1226 = vmatpush.msrb.mxu1 %v3179_v40 }
 0x394   :  { %1246 = vmatpush.msrb.mxu2 %v3180_v56  ;;  %1266 = vmatpush.msrb.mxu3 %v3181_v45 }
 0x3f0   :  { %v892_v62 = vpop.f32.mrf.mxu0  ;;  %v912_v44 = vpop.f32.mrf.mxu1 }
 0x3f1   :  { %v955_v57 = vadd.f32 %v1382_v53, %v892_v62  ;;  %v956_v2 = vadd.f32 %v1383_v46, %v912_v44  ;;  %v1393_v46 = vld [vmem:[%s2916_s0 + $0xd8] sm:$0xff] }
 0x3f3   :  { %v1386_v38 = vmul.f32 -1.442695, %v955_v57  ;;  %v1387_v55 = vmul.f32 -1.442695, %v956_v2 }
 0x3f5   :  { %1487 = vpow2.f32 %v1386_v38 }
 0x3f6   :  { %1489 = vpow2.f32 %v1387_v55 }
 0x3f7   :  { %v952_v58 = vpop.f32.mrf.mxu3  ;;  %v932_v54 = vpop.f32.mrf.mxu2 }
 0x3f8   :  { %v958_v52 = vadd.f32 %v1385_v41, %v952_v58  ;;  %v957_v17 = vadd.f32 %v1384_v59, %v932_v54  ;;  %v1392_v58 = vld [vmem:[%s2916_s0 + $0xd0] sm:$0xff] }
 0x3fa   :  { %v1388_v48 = vmul.f32 -1.442695, %v958_v52 }
 0x3fb   :  { %v1488_v5 = vpop.eup %1487 }
 0x3fc   :  { %v1490_v12 = vpop.eup %1489  ;;  %v962_v51 = vadd.f32 1.0, %v1488_v5  ;;  %1491 = vpow2.f32 %v1388_v48 }
 0x3fd   :  { %v981_v61 = vadd.f32 1.0, %v1490_v12 }
 0x3fe   :  { %1493 = vrcp.f32 %v962_v51  ;;  %v974_v7 = vand.u32 2147483648, %v962_v51  ;;  %v972_v6 = vand.u32 2147483647, %v962_v51  ;;  %vm968_vm14 = vweird.f32 %v962_v51 }
 0x3ff   :  { %1495 = vrcp.f32 %v981_v61  ;;  %v993_v19 = vand.u32 2147483648, %v981_v61  ;;  %v991_v13 = vand.u32 2147483647, %v981_v61  ;;  %vm987_vm15 = vweird.f32 %v981_v61 }
 0x400   :  { %v975_v18 = vor.u32 1.1754944e-38, %v974_v7  ;;  %vm973_vm2 = vcmp.eq.f32.partialorder %v972_v6, 8.507059e+37 }
 0x401   :  { %v994_v21 = vor.u32 1.1754944e-38, %v993_v19  ;;  %vm992_vm3 = vcmp.eq.f32.partialorder %v991_v13, 8.507059e+37 }
 0x402   :  { %v1492_v1 = vpop.eup %1491 }
 0x403   :  { %v1001_v20 = vadd.f32 1.0, %v1492_v1 }
 0x404   :  { %v1494_v8 = vpop.eup %1493 }
 0x405   :  { %v1496_v4 = vpop.eup %1495  ;;  %v964_v0 = vmul.f32 %v1494_v8, %v962_v51  ;;  %1497 = vrcp.f32 %v1001_v20  ;;  %vm969_vm12 = vweird.f32 %v1494_v8  ;;  %v1013_v33 = vand.u32 2147483648, %v1001_v20 }
 0x406   :  { %v983_v10 = vmul.f32 %v1496_v4, %v981_v61  ;;  %1499 = vtanh.f32 %v957_v17  ;;  %vm988_vm13 = vweird.f32 %v1496_v4  ;;  %vm970_vm0 = vmor %vm968_vm14, %vm969_vm12  ;;  %vm1007_vm5 = vweird.f32 %v1001_v20 }
 0x407   :  { %v965_v3 = vsub.f32 1.0, %v964_v0  ;;  %vm989_vm1 = vmor %vm987_vm15, %vm988_vm13  ;;  %v1011_v35 = vand.u32 2147483647, %v1001_v20  ;;  %v1014_v43 = vor.u32 1.1754944e-38, %v1013_v33 }
 0x408   :  { %v984_v11 = vsub.f32 1.0, %v983_v10 }
 0x409   :  { %v966_v14 = vmul.f32 %v1494_v8, %v965_v3  ;;  %vm1012_vm7 = vcmp.eq.f32.partialorder %v1011_v35, 8.507059e+37  ;;  %v1399_v35 = vld [vmem:[%s2916_s0 + $0xe8] sm:$0xff] }
 0x40a   :  { %v985_v49 = vmul.f32 %v1496_v4, %v984_v11 }
 0x40b   :  { %v1498_v42 = vpop.eup %1497  ;;  %v967_v16 = vadd.f32 %v1494_v8, %v966_v14 }
 0x40c   :  { %v986_v9 = vadd.f32 %v1496_v4, %v985_v49  ;;  %v1003_v50 = vmul.f32 %v1498_v42, %v1001_v20  ;;  %v1500_v23 = vpop.eup %1499  ;;  %vm1008_vm4 = vweird.f32 %v1498_v42 }
 0x40d   :  { %v971_v22 = vsel %vm970_vm0, %v1494_v8, %v967_v16  ;;  %vm1009_vm6 = vmor %vm1007_vm5, %vm1008_vm4 }
 0x40e   :  { %v976_v24 = vsel %vm973_vm2, %v975_v18, %v971_v22  ;;  %v990_v25 = vsel %vm989_vm1, %v1496_v4, %v986_v9  ;;  %v1004_v26 = vsub.f32 1.0, %v1003_v50 }
 0x40f   :  { %v995_v27 = vsel %vm992_vm3, %v994_v21, %v990_v25  ;;  %v1019_v28 = vmul.f32 %v1500_v23, %v976_v24 }
 0x410   :  { %v1018_v29 = vmul.f32 %v995_v27, %v2791_v15  ;;  %v1005_v30 = vmul.f32 %v1498_v42, %v1004_v26  ;;  %v1390_v15 = vld [vmem:[%s2916_s0 + $0xc0] sm:$0xff] }
 0x412   :  { %v2874_v31 = vadd.f32 %v1019_v28, %v1018_v29  ;;  %v1006_v32 = vadd.f32 %v1498_v42, %v1005_v30 }
 0x414   :  { %1501 = vtanh.f32 %v2874_v31  ;;  %v1010_v39 = vsel %vm1009_vm6, %v1498_v42, %v1006_v32 }
 0x415   :  { %v1015_v60 = vsel %vm1012_vm7, %v1014_v43, %v1010_v39 }
 0x41a   :  { %v1502_v47 = vpop.eup %1501 }
 0x41b   :  { %v1022_v63 = vmul.f32 %v1502_v47, %v1015_v60 }
 0x41d   :  { %1389 = vst [vmem:[%s2917_s2 + $0x28] sm:$0xff] %v1022_v63  ;;  %1049 = vmatmul.f32.vlgmr.msra.gmra.mxu0 %v1022_v63  ;;  %1069 = vmatmul.f32.vlgmr.msra.gmra.mxu1 %v1022_v63 }
 0x41e   :  { %1089 = vmatmul.f32.vlgmr.msra.gmra.mxu2 %v1022_v63  ;;  %1109 = vmatmul.f32.vlgmr.msra.gmra.mxu3 %v1022_v63 }
 0x49a   :  { %v1050_v36 = vpop.f32.mrf.mxu0  ;;  %v1070_v37 = vpop.f32.mrf.mxu1 }
 0x49b   :  { %v1113_v40 = vadd.f32 %v1390_v15, %v1050_v36  ;;  %v1114_v56 = vadd.f32 %v1391_v34, %v1070_v37  ;;  %v1401_v34 = vld [vmem:[%s2916_s0 + $0xf8] sm:$0xff] }
 0x49d   :  { %v1394_v45 = vmul.f32 -1.442695, %v1113_v40  ;;  %v1395_v53 = vmul.f32 -1.442695, %v1114_v56 }
 0x49f   :  { %1503 = vpow2.f32 %v1394_v45 }
 0x4a0   :  { %1505 = vpow2.f32 %v1395_v53 }
 0x4a1   :  { %v1110_v62 = vpop.f32.mrf.mxu3  ;;  %v1090_v52 = vpop.f32.mrf.mxu2 }
 0x4a2   :  { %v1116_v44 = vadd.f32 %v1393_v46, %v1110_v62  ;;  %v1115_v51 = vadd.f32 %v1392_v58, %v1090_v52  ;;  %v1400_v62 = vld [vmem:[%s2916_s0 + $0xf0] sm:$0xff] }
 0x4a4   :  { %v1396_v57 = vmul.f32 -1.442695, %v1116_v44 }
 0x4a5   :  { %v1504_v2 = vpop.eup %1503 }
 0x4a6   :  { %v1506_v38 = vpop.eup %1505  ;;  %v1120_v55 = vadd.f32 1.0, %v1504_v2  ;;  %1507 = vpow2.f32 %v1396_v57 }
 0x4a7   :  { %v1139_v41 = vadd.f32 1.0, %v1506_v38 }
 0x4a8   :  { %1509 = vrcp.f32 %v1120_v55  ;;  %v1132_v8 = vand.u32 2147483648, %v1120_v55  ;;  %v1130_v0 = vand.u32 2147483647, %v1120_v55  ;;  %vm1126_vm10 = vweird.f32 %v1120_v55 }
 0x4a9   :  { %1511 = vrcp.f32 %v1139_v41  ;;  %v1151_v17 = vand.u32 2147483648, %v1139_v41  ;;  %v1149_v3 = vand.u32 2147483647, %v1139_v41  ;;  %vm1145_vm11 = vweird.f32 %v1139_v41 }
 0x4aa   :  { %v1133_v19 = vor.u32 1.1754944e-38, %v1132_v8  ;;  %vm1131_vm14 = vcmp.eq.f32.partialorder %v1130_v0, 8.507059e+37 }
 0x4ab   :  { %v1152_v49 = vor.u32 1.1754944e-38, %v1151_v17  ;;  %vm1150_vm15 = vcmp.eq.f32.partialorder %v1149_v3, 8.507059e+37 }
 0x4ac   :  { %v1508_v48 = vpop.eup %1507 }
 0x4ad   :  { %v1159_v5 = vadd.f32 1.0, %v1508_v48 }
 0x4ae   :  { %v1510_v12 = vpop.eup %1509 }
 0x4af   :  { %v1512_v61 = vpop.eup %1511  ;;  %v1122_v59 = vmul.f32 %v1510_v12, %v1120_v55  ;;  %1513 = vrcp.f32 %v1159_v5  ;;  %vm1127_vm8 = vweird.f32 %v1510_v12  ;;  %v1171_v26 = vand.u32 2147483648, %v1159_v5 }
 0x4b0   :  { %v1141_v54 = vmul.f32 %v1512_v61, %v1139_v41  ;;  %1515 = vtanh.f32 %v1115_v51  ;;  %vm1146_vm9 = vweird.f32 %v1512_v61  ;;  %vm1128_vm12 = vmor %vm1126_vm10, %vm1127_vm8  ;;  %vm1165_vm1 = vweird.f32 %v1159_v5 }
 0x4b1   :  { %v1123_v1 = vsub.f32 1.0, %v1122_v59  ;;  %vm1147_vm13 = vmor %vm1145_vm11, %vm1146_vm9  ;;  %v1169_v27 = vand.u32 2147483647, %v1159_v5  ;;  %v1172_v29 = vor.u32 1.1754944e-38, %v1171_v26 }
 0x4b2   :  { %v1142_v20 = vsub.f32 1.0, %v1141_v54 }
 0x4b3   :  { %v1124_v4 = vmul.f32 %v1510_v12, %v1123_v1  ;;  %vm1170_vm3 = vcmp.eq.f32.partialorder %v1169_v27, 8.507059e+37 }
 0x4b4   :  { %v1143_v10 = vmul.f32 %v1512_v61, %v1142_v20 }
 0x4b5   :  { %v1514_v11 = vpop.eup %1513  ;;  %v1125_v7 = vadd.f32 %v1510_v12, %v1124_v4 }
 0x4b6   :  { %v1144_v14 = vadd.f32 %v1512_v61, %v1143_v10  ;;  %v1161_v6 = vmul.f32 %v1514_v11, %v1159_v5  ;;  %v1516_v42 = vpop.eup %1515  ;;  %vm1166_vm0 = vweird.f32 %v1514_v11 }
 0x4b7   :  { %v1129_v13 = vsel %vm1128_vm12, %v1510_v12, %v1125_v7  ;;  %vm1167_vm2 = vmor %vm1165_vm1, %vm1166_vm0 }
 0x4b8   :  { %v1134_v16 = vsel %vm1131_vm14, %v1133_v19, %v1129_v13  ;;  %v1148_v18 = vsel %vm1147_vm13, %v1512_v61, %v1144_v14  ;;  %v1162_v9 = vsub.f32 1.0, %v1161_v6 }
 0x4b9   :  { %v1153_v50 = vsel %vm1150_vm15, %v1152_v49, %v1148_v18  ;;  %v1177_v21 = vmul.f32 %v1516_v42, %v1134_v16 }
 0x4ba   :  { %v1176_v22 = vmul.f32 %v1153_v50, %v2874_v31  ;;  %v1163_v23 = vmul.f32 %v1514_v11, %v1162_v9  ;;  %v1398_v31 = vld [vmem:[%s2916_s0 + $0xe0] sm:$0xff] }
 0x4bc   :  { %v2893_v24 = vadd.f32 %v1177_v21, %v1176_v22  ;;  %v1164_v25 = vadd.f32 %v1514_v11, %v1163_v23 }
 0x4be   :  { %1517 = vtanh.f32 %v2893_v24  ;;  %v1168_v28 = vsel %vm1167_vm2, %v1514_v11, %v1164_v25 }
 0x4bf   :  { %v1173_v32 = vsel %vm1170_vm3, %v1172_v29, %v1168_v28 }
 0x4c4   :  { %v1518_v30 = vpop.eup %1517 }
 0x4c5   :  { %v1180_v33 = vmul.f32 %v1518_v30, %v1173_v32 }
 0x4c7   :  { %1397 = vst [vmem:[%s2917_s2 + $0x30] sm:$0xff] %v1180_v33  ;;  %1207 = vmatmul.f32.vlgmr.msrb.gmra.mxu0 %v1180_v33  ;;  %1227 = vmatmul.f32.vlgmr.msrb.gmra.mxu1 %v1180_v33 }
 0x4c8   :  { %1247 = vmatmul.f32.vlgmr.msrb.gmra.mxu2 %v1180_v33  ;;  %1267 = vmatmul.f32.vlgmr.msrb.gmra.mxu3 %v1180_v33 }
 0x544   :  { %v1208_v39 = vpop.f32.mrf.mxu0  ;;  %v1228_v43 = vpop.f32.mrf.mxu1 }
 0x545   :  { %v1271_v47 = vadd.f32 %v1398_v31, %v1208_v39  ;;  %v1272_v60 = vadd.f32 %v1399_v35, %v1228_v43 }
 0x547   :  { %v1402_v63 = vmul.f32 -1.442695, %v1271_v47  ;;  %v1403_v15 = vmul.f32 -1.442695, %v1272_v60 }
 0x549   :  { %1519 = vpow2.f32 %v1402_v63 }
 0x54a   :  { %1521 = vpow2.f32 %v1403_v15 }
 0x54b   :  { %v1268_v36 = vpop.f32.mrf.mxu3  ;;  %v1248_v44 = vpop.f32.mrf.mxu2 }
 0x54c   :  { %v1274_v37 = vadd.f32 %v1401_v34, %v1268_v36  ;;  %v1273_v55 = vadd.f32 %v1400_v62, %v1248_v44 }
 0x54e   :  { %v1404_v40 = vmul.f32 -1.442695, %v1274_v37 }
 0x54f   :  { %v1520_v56 = vpop.eup %1519 }
 0x550   :  { %v1522_v45 = vpop.eup %1521  ;;  %v1278_v53 = vadd.f32 1.0, %v1520_v56  ;;  %1523 = vpow2.f32 %v1404_v40 }
 0x551   :  { %v1297_v46 = vadd.f32 1.0, %v1522_v45 }
 0x552   :  { %1525 = vrcp.f32 %v1278_v53  ;;  %v1290_v12 = vand.u32 2147483648, %v1278_v53  ;;  %v1288_v59 = vand.u32 2147483647, %v1278_v53  ;;  %vm1284_vm6 = vweird.f32 %v1278_v53 }
 0x553   :  { %1527 = vrcp.f32 %v1297_v46  ;;  %v1309_v51 = vand.u32 2147483648, %v1297_v46  ;;  %v1307_v1 = vand.u32 2147483647, %v1297_v46  ;;  %vm1303_vm7 = vweird.f32 %v1297_v46 }
 0x554   :  { %v1291_v17 = vor.u32 1.1754944e-38, %v1290_v12  ;;  %vm1289_vm10 = vcmp.eq.f32.partialorder %v1288_v59, 8.507059e+37 }
 0x555   :  { %v1310_v10 = vor.u32 1.1754944e-38, %v1309_v51  ;;  %vm1308_vm11 = vcmp.eq.f32.partialorder %v1307_v1, 8.507059e+37 }
 0x556   :  { %v1524_v57 = vpop.eup %1523 }
 0x557   :  { %v1317_v2 = vadd.f32 1.0, %v1524_v57 }
 0x558   :  { %v1526_v38 = vpop.eup %1525 }
 0x559   :  { %v1528_v41 = vpop.eup %1527  ;;  %v1280_v58 = vmul.f32 %v1526_v38, %v1278_v53  ;;  %1529 = vrcp.f32 %v1317_v2  ;;  %vm1285_vm4 = vweird.f32 %v1526_v38  ;;  %v1329_v9 = vand.u32 2147483648, %v1317_v2 }
 0x55a   :  { %v1299_v52 = vmul.f32 %v1528_v41, %v1297_v46  ;;  %1531 = vtanh.f32 %v1273_v55  ;;  %vm1304_vm5 = vweird.f32 %v1528_v41  ;;  %vm1286_vm8 = vmor %vm1284_vm6, %vm1285_vm4  ;;  %vm1323_vm13 = vweird.f32 %v1317_v2 }
 0x55b   :  { %v1281_v48 = vsub.f32 1.0, %v1280_v58  ;;  %vm1305_vm9 = vmor %vm1303_vm7, %vm1304_vm5  ;;  %v1327_v50 = vand.u32 2147483647, %v1317_v2  ;;  %v1330_v22 = vor.u32 1.1754944e-38, %v1329_v9 }
 0x55c   :  { %v1300_v5 = vsub.f32 1.0, %v1299_v52 }
 0x55d   :  { %v1282_v61 = vmul.f32 %v1526_v38, %v1281_v48  ;;  %vm1328_vm15 = vcmp.eq.f32.partialorder %v1327_v50, 8.507059e+37 }
 0x55e   :  { %v1301_v54 = vmul.f32 %v1528_v41, %v1300_v5 }
 0x55f   :  { %v1530_v20 = vpop.eup %1529  ;;  %v1283_v8 = vadd.f32 %v1526_v38, %v1282_v61 }
 0x560   :  { %v1302_v4 = vadd.f32 %v1528_v41, %v1301_v54  ;;  %v1319_v0 = vmul.f32 %v1530_v20, %v1317_v2  ;;  %v1532_v11 = vpop.eup %1531  ;;  %vm1324_vm12 = vweird.f32 %v1530_v20 }
 0x561   :  { %v1287_v3 = vsel %vm1286_vm8, %v1526_v38, %v1283_v8  ;;  %vm1325_vm14 = vmor %vm1323_vm13, %vm1324_vm12 }
 0x562   :  { %v1292_v7 = vsel %vm1289_vm10, %v1291_v17, %v1287_v3  ;;  %v1306_v19 = vsel %vm1305_vm9, %v1528_v41, %v1302_v4  ;;  %v1320_v14 = vsub.f32 1.0, %v1319_v0 }
 0x563   :  { %v1311_v6 = vsel %vm1308_vm11, %v1310_v10, %v1306_v19  ;;  %v1335_v49 = vmul.f32 %v1532_v11, %v1292_v7 }
 0x564   :  { %v1334_v13 = vmul.f32 %v1311_v6, %v2893_v24  ;;  %v1321_v42 = vmul.f32 %v1530_v20, %v1320_v14 }
 0x566   :  { %v1336_v16 = vadd.f32 %v1335_v49, %v1334_v13  ;;  %v1322_v18 = vadd.f32 %v1530_v20, %v1321_v42 }
 0x568   :  { %1533 = vtanh.f32 %v1336_v16  ;;  %v1326_v21 = vsel %vm1325_vm14, %v1530_v20, %v1322_v18 }
 0x569   :  { %v1331_v25 = vsel %vm1328_vm15, %v1330_v22, %v1326_v21 }
 0x56e   :  { %v1534_v23 = vpop.eup %1533 }
 0x56f   :  { %v1338_v26 = vmul.f32 %v1534_v23, %v1331_v25 }
 0x571   :  { %1405 = vst [vmem:[%s2917_s2 + $0x38] sm:$0xff] %v1338_v26 }

</bundles_post_ra>
